<compile_context>
chip_gen: v6e
topology: v6e:2x2x1
jax: 0.10.0
libtpu: 0.0.40
codegen_flags: <defaults>
</compile_context>

<pallas_src>
import jax
import jax.numpy as jnp
from jax.experimental import pallas as pl
from jax.experimental.pallas import tpu as pltpu

FEATURE_SIZE = 768 + 256 + 64   # 1088, as in the module
HIDDEN_SIZE = 512
NUM_CLASSES = 16
LANE = 128


def _round_up(x, m):
    return (x + m - 1) // m * m


def _tile_plan(batch):
    """Per-generation batch-tile height and scoped-VMEM limit.

    v5e : 512-row tiles (cleanly MXU-bound, DMA hidden); raise the 16 MiB
          default scoped VMEM to 32 MiB for the f32 x tile.
    v6e : up to 2048-row tiles (128 MiB VMEM easily absorbs it) to hide
          per-step overhead now that DMA and MXU time are balanced; 64 MiB.
    v7x : 512-row tiles, but always >= 2 grid steps so the "parallel" batch
          axis uses both TensorCores; stay within 32 MiB scoped per TC.
    """
    try:
        kind = jax.devices()[0].device_kind.lower()
    except Exception:
        kind = ""
    if "v6" in kind:
        max_tile, min_steps, vmem = 2048, 1, 64 * 1024 * 1024
    elif "7" in kind:
        max_tile, min_steps, vmem = 512, 2, 32 * 1024 * 1024
    else:  # v5e and unknown generations
        max_tile, min_steps, vmem = 512, 1, 32 * 1024 * 1024
    steps = max(min_steps, pl.cdiv(batch, max_tile))
    # Multiple of 16 (bf16 sublane packing); never larger than needed.
    tile = min(_round_up(pl.cdiv(batch, steps), 16), _round_up(batch, 16))
    return tile, vmem


def _mlp_kernel(x_ref, wf_ref, bf_ref, w01_ref, b01_ref, wc_ref, bc_ref,
                out_ref):
    # xs arrives as f32 and is cast to bf16 in-kernel (VPU work hidden under
    # the MXU); all matmuls use bf16 operands with f32 accumulation and f32
    # bias adds.
    x = x_ref[...].astype(jnp.bfloat16)

    # Fused proj + i=0 layer:  relu(xs @ (Wp @ 2W0) + (bp @ 2W0 + 2b0))
    h = jnp.maximum(
        jnp.dot(x, wf_ref[...], preferred_element_type=jnp.float32)
        + bf_ref[...], 0.0)

    # i=1 layer:  relu(h @ (W0 + W1) + (b0 + b1))
    h = jnp.maximum(
        jnp.dot(h.astype(jnp.bfloat16), w01_ref[...],
                preferred_element_type=jnp.float32) + b01_ref[...], 0.0)

    # Classifier, output padded to a lane-dense 128-wide tile.
    out_ref[...] = jnp.dot(h.astype(jnp.bfloat16), wc_ref[...],
                           preferred_element_type=jnp.float32) + bc_ref[...]


def prepare_params(params):
    """One-time constant transforms (call ONCE, outside the forward path):
    proj/layer-0 folding, layer-1 weight folding, lane padding, bf16 cast.
    All folding is done in f32 before the bf16 cast."""
    wp, bp, w0, b0, w1, b1, wc, bc = params
    c = wc.shape[1]
    c_pad = _round_up(c, LANE)

    w0s = 2.0 * w0                     # i=0: L0 + L0
    wf = wp @ w0s                      # [1088, 512]  (f32 fold of proj + layer 0)
    bf = bp @ w0s + 2.0 * b0           # [1, 512]
    w01 = w0 + w1                      # i=1: L0 + L1
    b01 = b0 + b1

    wc_p = jnp.zeros((wc.shape[0], c_pad), jnp.float32).at[:, :c].set(wc)
    bc_p = jnp.zeros((1, c_pad), jnp.float32).at[:, :c].set(bc)

    prepared = (wf.astype(jnp.bfloat16), bf.astype(jnp.float32),
                w01.astype(jnp.bfloat16), b01.astype(jnp.float32),
                wc_p.astype(jnp.bfloat16), bc_p)
    return prepared, c


def model_forward(xs, prepared, num_classes):
    """xs: [B, FEATURE_SIZE] float32. Returns logits [B, num_classes] f32."""
    B, F_ = xs.shape
    assert F_ == FEATURE_SIZE
    wf, bf, w01, b01, wc_p, bc_p = prepared
    c_pad = wc_p.shape[1]

    tile, vmem_limit = _tile_plan(B)
    # No batch padding: the ragged last block is masked by Pallas on store;
    # padded rows read undefined data but never affect valid rows (no
    # cross-row reduction), and we never rely on them being zero.
    grid = (pl.cdiv(B, tile),)

    x_spec = pl.BlockSpec((tile, FEATURE_SIZE), lambda i: (i, 0))
    out_spec = pl.BlockSpec((tile, c_pad), lambda i: (i, 0))

    def full(a):
        # Whole weight/bias resident every step (constant index map -> one DMA).
        return pl.BlockSpec(a.shape, lambda i: (0, 0))

    out = pl.pallas_call(
        _mlp_kernel,
        out_shape=jax.ShapeDtypeStruct((B, c_pad), jnp.float32),
        grid_spec=pltpu.PrefetchScalarGridSpec(
            num_scalar_prefetch=0,
            grid=grid,
            in_specs=[x_spec,
                      full(wf), full(bf),
                      full(w01), full(b01),
                      full(wc_p), full(bc_p)],
            out_specs=out_spec,
        ),
        compiler_params=pltpu.CompilerParams(
            dimension_semantics=("parallel",),
            vmem_limit_bytes=vmem_limit),
    )(xs, wf, bf, w01, b01, wc_p, bc_p)

    return out[:, :num_classes]


def init_params(key):
    """Deterministic init (uniform, roughly matching nn.Linear scale).
    Weights are stored as [in, out] (already transposed vs. PyTorch)."""
    ks = jax.random.split(key, 8)

    def linear(kw, kb, fan_in, fan_out):
        bound = 1.0 / jnp.sqrt(fan_in)
        w_t = jax.random.uniform(kw, (fan_in, fan_out), jnp.float32, -bound, bound)
        b = jax.random.uniform(kb, (1, fan_out), jnp.float32, -bound, bound)
        return w_t, b

    wp, bp = linear(ks[0], ks[1], FEATURE_SIZE, HIDDEN_SIZE)
    w0, b0 = linear(ks[2], ks[3], HIDDEN_SIZE, HIDDEN_SIZE)
    w1, b1 = linear(ks[4], ks[5], HIDDEN_SIZE, HIDDEN_SIZE)
    wc, bc = linear(ks[6], ks[7], HIDDEN_SIZE, NUM_CLASSES)
    return (wp, bp, w0, b0, w1, b1, wc, bc)


def reference_forward(xs, params):
    """Pure f32 JAX reference matching the PyTorch forward exactly (no folding)."""
    wp, bp, w0, b0, w1, b1, wc, bc = params
    x = xs @ wp + bp
    x = jnp.maximum((x @ w0 + b0) + (x @ w0 + b0), 0.0)
    x = jnp.maximum((x @ w0 + b0) + (x @ w1 + b1), 0.0)
    return x @ wc + bc


# TODO(synk): TextModel / PropertyModel / SurfaceModel feature extractors are not
# defined in the reference snippet; only the `xs is not None` path is implemented.

if __name__ == "__main__":
    key = jax.random.PRNGKey(0)
    kp, kx = jax.random.split(key)
    params = init_params(kp)

    # One-time weight preparation, hoisted out of the per-call path.
    prepared, num_classes = prepare_params(params)

    # Small, non-tile-aligned batch exercises the ragged-last-block path.
    B = 50
    xs = jax.random.normal(kx, (B, FEATURE_SIZE), jnp.float32)

    fwd = jax.jit(model_forward, static_argnums=(2,))
    logits = jax.block_until_ready(fwd(xs, prepared, num_classes))

    ref = reference_forward(xs, params)
    assert logits.shape == (B, NUM_CLASSES)
    # bf16 MXU operands with f32 accumulation -> slightly looser tolerance vs f32 ref.
    assert jnp.allclose(logits, ref, atol=5e-2, rtol=5e-2), "mismatch vs reference"

    print("KERNEL_OK")
</pallas_src>

<mosaic_0001>
module attributes {stable_mosaic.version = 11 : i64} {
  func.func @_mlp_kernel(%arg0: i32, %arg1: memref<64x1088xf32, #tpu.memory_space<vmem>>, %arg2: memref<1088x512xbf16, #tpu.memory_space<vmem>>, %arg3: memref<1x512xf32, #tpu.memory_space<vmem>>, %arg4: memref<512x512xbf16, #tpu.memory_space<vmem>>, %arg5: memref<1x512xf32, #tpu.memory_space<vmem>>, %arg6: memref<512x128xbf16, #tpu.memory_space<vmem>>, %arg7: memref<1x128xf32, #tpu.memory_space<vmem>>, %arg8: memref<64x128xf32, #tpu.memory_space<vmem>>) attributes {dimension_semantics = [#tpu.dimension_semantics<parallel>], iteration_bounds = array<i64: 1>, scalar_prefetch = 0 : i64, scratch_operands = 0 : i64, tpu.core_type = #tpu.core_type<tc>, window_params = [{transform_indices = @transform_0, window_bounds = array<i64: 64, 1088>}, {pipeline_mode = #tpu.pipeline_mode<synchronous>, transform_indices = @transform_1, window_bounds = array<i64: 1088, 512>}, {pipeline_mode = #tpu.pipeline_mode<synchronous>, transform_indices = @transform_2, window_bounds = array<i64: 1, 512>}, {pipeline_mode = #tpu.pipeline_mode<synchronous>, transform_indices = @transform_3, window_bounds = array<i64: 512, 512>}, {pipeline_mode = #tpu.pipeline_mode<synchronous>, transform_indices = @transform_4, window_bounds = array<i64: 1, 512>}, {pipeline_mode = #tpu.pipeline_mode<synchronous>, transform_indices = @transform_5, window_bounds = array<i64: 512, 128>}, {pipeline_mode = #tpu.pipeline_mode<synchronous>, transform_indices = @transform_6, window_bounds = array<i64: 1, 128>}, {transform_indices = @transform_7, window_bounds = array<i64: 64, 128>}]} {
    %c0 = arith.constant 0 : index
    %c0_0 = arith.constant 0 : index
    %0 = vector.load %arg1[%c0, %c0_0] : memref<64x1088xf32, #tpu.memory_space<vmem>>, vector<64x1088xf32>
    %1 = arith.truncf %0 : vector<64x1088xf32> to vector<64x1088xbf16>
    %c0_1 = arith.constant 0 : index
    %c0_2 = arith.constant 0 : index
    %2 = vector.load %arg2[%c0_1, %c0_2] : memref<1088x512xbf16, #tpu.memory_space<vmem>>, vector<1088x512xbf16>
    %cst = arith.constant dense<0.000000e+00> : vector<64x512xf32>
    %3 = tpu.matmul %1, %2, %cst {dimension_numbers = #tpu.dot_dimension_numbers<[1], [0], [0], [1], [0, 0, 1, 1], [], []>} : vector<64x1088xbf16>, vector<1088x512xbf16>, vector<64x512xf32> -> vector<64x512xf32>
    %c0_3 = arith.constant 0 : index
    %c0_4 = arith.constant 0 : index
    %4 = vector.load %arg3[%c0_3, %c0_4] : memref<1x512xf32, #tpu.memory_space<vmem>>, vector<1x512xf32>
    %5 = vector.broadcast %4 : vector<1x512xf32> to vector<64x512xf32>
    %6 = arith.addf %3, %5 : vector<64x512xf32>
    %cst_5 = arith.constant 0.000000e+00 : f32
    %7 = vector.broadcast %cst_5 : f32 to vector<64x512xf32>
    %8 = arith.maximumf %6, %7 : vector<64x512xf32>
    %9 = arith.truncf %8 : vector<64x512xf32> to vector<64x512xbf16>
    %c0_6 = arith.constant 0 : index
    %c0_7 = arith.constant 0 : index
    %10 = vector.load %arg4[%c0_6, %c0_7] : memref<512x512xbf16, #tpu.memory_space<vmem>>, vector<512x512xbf16>
    %cst_8 = arith.constant dense<0.000000e+00> : vector<64x512xf32>
    %11 = tpu.matmul %9, %10, %cst_8 {dimension_numbers = #tpu.dot_dimension_numbers<[1], [0], [0], [1], [0, 0, 1, 1], [], []>} : vector<64x512xbf16>, vector<512x512xbf16>, vector<64x512xf32> -> vector<64x512xf32>
    %c0_9 = arith.constant 0 : index
    %c0_10 = arith.constant 0 : index
    %12 = vector.load %arg5[%c0_9, %c0_10] : memref<1x512xf32, #tpu.memory_space<vmem>>, vector<1x512xf32>
    %13 = vector.broadcast %12 : vector<1x512xf32> to vector<64x512xf32>
    %14 = arith.addf %11, %13 : vector<64x512xf32>
    %cst_11 = arith.constant 0.000000e+00 : f32
    %15 = vector.broadcast %cst_11 : f32 to vector<64x512xf32>
    %16 = arith.maximumf %14, %15 : vector<64x512xf32>
    %17 = arith.truncf %16 : vector<64x512xf32> to vector<64x512xbf16>
    %c0_12 = arith.constant 0 : index
    %c0_13 = arith.constant 0 : index
    %18 = vector.load %arg6[%c0_12, %c0_13] : memref<512x128xbf16, #tpu.memory_space<vmem>>, vector<512x128xbf16>
    %cst_14 = arith.constant dense<0.000000e+00> : vector<64x128xf32>
    %19 = tpu.matmul %17, %18, %cst_14 {dimension_numbers = #tpu.dot_dimension_numbers<[1], [0], [0], [1], [0, 0, 1, 1], [], []>} : vector<64x512xbf16>, vector<512x128xbf16>, vector<64x128xf32> -> vector<64x128xf32>
    %c0_15 = arith.constant 0 : index
    %c0_16 = arith.constant 0 : index
    %20 = vector.load %arg7[%c0_15, %c0_16] : memref<1x128xf32, #tpu.memory_space<vmem>>, vector<1x128xf32>
    %21 = vector.broadcast %20 : vector<1x128xf32> to vector<64x128xf32>
    %22 = arith.addf %19, %21 : vector<64x128xf32>
    %c0_17 = arith.constant 0 : index
    %c0_18 = arith.constant 0 : index
    %23 = vector.load %arg8[%c0_17, %c0_18] : memref<64x128xf32, #tpu.memory_space<vmem>>, vector<64x128xf32>
    tpu.vector_store %arg8[%c0_17, %c0_18], %22 {strides = array<i32>} : memref<64x128xf32, #tpu.memory_space<vmem>>, vector<64x128xf32>,
    return
  }
  func.func @transform_0(%arg0: i32) -> (i32, i32) {
    %c0_i32 = arith.constant 0 : i32
    %c0_i32_0 = arith.constant 0 : i32
    return %arg0, %c0_i32 : i32, i32
  }
  func.func @transform_1(%arg0: i32) -> (i32, i32) {
    %c0_i32 = arith.constant 0 : i32
    %c0_i32_0 = arith.constant 0 : i32
    %c0_i32_1 = arith.constant 0 : i32
    return %c0_i32, %c0_i32_0 : i32, i32
  }
  func.func @transform_2(%arg0: i32) -> (i32, i32) {
    %c0_i32 = arith.constant 0 : i32
    %c0_i32_0 = arith.constant 0 : i32
    %c0_i32_1 = arith.constant 0 : i32
    return %c0_i32, %c0_i32_0 : i32, i32
  }
  func.func @transform_3(%arg0: i32) -> (i32, i32) {
    %c0_i32 = arith.constant 0 : i32
    %c0_i32_0 = arith.constant 0 : i32
    %c0_i32_1 = arith.constant 0 : i32
    return %c0_i32, %c0_i32_0 : i32, i32
  }
  func.func @transform_4(%arg0: i32) -> (i32, i32) {
    %c0_i32 = arith.constant 0 : i32
    %c0_i32_0 = arith.constant 0 : i32
    %c0_i32_1 = arith.constant 0 : i32
    return %c0_i32, %c0_i32_0 : i32, i32
  }
  func.func @transform_5(%arg0: i32) -> (i32, i32) {
    %c0_i32 = arith.constant 0 : i32
    %c0_i32_0 = arith.constant 0 : i32
    %c0_i32_1 = arith.constant 0 : i32
    return %c0_i32, %c0_i32_0 : i32, i32
  }
  func.func @transform_6(%arg0: i32) -> (i32, i32) {
    %c0_i32 = arith.constant 0 : i32
    %c0_i32_0 = arith.constant 0 : i32
    %c0_i32_1 = arith.constant 0 : i32
    return %c0_i32, %c0_i32_0 : i32, i32
  }
  func.func @transform_7(%arg0: i32) -> (i32, i32) {
    %c0_i32 = arith.constant 0 : i32
    %c0_i32_0 = arith.constant 0 : i32
    return %arg0, %c0_i32 : i32, i32
  }
}

</mosaic_0001>

<bundles_post_ra>
// kernel: model_forward.1
= control target key start
LH: loop header
LB: loop body
LE: loop exit
PB: predicated region body
PF: predicated region fallthrough
CT: control target
= control target key end

     0   :  { %12 = vsyncpa [#allocation3], 0  ;;  %s6315_s0 = inlined_call_operand.hbm [shape: f32[50,1088], index: 0, kind: input, shape index: {}]   ;;  %s6316_s1 = inlined_call_operand.hbm [shape: bf16[1088,512], index: 1, kind: input, shape index: {}]   ;;  %s6317_s2 = inlined_call_operand.hbm [shape: f32[1,512], index: 2, kind: input, shape index: {}]   ;;  %s6318_s3 = inlined_call_operand.hbm [shape: bf16[512,512], index: 3, kind: input, shape index: {}]   ;;  %s6319_s4 = inlined_call_operand.hbm [shape: f32[1,512], index: 4, kind: input, shape index: {}]   ;;  %s6320_s5 = inlined_call_operand.hbm [shape: bf16[512,128], index: 5, kind: input, shape index: {}]   ;;  %s6321_s6 = inlined_call_operand.hbm [shape: f32[1,128], index: 6, kind: input, shape index: {}]   ;;  %s6322_s7 = inlined_call_operand.vmem [shape: f32[50,128], index: 7, kind: output, shape index: {}]  }
   0x1   :  { %13 = vsyncpa [#allocation5], 0 }
   0x2   :  { %14 = vsyncpa [#allocation8], 0 }
   0x3   :  { %15 = vsyncpa [#allocation11], 0 }
   0x4   :  { %20 = vsyncadd [#allocation3], 1152  ;;  %s5584_s24 = smov [#allocation4]  }
   0x5   :  { %s33_s25 = sshll.u32 %s5584_s24, 4  ;;  %s34_s25 = int_to_ptr.vmem [resolvable:$true] %s33_s25 }
   0x6   :  { %s5444_s26 = scalar_lea.vmem %s34_s25, 34816  ;;  %p5449_p1 = scmp.lt.s32.totalorder %s34_s25, %s34_s25 }
   0x7   :  { %p5445_p0 = scmp.ne.s32.totalorder %s34_s25, %s5444_s26  ;;  %p5450_p2 = scmp.lt.s32.totalorder %s5444_s26, %s5444_s26 }
   0x9   :  { %p5451_p3 = por %p5450_p2, %p5449_p1 }
   0xb   :  { %p5452_p4 = pnand %p5451_p3, %p5445_p0 }
   0xd   :  { %5455 = shalt.err (!%p5452_p4)
}
   0xe   :  { %s5585_s27 = smov 256   ;;  %s5586_s28 = smov 16  }
   0xf   :  { %39 = dma.hbm_to_vmem [thread:$0]  %s6316_s1, 34816, %s34_s25, [#allocation5], %s5585_s27, %s5585_s27, %s5586_s28  }
  0x10   :  { %s5587_s8 = smov [#allocation7]   ;;  %s5588_s10 = smov [#allocation10]  }
  0x11   :  { %s55_s9 = sshll.u32 %s5587_s8, 4  ;;  %s77_s11 = sshll.u32 %s5588_s10, 4  ;;  %s56_s9 = int_to_ptr.vmem [resolvable:$true] %s55_s9  ;;  %s78_s11 = int_to_ptr.vmem [resolvable:$true] %s77_s11 }
  0x12   :  { %s5464_s12 = scalar_lea.vmem %s56_s9, 16384  ;;  %p5469_p6 = scmp.lt.s32.totalorder %s56_s9, %s56_s9 }
  0x13   :  { %p5465_p5 = scmp.ne.s32.totalorder %s56_s9, %s5464_s12  ;;  %p5470_p7 = scmp.lt.s32.totalorder %s5464_s12, %s5464_s12 }
  0x15   :  { %p5471_p8 = por %p5470_p7, %p5469_p6 }
  0x17   :  { %p5472_p9 = pnand %p5471_p8, %p5465_p5 }
  0x19   :  { %5475 = shalt.err (!%p5472_p9)
}
  0x1a   :  { %61 = dma.hbm_to_vmem [thread:$0]  %s6318_s3, 16384, %s56_s9, [#allocation8], %s5585_s27, %s5585_s27, %s5586_s28  }
  0x1b   :  { %s5484_s15 = scalar_lea.vmem %s78_s11, 4096  ;;  %p5489_p11 = scmp.lt.s32.totalorder %s78_s11, %s78_s11 }
  0x1c   :  { %p5485_p10 = scmp.ne.s32.totalorder %s78_s11, %s5484_s15  ;;  %p5490_p12 = scmp.lt.s32.totalorder %s5484_s15, %s5484_s15 }
  0x1e   :  { %p5491_p13 = por %p5490_p12, %p5489_p11 }
  0x20   :  { %p5492_p0 = pnand %p5491_p13, %p5485_p10 }
  0x22   :  { %5495 = shalt.err (!%p5492_p0)
}
  0x23   :  { %s5589_s1 = smov 64   ;;  %s5590_s16 = smov 4  }
  0x24   :  { %83 = dma.hbm_to_vmem [thread:$0]  %s6320_s5, 4096, %s78_s11, [#allocation11], %s5589_s1, %s5589_s1, %s5590_s16  }
  0x25   :  { %s5591_s19 = smov [#allocation2]  }
  0x26   :  { %s21_s20 = sshll.u32 %s5591_s19, 4  ;;  %s22_s20 = int_to_ptr.vmem [resolvable:$true] %s21_s20 }
  0x27   :  { %s5504_s21 = scalar_lea.vmem %s22_s20, 8064  ;;  %s5508_s3 = scalar_lea.vmem %s22_s20, 9216 }
  0x28   :  { %p5505_p1 = scmp.ne.s32.totalorder %s22_s20, %s5504_s21  ;;  %p5509_p2 = scmp.lt.s32.totalorder %s22_s20, %s22_s20 }
  0x29   :  { %p5510_p3 = scmp.lt.s32.totalorder %s5508_s3, %s5504_s21 }
  0x2b   :  { %p5511_p4 = por %p5510_p3, %p5509_p2 }
  0x2d   :  { %p5512_p5 = pnand %p5511_p4, %p5505_p1 }
  0x2f   :  { %5515 = shalt.err (!%p5512_p5)
}
  0x30   :  { %s5592_s22 = smov 1152   ;;  %s5593_s23 = smov 72  }
  0x31   :  { %27 = dma.hbm_to_vmem [thread:$0]  %s6315_s0, 8064, %s22_s20, [#allocation3], %s5592_s22, %s5592_s22, %s5593_s23  }
  0x32   :  { %s5594_s26 = smov [#allocation6]   ;;  %s5595_s5 = smov [#allocation9]  }
  0x33   :  { %s46_s27 = sshll.u32 %s5594_s26, 4  ;;  %s68_s28 = sshll.u32 %s5595_s5, 4  ;;  %s47_s27 = int_to_ptr.vmem [resolvable:$true] %s46_s27  ;;  %s69_s28 = int_to_ptr.vmem [resolvable:$true] %s68_s28 }
  0x34   :  { %s5524_s29 = scalar_lea.vmem %s47_s27, 64  ;;  %p5529_p7 = scmp.lt.s32.totalorder %s47_s27, %s47_s27 }
  0x35   :  { %p5525_p6 = scmp.ne.s32.totalorder %s47_s27, %s5524_s29  ;;  %p5530_p8 = scmp.lt.s32.totalorder %s5524_s29, %s5524_s29 }
  0x37   :  { %p5531_p9 = por %p5530_p8, %p5529_p7 }
  0x39   :  { %p5532_p10 = pnand %p5531_p9, %p5525_p6 }
  0x3b   :  { %5535 = shalt.err (!%p5532_p10)
}
  0x3c   :  { %49 = dma.hbm_to_vmem [thread:$0]  %s6317_s2, 64, %s47_s27, [#allocation5]  }
  0x3d   :  { %s5544_s9 = scalar_lea.vmem %s69_s28, 64  ;;  %p5549_p12 = scmp.lt.s32.totalorder %s69_s28, %s69_s28 }
  0x3e   :  { %p5545_p11 = scmp.ne.s32.totalorder %s69_s28, %s5544_s9  ;;  %p5550_p13 = scmp.lt.s32.totalorder %s5544_s9, %s5544_s9 }
  0x40   :  { %p5551_p0 = por %p5550_p13, %p5549_p12 }
  0x42   :  { %p5552_p1 = pnand %p5551_p0, %p5545_p11 }
  0x44   :  { %5555 = shalt.err (!%p5552_p1)
}
  0x45   :  { %71 = dma.hbm_to_vmem [thread:$0]  %s6319_s4, 64, %s69_s28, [#allocation8]  }
  0x46   :  { %s5596_s11 = smov [#allocation12]  }
  0x47   :  { %s90_s12 = sshll.u32 %s5596_s11, 4  ;;  %s91_s12 = int_to_ptr.vmem [resolvable:$true] %s90_s12 }
  0x48   :  { %s5564_s13 = scalar_lea.vmem %s91_s12, 16  ;;  %s5568_s14 = scalar_lea.vmem %s91_s12, 32 }
  0x49   :  { %p5565_p2 = scmp.ne.s32.totalorder %s91_s12, %s5564_s13  ;;  %p5569_p3 = scmp.lt.s32.totalorder %s91_s12, %s91_s12 }
  0x4a   :  { %p5570_p4 = scmp.lt.s32.totalorder %s5568_s14, %s5564_s13 }
  0x4c   :  { %p5571_p5 = por %p5570_p4, %p5569_p3 }
  0x4e   :  { %p5572_p6 = pnand %p5571_p5, %p5565_p2 }
  0x50   :  { %5575 = shalt.err (!%p5572_p6)
}
  0x51   :  { %93 = dma.hbm_to_vmem [thread:$0]  %s6321_s6, 16, %s91_s12, [#allocation11]  }
  0x52   :  { %5576 = dma.done.wait [#allocation3], 9216  }
  0x53   :  { %5577 = vsyncadd [#allocation3], 4294958080 }
  0x54   :  { %5578 = dma.done.wait [#allocation5], 34880  }
  0x55   :  { %5579 = vsyncadd [#allocation5], 4294932416 }
  0x56   :  { %5580 = dma.done.wait [#allocation8], 16448  }
  0x57   :  { %5581 = vsyncadd [#allocation8], 4294950848 }
  0x58   :  { %5582 = dma.done.wait [#allocation11], 4112  }
  0x59   :  { %5583 = vsyncadd [#allocation11], 4294963184  ;;  %v4804_v0 = vld [vmem:[#allocation4 + $0xe4] ss:$16 sps:$4 sm:$0xff]   ;;  %v4808_v2 = vld [vmem:[#allocation4 + $0xe0] ss:$16 sps:$4 sm:$0xff]  }
  0x5a   :  { %v4806_v1 = vld [vmem:[#allocation4 + $0x2e4] ss:$16 sps:$4 sm:$0xff]   ;;  %1891 = vmatprep.subr.bf16.mxu0 %v4804_v0  ;;  %v4809_v3 = vld [vmem:[#allocation4 + $0x2e0] ss:$16 sps:$4 sm:$0xff]   ;;  %v117_v46 = vld [vmem:[#allocation2 + $0x8] sm:$0xff]  ;;  %vm1878_vm0 = vcmask 523264  }
  0x5b   :  { %1964 = vmatprep.subr.bf16.mxu1 %v4806_v1  ;;  %v4810_v4 = vld [vmem:[#allocation4 + $0xc4] ss:$16 sps:$4 sm:$0xff]   ;;  %1892 = vmatpush1.bf16.msra.mxu0 %v4808_v2  ;;  %v4814_v6 = vld [vmem:[#allocation4 + $0xc0] ss:$16 sps:$4 sm:$0xff]   ;;  %v119_v48 = vld [vmem:[#allocation2 + $0x18] sm:$0xff] }
  0x5c   :  { %1965 = vmatpush1.bf16.msra.mxu1 %v4809_v3  ;;  %v4812_v5 = vld [vmem:[#allocation4 + $0x2c4] ss:$16 sps:$4 sm:$0xff]   ;;  %1893 = vmatprep.subr.bf16.mxu0 %v4810_v4  ;;  %v4815_v7 = vld [vmem:[#allocation4 + $0x2c0] ss:$16 sps:$4 sm:$0xff]  }
  0x5d   :  { %1966 = vmatprep.subr.bf16.mxu1 %v4812_v5  ;;  %v4816_v8 = vld [vmem:[#allocation4 + $0xa4] ss:$16 sps:$4 sm:$0xff]   ;;  %v4820_v10 = vld [vmem:[#allocation4 + $0xa0] ss:$16 sps:$4 sm:$0xff]  }
  0x5e   :  { %v4818_v9 = vld [vmem:[#allocation4 + $0x2a4] ss:$16 sps:$4 sm:$0xff]   ;;  %v4821_v11 = vld [vmem:[#allocation4 + $0x2a0] ss:$16 sps:$4 sm:$0xff]  }
  0x5f   :  { %1894 = vmatpush1.bf16.msra.mxu0 %v4814_v6  ;;  %v4822_v12 = vld [vmem:[#allocation4 + $0x84] ss:$16 sps:$4 sm:$0xff]   ;;  %v4826_v14 = vld [vmem:[#allocation4 + $0x80] ss:$16 sps:$4 sm:$0xff]  }
  0x60   :  { %1967 = vmatpush1.bf16.msra.mxu1 %v4815_v7  ;;  %1895 = vmatprep.subr.bf16.mxu0 %v4816_v8  ;;  %v4824_v13 = vld [vmem:[#allocation4 + $0x284] ss:$16 sps:$4 sm:$0xff]   ;;  %v4827_v15 = vld [vmem:[#allocation4 + $0x280] ss:$16 sps:$4 sm:$0xff]   ;;  %v125_v7 = vld [vmem:[#allocation2 + $0x48] sm:$0xff] }
  0x61   :  { %1968 = vmatprep.subr.bf16.mxu1 %v4818_v9  ;;  %v4828_v16 = vld [vmem:[#allocation4 + $0x64] ss:$16 sps:$4 sm:$0xff]   ;;  %v4832_v18 = vld [vmem:[#allocation4 + $0x60] ss:$16 sps:$4 sm:$0xff]   ;;  %v127_v9 = vld [vmem:[#allocation2 + $0x58] sm:$0xff] }
  0x62   :  { %v4830_v17 = vld [vmem:[#allocation4 + $0x264] ss:$16 sps:$4 sm:$0xff]   ;;  %v4833_v19 = vld [vmem:[#allocation4 + $0x260] ss:$16 sps:$4 sm:$0xff]  }
  0x63   :  { %1896 = vmatpush1.bf16.msra.mxu0 %v4820_v10  ;;  %v4834_v20 = vld [vmem:[#allocation4 + $0x44] ss:$16 sps:$4 sm:$0xff]   ;;  %v4838_v22 = vld [vmem:[#allocation4 + $0x40] ss:$16 sps:$4 sm:$0xff]  }
  0x64   :  { %1969 = vmatpush1.bf16.msra.mxu1 %v4821_v11  ;;  %1897 = vmatprep.subr.bf16.mxu0 %v4822_v12  ;;  %v4836_v21 = vld [vmem:[#allocation4 + $0x244] ss:$16 sps:$4 sm:$0xff]   ;;  %v4839_v23 = vld [vmem:[#allocation4 + $0x240] ss:$16 sps:$4 sm:$0xff]  }
  0x65   :  { %1970 = vmatprep.subr.bf16.mxu1 %v4824_v13  ;;  %v4840_v24 = vld [vmem:[#allocation4 + $0x24] ss:$16 sps:$4 sm:$0xff]   ;;  %v4844_v26 = vld [vmem:[#allocation4 + $0x20] ss:$16 sps:$4 sm:$0xff]  }
  0x66   :  { %v4842_v25 = vld [vmem:[#allocation4 + $0x224] ss:$16 sps:$4 sm:$0xff]   ;;  %v4845_v27 = vld [vmem:[#allocation4 + $0x220] ss:$16 sps:$4 sm:$0xff]  }
  0x67   :  { %1898 = vmatpush1.bf16.msra.mxu0 %v4826_v14  ;;  %v4846_v28 = vld [vmem:[#allocation4 + $0x4] ss:$16 sps:$4 sm:$0xff]   ;;  %v4850_v30 = vld [vmem:[#allocation4] ss:$16 sps:$4 sm:$0xff]  }
  0x68   :  { %1971 = vmatpush1.bf16.msra.mxu1 %v4827_v15  ;;  %1899 = vmatprep.subr.bf16.mxu0 %v4828_v16  ;;  %v4848_v29 = vld [vmem:[#allocation4 + $0x204] ss:$16 sps:$4 sm:$0xff]   ;;  %v4851_v31 = vld [vmem:[#allocation4 + $0x200] ss:$16 sps:$4 sm:$0xff]  }
  0x69   :  { %1972 = vmatprep.subr.bf16.mxu1 %v4830_v17  ;;  %v4852_v32 = vld [vmem:[#allocation4 + $0x1e4] ss:$16 sps:$4 sm:$0xff]   ;;  %v4856_v34 = vld [vmem:[#allocation4 + $0x1e0] ss:$16 sps:$4 sm:$0xff]  }
  0x6a   :  { %v4854_v33 = vld [vmem:[#allocation4 + $0x3e4] ss:$16 sps:$4 sm:$0xff]   ;;  %v4857_v35 = vld [vmem:[#allocation4 + $0x3e0] ss:$16 sps:$4 sm:$0xff]  }
  0x6b   :  { %1900 = vmatpush1.bf16.msra.mxu0 %v4832_v18  ;;  %v4858_v36 = vld [vmem:[#allocation4 + $0x1c4] ss:$16 sps:$4 sm:$0xff]   ;;  %v4862_v38 = vld [vmem:[#allocation4 + $0x1c0] ss:$16 sps:$4 sm:$0xff]  }
  0x6c   :  { %1973 = vmatpush1.bf16.msra.mxu1 %v4833_v19  ;;  %1901 = vmatprep.subr.bf16.mxu0 %v4834_v20  ;;  %v4860_v37 = vld [vmem:[#allocation4 + $0x3c4] ss:$16 sps:$4 sm:$0xff]   ;;  %v4863_v39 = vld [vmem:[#allocation4 + $0x3c0] ss:$16 sps:$4 sm:$0xff]  }
  0x6d   :  { %1974 = vmatprep.subr.bf16.mxu1 %v4836_v21  ;;  %v4864_v40 = vld [vmem:[#allocation4 + $0x1a4] ss:$16 sps:$4 sm:$0xff]   ;;  %v4868_v42 = vld [vmem:[#allocation4 + $0x1a0] ss:$16 sps:$4 sm:$0xff]  }
  0x6e   :  { %v4866_v41 = vld [vmem:[#allocation4 + $0x3a4] ss:$16 sps:$4 sm:$0xff]   ;;  %v4869_v43 = vld [vmem:[#allocation4 + $0x3a0] ss:$16 sps:$4 sm:$0xff]  }
  0x6f   :  { %1902 = vmatpush1.bf16.msra.mxu0 %v4838_v22  ;;  %v4870_v44 = vld [vmem:[#allocation4 + $0x184] ss:$16 sps:$4 sm:$0xff]   ;;  %v4874_v50 = vld [vmem:[#allocation4 + $0x180] ss:$16 sps:$4 sm:$0xff]   ;;  %v135_v22 = vld [vmem:[#allocation2 + $0x98] sm:$0xff] }
  0x70   :  { %1975 = vmatpush1.bf16.msra.mxu1 %v4839_v23  ;;  %1903 = vmatprep.subr.bf16.mxu0 %v4840_v24  ;;  %v4872_v45 = vld [vmem:[#allocation4 + $0x384] ss:$16 sps:$4 sm:$0xff]   ;;  %v4875_v51 = vld [vmem:[#allocation4 + $0x380] ss:$16 sps:$4 sm:$0xff]  }
  0x71   :  { %1976 = vmatprep.subr.bf16.mxu1 %v4842_v25  ;;  %v126_v47 = vld [vmem:[#allocation2 + $0x50] sm:$0xff]  ;;  %v128_v49 = vld [vmem:[#allocation2 + $0x60] sm:$0xff] }
  0x72   :  { %v4876_v52 = vld [vmem:[#allocation4 + $0x164] ss:$16 sps:$4 sm:$0xff]   ;;  %v5659_v53 = vpack.c.bf16 %v126_v47, %v117_v46  ;;  %v5661_v54 = vpack.c.bf16 %v128_v49, %v119_v48  ;;  %v4880_v56 = vld [vmem:[#allocation4 + $0x160] ss:$16 sps:$4 sm:$0xff]   ;;  %v161_v48 = vld [vmem:[#allocation2 + $0x168] sm:$0xff] }
  0x73   :  { %1904 = vmatpush1.bf16.msra.mxu0 %v4844_v26  ;;  %v4878_v55 = vld [vmem:[#allocation4 + $0x364] ss:$16 sps:$4 sm:$0xff]   ;;  %v4881_v57 = vld [vmem:[#allocation4 + $0x360] ss:$16 sps:$4 sm:$0xff]   ;;  %v155_v49 = vld [vmem:[#allocation2 + $0x138] sm:$0xff] }
  0x74   :  { %1977 = vmatpush1.bf16.msra.mxu1 %v4845_v27  ;;  %1905 = vmatprep.subr.bf16.mxu0 %v4846_v28  ;;  %v4882_v58 = vld [vmem:[#allocation4 + $0x144] ss:$16 sps:$4 sm:$0xff]   ;;  %v4886_v60 = vld [vmem:[#allocation4 + $0x140] ss:$16 sps:$4 sm:$0xff]   ;;  %v143_v28 = vld [vmem:[#allocation2 + $0xd8] sm:$0xff] }
  0x75   :  { %1978 = vmatprep.subr.bf16.mxu1 %v4848_v29  ;;  %1923 = vmatprep.mubr.bf16.mxu0 %v5659_v53  ;;  %v4884_v59 = vld [vmem:[#allocation4 + $0x344] ss:$16 sps:$4 sm:$0xff]   ;;  %v4887_v61 = vld [vmem:[#allocation4 + $0x340] ss:$16 sps:$4 sm:$0xff]   ;;  %v137_v29 = vld [vmem:[#allocation2 + $0xa8] sm:$0xff] }
  0x76   :  { %1996 = vmatprep.mubr.bf16.mxu1 %v5661_v54  ;;  %v4888_v62 = vld [vmem:[#allocation4 + $0x124] ss:$16 sps:$4 sm:$0xff]   ;;  %v4892_v0 = vld [vmem:[#allocation4 + $0x120] ss:$16 sps:$4 sm:$0xff]  }
  0x77   :  { %1906 = vmatpush1.bf16.msra.mxu0 %v4850_v30  ;;  %v4890_v63 = vld [vmem:[#allocation4 + $0x324] ss:$16 sps:$4 sm:$0xff]   ;;  %v4893_v1 = vld [vmem:[#allocation4 + $0x320] ss:$16 sps:$4 sm:$0xff]  }
  0x78   :  { %1979 = vmatpush1.bf16.msra.mxu1 %v4851_v31  ;;  %1907 = vmatprep.subr.bf16.mxu0 %v4852_v32  ;;  %v4894_v2 = vld [vmem:[#allocation4 + $0x104] ss:$16 sps:$4 sm:$0xff]   ;;  %v4898_v4 = vld [vmem:[#allocation4 + $0x100] ss:$16 sps:$4 sm:$0xff]  }
  0x79   :  { %1980 = vmatprep.subr.bf16.mxu1 %v4854_v33  ;;  %v4896_v3 = vld [vmem:[#allocation4 + $0x304] ss:$16 sps:$4 sm:$0xff]   ;;  %v4899_v5 = vld [vmem:[#allocation4 + $0x300] ss:$16 sps:$4 sm:$0xff]   ;;  %v145_v33 = vld [vmem:[#allocation2 + $0xe8] sm:$0xff] }
  0x7a   :  { %v116_v6 = vld [vmem:[#allocation2] sm:$0xff]  ;;  %v118_v8 = vld [vmem:[#allocation2 + $0x10] sm:$0xff] }
  0x7b   :  { %1908 = vmatpush2.bf16.msra.mxu0 %v4856_v34  ;;  %v4902_v10 = vld [vmem:[#allocation4 + $0x4e4] ss:$16 sps:$4 sm:$0xff]   ;;  %v5665_v12 = vpack.c.bf16 %v125_v7, %v116_v6  ;;  %v5667_v13 = vpack.c.bf16 %v127_v9, %v118_v8  ;;  %v4900_v14 = vld [vmem:[#allocation4 + $0x4e0] ss:$16 sps:$4 sm:$0xff]   ;;  %v179_v6 = vld [vmem:[#allocation2 + $0x1f8] sm:$0xff] }
  0x7c   :  { %1981 = vmatpush2.bf16.msra.mxu1 %v4857_v35  ;;  %1909 = vmatprep.subr.bf16.mxu0 %v4858_v36  ;;  %v4905_v11 = vld [vmem:[#allocation4 + $0x6e4] ss:$16 sps:$4 sm:$0xff]   ;;  %v4903_v15 = vld [vmem:[#allocation4 + $0x6e0] ss:$16 sps:$4 sm:$0xff]   ;;  %v173_v7 = vld [vmem:[#allocation2 + $0x1c8] sm:$0xff] }
  0x7d   :  { %1982 = vmatprep.subr.bf16.mxu1 %v4860_v37  ;;  %v4908_v16 = vld [vmem:[#allocation4 + $0x4c4] ss:$16 sps:$4 sm:$0xff]   ;;  %v4906_v18 = vld [vmem:[#allocation4 + $0x4c0] ss:$16 sps:$4 sm:$0xff]  }
  0x7e   :  { %v4911_v17 = vld [vmem:[#allocation4 + $0x6c4] ss:$16 sps:$4 sm:$0xff]   ;;  %v4909_v19 = vld [vmem:[#allocation4 + $0x6c0] ss:$16 sps:$4 sm:$0xff]  }
  0x7f   :  { %1910 = vmatpush2.bf16.msra.mxu0 %v4862_v38  ;;  %v4914_v20 = vld [vmem:[#allocation4 + $0x4a4] ss:$16 sps:$4 sm:$0xff]   ;;  %v4912_v24 = vld [vmem:[#allocation4 + $0x4a0] ss:$16 sps:$4 sm:$0xff]  }
  0x80   :  { %1983 = vmatpush2.bf16.msra.mxu1 %v4863_v39  ;;  %1911 = vmatprep.subr.bf16.mxu0 %v4864_v40  ;;  %v4917_v21 = vld [vmem:[#allocation4 + $0x6a4] ss:$16 sps:$4 sm:$0xff]   ;;  %v4915_v25 = vld [vmem:[#allocation4 + $0x6a0] ss:$16 sps:$4 sm:$0xff]  }
  0x81   :  { %1984 = vmatprep.subr.bf16.mxu1 %v4866_v41  ;;  %v144_v23 = vld [vmem:[#allocation2 + $0xe0] sm:$0xff]  ;;  %v134_v27 = vld [vmem:[#allocation2 + $0x90] sm:$0xff] }
  0x82   :  { %v5671_v26 = vpack.c.bf16 %v144_v23, %v135_v22  ;;  %v5673_v30 = vpack.c.bf16 %v143_v28, %v134_v27  ;;  %v146_v31 = vld [vmem:[#allocation2 + $0xf0] sm:$0xff]  ;;  %v136_v32 = vld [vmem:[#allocation2 + $0xa0] sm:$0xff]  ;;  %v123_v27 = vld [vmem:[#allocation2 + $0x38] sm:$0xff] }
  0x83   :  { %1912 = vmatpush2.bf16.msra.mxu0 %v4868_v42  ;;  %v4920_v34 = vld [vmem:[#allocation4 + $0x484] ss:$16 sps:$4 sm:$0xff]   ;;  %v5675_v35 = vpack.c.bf16 %v146_v31, %v137_v29  ;;  %v5677_v36 = vpack.c.bf16 %v145_v33, %v136_v32  ;;  %v4918_v38 = vld [vmem:[#allocation4 + $0x480] ss:$16 sps:$4 sm:$0xff]   ;;  %v153_v42 = vld [vmem:[#allocation2 + $0x128] sm:$0xff] }
  0x84   :  { %1985 = vmatpush2.bf16.msra.mxu1 %v4869_v43  ;;  %1913 = vmatprep.subr.bf16.mxu0 %v4870_v44  ;;  %v4923_v37 = vld [vmem:[#allocation4 + $0x684] ss:$16 sps:$4 sm:$0xff]   ;;  %v4921_v39 = vld [vmem:[#allocation4 + $0x680] ss:$16 sps:$4 sm:$0xff]  }
  0x85   :  { %1986 = vmatprep.subr.bf16.mxu1 %v4872_v45  ;;  %v4926_v40 = vld [vmem:[#allocation4 + $0x464] ss:$16 sps:$4 sm:$0xff]   ;;  %v4924_v44 = vld [vmem:[#allocation4 + $0x460] ss:$16 sps:$4 sm:$0xff]  }
  0x86   :  { %v4929_v41 = vld [vmem:[#allocation4 + $0x664] ss:$16 sps:$4 sm:$0xff]   ;;  %v4927_v45 = vld [vmem:[#allocation4 + $0x660] ss:$16 sps:$4 sm:$0xff]  }
  0x87   :  { %1914 = vmatpush2.bf16.msra.mxu0 %v4874_v50  ;;  %v162_v43 = vld [vmem:[#allocation2 + $0x170] sm:$0xff]  ;;  %v152_v47 = vld [vmem:[#allocation2 + $0x120] sm:$0xff] }
  0x88   :  { %1987 = vmatpush2.bf16.msra.mxu1 %v4875_v51  ;;  %1915 = vmatprep.subr.bf16.mxu0 %v4876_v52  ;;  %v5683_v46 = vpack.c.bf16 %v162_v43, %v153_v42  ;;  %v5685_v50 = vpack.c.bf16 %v161_v48, %v152_v47  ;;  %v164_v51 = vld [vmem:[#allocation2 + $0x180] sm:$0xff]  ;;  %v154_v52 = vld [vmem:[#allocation2 + $0x130] sm:$0xff] }
  0x89   :  { %1988 = vmatprep.subr.bf16.mxu1 %v4878_v55  ;;  %v163_v55 = vld [vmem:[#allocation2 + $0x178] sm:$0xff]  ;;  %v182_v9 = vld [vmem:[#allocation2 + $0x210] sm:$0xff]  ;;  %v132_v32 = vld [vmem:[#allocation2 + $0x80] sm:$0xff] }
  0x8a   :  { %v4948_v22 = vld [vmem:[#allocation4 + $0x5e0] ss:$16 sps:$4 sm:$0xff]   ;;  %v4956_v28 = vld [vmem:[#allocation4 + $0x5c4] ss:$16 sps:$4 sm:$0xff]   ;;  %v5709_v33 = vpack.c.bf16 %v132_v32, %v123_v27  ;;  %v5002_v27 = vld [vmem:[#allocation4 + $0xc8] ss:$16 sps:$4 sm:$0xff]  }
  0x8b   :  { %1916 = vmatpush2.bf16.msra.mxu0 %v4880_v56  ;;  %v4932_v56 = vld [vmem:[#allocation4 + $0x444] ss:$16 sps:$4 sm:$0xff]   ;;  %v4951_v23 = vld [vmem:[#allocation4 + $0x7e0] ss:$16 sps:$4 sm:$0xff]  }
  0x8c   :  { %1989 = vmatpush2.bf16.msra.mxu1 %v4881_v57  ;;  %1917 = vmatprep.subr.bf16.mxu0 %v4882_v58  ;;  %v5687_v57 = vpack.c.bf16 %v164_v51, %v155_v49  ;;  %v5689_v58 = vpack.c.bf16 %v163_v55, %v154_v52  ;;  %v4959_v29 = vld [vmem:[#allocation4 + $0x7c4] ss:$16 sps:$4 sm:$0xff]   ;;  %v4972_v49 = vld [vmem:[#allocation4 + $0x560] ss:$16 sps:$4 sm:$0xff]  }
  0x8d   :  { %1990 = vmatprep.subr.bf16.mxu1 %v4884_v59  ;;  %v4935_v59 = vld [vmem:[#allocation4 + $0x644] ss:$16 sps:$4 sm:$0xff]   ;;  %v4975_v51 = vld [vmem:[#allocation4 + $0x760] ss:$16 sps:$4 sm:$0xff]  }
  0x8e   :  { %v4968_v42 = vld [vmem:[#allocation4 + $0x584] ss:$16 sps:$4 sm:$0xff]   ;;  %v5005_v32 = vld [vmem:[#allocation4 + $0x840] ss:$16 sps:$4 sm:$0xff]  }
  0x8f   :  { %1918 = vmatpush2.bf16.msra.mxu0 %v4886_v60  ;;  %v4930_v60 = vld [vmem:[#allocation4 + $0x440] ss:$16 sps:$4 sm:$0xff]   ;;  %v4971_v43 = vld [vmem:[#allocation4 + $0x784] ss:$16 sps:$4 sm:$0xff]  }
  0x90   :  { %1991 = vmatpush2.bf16.msra.mxu1 %v4887_v61  ;;  %1919 = vmatprep.subr.bf16.mxu0 %v4888_v62  ;;  %v4933_v61 = vld [vmem:[#allocation4 + $0x640] ss:$16 sps:$4 sm:$0xff]   ;;  %v4938_v62 = vld [vmem:[#allocation4 + $0x424] ss:$16 sps:$4 sm:$0xff]  }
  0x91   :  { %1992 = vmatprep.subr.bf16.mxu1 %v4890_v63  ;;  %v4941_v63 = vld [vmem:[#allocation4 + $0x624] ss:$16 sps:$4 sm:$0xff]  }
  0x92   :  { %v4974_v47 = vld [vmem:[#allocation4 + $0x564] ss:$16 sps:$4 sm:$0xff]  }
  0x93   :  { %1920 = vmatpush2.bf16.msra.mxu0 %v4892_v0  ;;  %v171_v0 = vld [vmem:[#allocation2 + $0x1b8] sm:$0xff]  ;;  %v4977_v48 = vld [vmem:[#allocation4 + $0x764] ss:$16 sps:$4 sm:$0xff]  }
  0x94   :  { %1993 = vmatpush2.bf16.msra.mxu1 %v4893_v1  ;;  %1921 = vmatprep.subr.bf16.mxu0 %v4894_v2  ;;  %v180_v1 = vld [vmem:[#allocation2 + $0x200] sm:$0xff] }
  0x95   :  { %1994 = vmatprep.subr.bf16.mxu1 %v4896_v3  ;;  %v4936_v2 = vld [vmem:[#allocation4 + $0x420] ss:$16 sps:$4 sm:$0xff]   ;;  %v4980_v52 = vld [vmem:[#allocation4 + $0x544] ss:$16 sps:$4 sm:$0xff]  }
  0x96   :  { %v4939_v3 = vld [vmem:[#allocation4 + $0x620] ss:$16 sps:$4 sm:$0xff]   ;;  %v4983_v55 = vld [vmem:[#allocation4 + $0x744] ss:$16 sps:$4 sm:$0xff]  }
  0x97   :  { %1922 = vmatpush2.bf16.msra.mxu0 %v4898_v4  ;;  %v5695_v4 = vpack.c.bf16 %v180_v1, %v171_v0  ;;  %v4992_v0 = vld [vmem:[#allocation4 + $0x504] ss:$16 sps:$4 sm:$0xff]  }
  0x98   :  { %1995 = vmatpush2.bf16.msra.mxu1 %v4899_v5  ;;  %2037 = vmatprep.subr.bf16.mxu0 %v4902_v10  ;;  %v170_v5 = vld [vmem:[#allocation2 + $0x1b0] sm:$0xff]  ;;  %v172_v10 = vld [vmem:[#allocation2 + $0x1c0] sm:$0xff] }
  0x99   :  { %2110 = vmatprep.subr.bf16.mxu1 %v4905_v11  ;;  %v5697_v8 = vpack.c.bf16 %v179_v6, %v170_v5  ;;  %v181_v11 = vld [vmem:[#allocation2 + $0x208] sm:$0xff]  ;;  %v4995_v1 = vld [vmem:[#allocation4 + $0x704] ss:$16 sps:$4 sm:$0xff]  }
  0x9a   :  { %1924 = vmatmul.mubr.bf16.vlgmr.msra.gmra.mxu0 %v5665_v12  ;;  %v120_v5 = vld [vmem:[#allocation2 + $0x20] sm:$0xff]  ;;  %v129_v6 = vld [vmem:[#allocation2 + $0x68] sm:$0xff] }
  0x9b   :  { %1997 = vmatmul.mubr.bf16.vlgmr.msra.gmra.mxu1 %v5667_v13  ;;  %2038 = vmatpush1.bf16.msra.mxu0 %v4900_v14  ;;  %v4944_v14 = vld [vmem:[#allocation4 + $0x404] ss:$16 sps:$4 sm:$0xff]  }
  0x9c   :  { %2111 = vmatpush1.bf16.msra.mxu1 %v4903_v15  ;;  %2039 = vmatprep.subr.bf16.mxu0 %v4908_v16  ;;  %v5699_v15 = vpack.c.bf16 %v182_v9, %v173_v7  ;;  %v5701_v16 = vpack.c.bf16 %v181_v11, %v172_v10  ;;  %v122_v7 = vld [vmem:[#allocation2 + $0x30] sm:$0xff]  ;;  %v131_v9 = vld [vmem:[#allocation2 + $0x78] sm:$0xff] }
  0x9d   :  { %2112 = vmatprep.subr.bf16.mxu1 %v4911_v17  ;;  %1933 = vmatprep.mubr.bf16.mxu0 %v5671_v26  ;;  %v4947_v17 = vld [vmem:[#allocation4 + $0x604] ss:$16 sps:$4 sm:$0xff]   ;;  %v5001_v11 = vld [vmem:[#allocation4 + $0xec] ss:$16 sps:$4 sm:$0xff]  }
  0x9e   :  { %2006 = vmatprep.mubr.bf16.mxu1 %v5675_v35  ;;  %v4998_v10 = vld [vmem:[#allocation4 + $0x864] ss:$16 sps:$4 sm:$0xff]  }
  0x9f   :  { %2040 = vmatpush1.bf16.msra.mxu0 %v4906_v18  ;;  %v4942_v18 = vld [vmem:[#allocation4 + $0x400] ss:$16 sps:$4 sm:$0xff]  }
  0xa0   :  { %2113 = vmatpush1.bf16.msra.mxu1 %v4909_v19  ;;  %2041 = vmatprep.subr.bf16.mxu0 %v4914_v20  ;;  %v4945_v19 = vld [vmem:[#allocation4 + $0x600] ss:$16 sps:$4 sm:$0xff]   ;;  %v4950_v20 = vld [vmem:[#allocation4 + $0x5e4] ss:$16 sps:$4 sm:$0xff]  }
  0xa1   :  { %2114 = vmatprep.subr.bf16.mxu1 %v4917_v21  ;;  %v4953_v21 = vld [vmem:[#allocation4 + $0x7e4] ss:$16 sps:$4 sm:$0xff]  }
  0xa2   :  { %1934 = vmatmul.mubr.bf16.gmra.mxu0 %v5673_v30 }
  0xa3   :  { %2007 = vmatmul.mubr.bf16.gmra.mxu1 %v5677_v36  ;;  %2042 = vmatpush1.bf16.msra.mxu0 %v4912_v24  ;;  %v121_v24 = vld [vmem:[#allocation2 + $0x28] sm:$0xff] }
  0xa4   :  { %2115 = vmatpush1.bf16.msra.mxu1 %v4915_v25  ;;  %2043 = vmatprep.subr.bf16.mxu0 %v4920_v34  ;;  %v130_v25 = vld [vmem:[#allocation2 + $0x70] sm:$0xff] }
  0xa5   :  { %2116 = vmatprep.subr.bf16.mxu1 %v4923_v37  ;;  %1943 = vmatprep.mubr.bf16.mxu0 %v5683_v46  ;;  %v5707_v31 = vpack.c.bf16 %v130_v25, %v121_v24  ;;  %v4954_v34 = vld [vmem:[#allocation4 + $0x5c0] ss:$16 sps:$4 sm:$0xff]   ;;  %v5004_v24 = vld [vmem:[#allocation4 + $0xcc] ss:$16 sps:$4 sm:$0xff]  }
  0xa6   :  { %2016 = vmatprep.mubr.bf16.mxu1 %v5687_v57  ;;  %v4957_v37 = vld [vmem:[#allocation4 + $0x7c0] ss:$16 sps:$4 sm:$0xff]  }
  0xa7   :  { %2044 = vmatpush1.bf16.msra.mxu0 %v4918_v38  ;;  %v4962_v38 = vld [vmem:[#allocation4 + $0x5a4] ss:$16 sps:$4 sm:$0xff]  }
  0xa8   :  { %2117 = vmatpush1.bf16.msra.mxu1 %v4921_v39  ;;  %2045 = vmatprep.subr.bf16.mxu0 %v4926_v40  ;;  %v4965_v39 = vld [vmem:[#allocation4 + $0x7a4] ss:$16 sps:$4 sm:$0xff]   ;;  %v4960_v40 = vld [vmem:[#allocation4 + $0x5a0] ss:$16 sps:$4 sm:$0xff]  }
  0xa9   :  { %2118 = vmatprep.subr.bf16.mxu1 %v4929_v41  ;;  %v4963_v41 = vld [vmem:[#allocation4 + $0x7a0] ss:$16 sps:$4 sm:$0xff]  }
  0xaa   :  { %1944 = vmatmul.mubr.bf16.gmra.mxu0 %v5685_v50 }
  0xab   :  { %2017 = vmatmul.mubr.bf16.gmra.mxu1 %v5689_v58  ;;  %2046 = vmatpush1.bf16.msra.mxu0 %v4924_v44  ;;  %v4966_v44 = vld [vmem:[#allocation4 + $0x580] ss:$16 sps:$4 sm:$0xff]  }
  0xac   :  { %2119 = vmatpush1.bf16.msra.mxu1 %v4927_v45  ;;  %2047 = vmatprep.subr.bf16.mxu0 %v4932_v56  ;;  %v4969_v45 = vld [vmem:[#allocation4 + $0x780] ss:$16 sps:$4 sm:$0xff]  }
  0xad   :  { %2120 = vmatprep.subr.bf16.mxu1 %v4935_v59  ;;  %1953 = vmatprep.mubr.bf16.mxu0 %v5695_v4  ;;  %v4978_v56 = vld [vmem:[#allocation4 + $0x540] ss:$16 sps:$4 sm:$0xff]  }
  0xae   :  { %2026 = vmatprep.mubr.bf16.mxu1 %v5699_v15  ;;  %v4981_v59 = vld [vmem:[#allocation4 + $0x740] ss:$16 sps:$4 sm:$0xff]  }
  0xaf   :  { %2048 = vmatpush1.bf16.msra.mxu0 %v4930_v60  ;;  %v4986_v60 = vld [vmem:[#allocation4 + $0x524] ss:$16 sps:$4 sm:$0xff]  }
  0xb0   :  { %2121 = vmatpush1.bf16.msra.mxu1 %v4933_v61  ;;  %2049 = vmatprep.subr.bf16.mxu0 %v4938_v62  ;;  %v4989_v61 = vld [vmem:[#allocation4 + $0x724] ss:$16 sps:$4 sm:$0xff]   ;;  %v4984_v62 = vld [vmem:[#allocation4 + $0x520] ss:$16 sps:$4 sm:$0xff]  }
  0xb1   :  { %2122 = vmatprep.subr.bf16.mxu1 %v4941_v63  ;;  %v4987_v63 = vld [vmem:[#allocation4 + $0x720] ss:$16 sps:$4 sm:$0xff]  }
  0xb2   :  { %1954 = vmatmul.mubr.bf16.gmra.mxu0 %v5697_v8 }
  0xb3   :  { %2027 = vmatmul.mubr.bf16.gmra.mxu1 %v5701_v16  ;;  %2050 = vmatpush1.bf16.msra.mxu0 %v4936_v2  ;;  %v4990_v2 = vld [vmem:[#allocation4 + $0x500] ss:$16 sps:$4 sm:$0xff]  }
  0xb4   :  { %2123 = vmatpush1.bf16.msra.mxu1 %v4939_v3  ;;  %2051 = vmatprep.subr.bf16.mxu0 %v4944_v14  ;;  %v4993_v3 = vld [vmem:[#allocation4 + $0x700] ss:$16 sps:$4 sm:$0xff]   ;;  %v139_v14 = vld [vmem:[#allocation2 + $0xb8] sm:$0xff] }
  0xb5   :  { %2124 = vmatprep.subr.bf16.mxu1 %v4947_v17  ;;  %2069 = vmatprep.mubr.bf16.mxu0 %v5707_v31  ;;  %v148_v17 = vld [vmem:[#allocation2 + $0x100] sm:$0xff] }
  0xb6   :  { %2142 = vmatprep.mubr.bf16.mxu1 %v5709_v33  ;;  %v5717_v25 = vpack.c.bf16 %v148_v17, %v139_v14  ;;  %v5022_v17 = vld [vmem:[#allocation4 + $0x4c] ss:$16 sps:$4 sm:$0xff]  }
  0xb7   :  { %2052 = vmatpush1.bf16.msra.mxu0 %v4942_v18  ;;  %v141_v18 = vld [vmem:[#allocation2 + $0xc8] sm:$0xff] }
  0xb8   :  { %2125 = vmatpush1.bf16.msra.mxu1 %v4945_v19  ;;  %2053 = vmatprep.subr.bf16.mxu0 %v4950_v20  ;;  %v5713_v19 = vpack.c.bf16 %v129_v6, %v120_v5  ;;  %v5715_v20 = vpack.c.bf16 %v131_v9, %v122_v7  ;;  %v5023_v5 = vld [vmem:[#allocation4 + $0x800] ss:$16 sps:$4 sm:$0xff]   ;;  %v177_v6 = vld [vmem:[#allocation2 + $0x1e8] sm:$0xff] }
  0xb9   :  { %2126 = vmatprep.subr.bf16.mxu1 %v4953_v21  ;;  %v150_v21 = vld [vmem:[#allocation2 + $0x110] sm:$0xff] }
  0xba   :  { %v186_v7 = vld [vmem:[#allocation2 + $0x230] sm:$0xff] }
  0xbb   :  { %2054 = vmatpush2.bf16.msra.mxu0 %v4948_v22  ;;  %v4996_v22 = vld [vmem:[#allocation4 + $0x860] ss:$16 sps:$4 sm:$0xff]  }
  0xbc   :  { %2127 = vmatpush2.bf16.msra.mxu1 %v4951_v23  ;;  %2055 = vmatprep.subr.bf16.mxu0 %v4956_v28  ;;  %v4999_v23 = vld [vmem:[#allocation4 + $0xe8] ss:$16 sps:$4 sm:$0xff]   ;;  %v138_v28 = vld [vmem:[#allocation2 + $0xb0] sm:$0xff] }
  0xbd   :  { %2128 = vmatprep.subr.bf16.mxu1 %v4959_v29  ;;  %v147_v29 = vld [vmem:[#allocation2 + $0xf8] sm:$0xff] }
  0xbf   :  { %2056 = vmatpush2.bf16.msra.mxu0 %v4954_v34  ;;  %v5007_v34 = vld [vmem:[#allocation4 + $0x844] ss:$16 sps:$4 sm:$0xff]  }
  0xc0   :  { %2129 = vmatpush2.bf16.msra.mxu1 %v4957_v37  ;;  %2057 = vmatprep.subr.bf16.mxu0 %v4962_v38  ;;  %v5719_v37 = vpack.c.bf16 %v150_v21, %v141_v18  ;;  %v140_v38 = vld [vmem:[#allocation2 + $0xc0] sm:$0xff]  ;;  %v5743_v18 = vpack.c.bf16 %v186_v7, %v177_v6  ;;  %v5020_v21 = vld [vmem:[#allocation4 + $0x48] ss:$16 sps:$4 sm:$0xff]   ;;  %v5055_v6 = vld [vmem:[#allocation4 + $0x18c] ss:$16 sps:$4 sm:$0xff]  }
  0xc1   :  { %2130 = vmatprep.subr.bf16.mxu1 %v4965_v39  ;;  %v5010_v39 = vld [vmem:[#allocation4 + $0xac] ss:$16 sps:$4 sm:$0xff]   ;;  %v5050_v7 = vld [vmem:[#allocation4 + $0x288] ss:$16 sps:$4 sm:$0xff]  }
  0xc3   :  { %2058 = vmatpush2.bf16.msra.mxu0 %v4960_v40  ;;  %v149_v40 = vld [vmem:[#allocation2 + $0x108] sm:$0xff] }
  0xc4   :  { %2131 = vmatpush2.bf16.msra.mxu1 %v4963_v41  ;;  %2059 = vmatprep.subr.bf16.mxu0 %v4968_v42  ;;  %v157_v41 = vld [vmem:[#allocation2 + $0x148] sm:$0xff]  ;;  %v166_v42 = vld [vmem:[#allocation2 + $0x190] sm:$0xff] }
  0xc5   :  { %2132 = vmatprep.subr.bf16.mxu1 %v4971_v43  ;;  %v5016_v43 = vld [vmem:[#allocation4 + $0x824] ss:$16 sps:$4 sm:$0xff]  }
  0xc7   :  { %2060 = vmatpush2.bf16.msra.mxu0 %v4966_v44  ;;  %v159_v44 = vld [vmem:[#allocation2 + $0x158] sm:$0xff] }
  0xc8   :  { %2133 = vmatpush2.bf16.msra.mxu1 %v4969_v45  ;;  %2061 = vmatprep.subr.bf16.mxu0 %v4974_v47  ;;  %v168_v45 = vld [vmem:[#allocation2 + $0x1a0] sm:$0xff]  ;;  %v5725_v47 = vpack.c.bf16 %v147_v29, %v138_v28  ;;  %v185_v28 = vld [vmem:[#allocation2 + $0x228] sm:$0xff] }
  0xc9   :  { %2134 = vmatprep.subr.bf16.mxu1 %v4977_v48  ;;  %v5727_v48 = vpack.c.bf16 %v149_v40, %v140_v38  ;;  %v5028_v29 = vld [vmem:[#allocation4 + $0x2c] ss:$16 sps:$4 sm:$0xff]   ;;  %v5026_v38 = vld [vmem:[#allocation4 + $0x28] ss:$16 sps:$4 sm:$0xff]  }
  0xca   :  { %v5029_v40 = vld [vmem:[#allocation4 + $0x8] ss:$16 sps:$4 sm:$0xff]  }
  0xcb   :  { %2062 = vmatpush2.bf16.msra.mxu0 %v4972_v49  ;;  %v5008_v49 = vld [vmem:[#allocation4 + $0xa8] ss:$16 sps:$4 sm:$0xff]  }
  0xcc   :  { %2135 = vmatpush2.bf16.msra.mxu1 %v4975_v51  ;;  %2063 = vmatprep.subr.bf16.mxu0 %v4980_v52  ;;  %v5729_v51 = vpack.c.bf16 %v166_v42, %v157_v41  ;;  %v5013_v52 = vld [vmem:[#allocation4 + $0x8c] ss:$16 sps:$4 sm:$0xff]   ;;  %v124_v41 = vld [vmem:[#allocation2 + $0x40] sm:$0xff]  ;;  %v5597_v42 = vmov 0  }
  0xcd   :  { %2136 = vmatprep.subr.bf16.mxu1 %v4983_v55  ;;  %v5014_v55 = vld [vmem:[#allocation4 + $0x820] ss:$16 sps:$4 sm:$0xff]  }
  0xcf   :  { %2064 = vmatpush2.bf16.msra.mxu0 %v4978_v56  ;;  %v5731_v56 = vpack.c.bf16 %v168_v45, %v159_v44  ;;  %v5037_v44 = vld [vmem:[#allocation4 + $0x1ec] ss:$16 sps:$4 sm:$0xff]   ;;  %v5032_v45 = vld [vmem:[#allocation4 + $0x2e8] ss:$16 sps:$4 sm:$0xff]  }
  0xd0   :  { %2137 = vmatpush2.bf16.msra.mxu1 %v4981_v59  ;;  %2065 = vmatprep.subr.bf16.mxu0 %v4986_v60  ;;  %v5011_v59 = vld [vmem:[#allocation4 + $0x88] ss:$16 sps:$4 sm:$0xff]   ;;  %v156_v60 = vld [vmem:[#allocation2 + $0x140] sm:$0xff] }
  0xd1   :  { %2138 = vmatprep.subr.bf16.mxu1 %v4989_v61  ;;  %v165_v61 = vld [vmem:[#allocation2 + $0x188] sm:$0xff] }
  0xd2   :  { %v5737_v9 = vpack.c.bf16 %v165_v61, %v156_v60  ;;  %v5038_v60 = vld [vmem:[#allocation4 + $0x2c8] ss:$16 sps:$4 sm:$0xff]  }
  0xd3   :  { %2066 = vmatpush2.bf16.msra.mxu0 %v4984_v62  ;;  %v158_v62 = vld [vmem:[#allocation2 + $0x150] sm:$0xff]  ;;  %v5041_v61 = vld [vmem:[#allocation4 + $0x1c8] ss:$16 sps:$4 sm:$0xff]  }
  0xd4   :  { %2139 = vmatpush2.bf16.msra.mxu1 %v4987_v63  ;;  %2067 = vmatprep.subr.bf16.mxu0 %v4992_v0  ;;  %v5019_v63 = vld [vmem:[#allocation4 + $0x6c] ss:$16 sps:$4 sm:$0xff]   ;;  %v5025_v0 = vld [vmem:[#allocation4 + $0x804] ss:$16 sps:$4 sm:$0xff]  }
  0xd5   :  { %2140 = vmatprep.subr.bf16.mxu1 %v4995_v1  ;;  %v167_v1 = vld [vmem:[#allocation2 + $0x198] sm:$0xff] }
  0xd7   :  { %2068 = vmatpush2.bf16.msra.mxu0 %v4990_v2  ;;  %v175_v2 = vld [vmem:[#allocation2 + $0x1d8] sm:$0xff] }
  0xd8   :  { %2141 = vmatpush2.bf16.msra.mxu1 %v4993_v3  ;;  %2191 = vmatprep.subr.bf16.mxu0 %v4998_v10  ;;  %v184_v3 = vld [vmem:[#allocation2 + $0x220] sm:$0xff]  ;;  %v5739_v10 = vpack.c.bf16 %v167_v1, %v158_v62  ;;  %v5046_v62 = vld [vmem:[#allocation4 + $0x2ac] ss:$16 sps:$4 sm:$0xff]   ;;  %v5044_v1 = vld [vmem:[#allocation4 + $0x2a8] ss:$16 sps:$4 sm:$0xff]  }
  0xd9   :  { %2256 = vmatprep.subr.bf16.mxu1 %v5001_v11  ;;  %v5017_v11 = vld [vmem:[#allocation4 + $0x68] ss:$16 sps:$4 sm:$0xff]   ;;  %v5741_v14 = vpack.c.bf16 %v184_v3, %v175_v2 }
  0xda   :  { %2070 = vmatmul.mubr.bf16.vlgmr.msra.gmra.mxu0 %v5713_v19  ;;  %v5047_v3 = vld [vmem:[#allocation4 + $0x1a8] ss:$16 sps:$4 sm:$0xff]  }
  0xdb   :  { %2143 = vmatmul.mubr.bf16.vlgmr.msra.gmra.mxu1 %v5715_v20  ;;  %2192 = vmatpush1.bf16.msra.mxu0 %v4996_v22  ;;  %v174_v22 = vld [vmem:[#allocation2 + $0x1d0] sm:$0xff] }
  0xdc   :  { %2257 = vmatpush1.bf16.msra.mxu1 %v4999_v23  ;;  %2079 = vmatprep.mubr.bf16.mxu0 %v5717_v25  ;;  %v5034_v23 = vld [vmem:[#allocation4 + $0x2ec] ss:$16 sps:$4 sm:$0xff]  }
  0xdd   :  { %2258 = vmatprep.subr.bf16.mxu1 %v5004_v24  ;;  %2193 = vmatprep.subr.bf16.mxu0 %v5007_v34  ;;  %v183_v24 = vld [vmem:[#allocation2 + $0x218] sm:$0xff] }
  0xde   :  { %2152 = vmatprep.mubr.bf16.mxu1 %v5719_v37 }
  0xdf   :  { %2194 = vmatpush1.bf16.msra.mxu0 %v5005_v32  ;;  %v5749_v32 = vpack.c.bf16 %v183_v24, %v174_v22  ;;  %v169_v22 = vld [vmem:[#allocation2 + $0x1a8] sm:$0xff] }
  0xe0   :  { %2259 = vmatpush1.bf16.msra.mxu1 %v5002_v27  ;;  %2195 = vmatprep.subr.bf16.mxu0 %v5016_v43  ;;  %v176_v27 = vld [vmem:[#allocation2 + $0x1e0] sm:$0xff]  ;;  %v133_v43 = vld [vmem:[#allocation2 + $0x88] sm:$0xff] }
  0xe1   :  { %2260 = vmatprep.subr.bf16.mxu1 %v5010_v39  ;;  %v5751_v34 = vpack.c.bf16 %v185_v28, %v176_v27  ;;  %v5031_v39 = vld [vmem:[#allocation4 + $0xc] ss:$16 sps:$4 sm:$0xff]   ;;  %v5056_v24 = vld [vmem:[#allocation4 + $0x268] ss:$16 sps:$4 sm:$0xff]  }
  0xe2   :  { %2080 = vmatmul.mubr.bf16.gmra.mxu0 %v5725_v47  ;;  %v5059_v28 = vld [vmem:[#allocation4 + $0x168] ss:$16 sps:$4 sm:$0xff]  }
  0xe3   :  { %2153 = vmatmul.mubr.bf16.gmra.mxu1 %v5727_v48  ;;  %2089 = vmatprep.mubr.bf16.mxu0 %v5729_v51 }
  0xe4   :  { %2261 = vmatpush1.bf16.msra.mxu1 %v5008_v49  ;;  %2162 = vmatprep.mubr.bf16.mxu1 %v5731_v56  ;;  %v5757_v49 = vpack.c.bf16 %v133_v43, %v124_v41  ;;  %v5070_v41 = vld [vmem:[#allocation4 + $0x22c] ss:$16 sps:$4 sm:$0xff]   ;;  %v178_v43 = vld [vmem:[#allocation2 + $0x1f0] sm:$0xff] }
  0xe5   :  { %2262 = vmatprep.subr.bf16.mxu1 %v5013_v52  ;;  %2196 = vmatpush1.bf16.msra.mxu0 %v5014_v55  ;;  %v5035_v52 = vld [vmem:[#allocation4 + $0x1e8] ss:$16 sps:$4 sm:$0xff]   ;;  %v5040_v55 = vld [vmem:[#allocation4 + $0x2cc] ss:$16 sps:$4 sm:$0xff]  }
  0xe6   :  { %2197 = vmatprep.subr.bf16.mxu0 %v5025_v0  ;;  %v151_v0 = vld [vmem:[#allocation2 + $0x118] sm:$0xff] }
  0xe8   :  { %2263 = vmatpush1.bf16.msra.mxu1 %v5011_v59  ;;  %v5043_v59 = vld [vmem:[#allocation4 + $0x1cc] ss:$16 sps:$4 sm:$0xff]  }
  0xe9   :  { %2264 = vmatprep.subr.bf16.mxu1 %v5019_v63  ;;  %2198 = vmatpush1.bf16.msra.mxu0 %v5023_v5  ;;  %v142_v63 = vld [vmem:[#allocation2 + $0xd0] sm:$0xff]  ;;  %v5052_v5 = vld [vmem:[#allocation4 + $0x28c] ss:$16 sps:$4 sm:$0xff]  }
  0xea   :  { %2090 = vmatmul.mubr.bf16.gmra.mxu0 %v5737_v9  ;;  %2329 = vmatprep.subr.bf16.mxu0 %v5034_v23  ;;  %v5762_v2 = vpack.c.bf16 %v151_v0, %v142_v63  ;;  %v5061_v23 = vld [vmem:[#allocation4 + $0x16c] ss:$16 sps:$4 sm:$0xff]   ;;  %v5077_v63 = vld [vmem:[#allocation4 + $0x108] ss:$16 sps:$4 sm:$0xff]  }
  0xeb   :  { %2163 = vmatmul.mubr.bf16.gmra.mxu1 %v5739_v10  ;;  %2099 = vmatprep.mubr.bf16.mxu0 %v5741_v14  ;;  %v5082_v0 = vld [vmem:[#allocation4 + $0x3ec] ss:$16 sps:$4 sm:$0xff]  }
  0xec   :  { %2265 = vmatpush1.bf16.msra.mxu1 %v5017_v11  ;;  %2172 = vmatprep.mubr.bf16.mxu1 %v5743_v18  ;;  %v5053_v11 = vld [vmem:[#allocation4 + $0x188] ss:$16 sps:$4 sm:$0xff]  }
  0xed   :  { %2266 = vmatprep.subr.bf16.mxu1 %v5022_v17  ;;  %v5058_v17 = vld [vmem:[#allocation4 + $0x26c] ss:$16 sps:$4 sm:$0xff]  }
  0xf0   :  { %2267 = vmatpush1.bf16.msra.mxu1 %v5020_v21  ;;  %v160_v21 = vld [vmem:[#allocation2 + $0x160] sm:$0xff] }
  0xf1   :  { %2268 = vmatprep.subr.bf16.mxu1 %v5028_v29  ;;  %v5767_v27 = vpack.c.bf16 %v169_v22, %v160_v21  ;;  %v5064_v29 = vld [vmem:[#allocation4 + $0x24c] ss:$16 sps:$4 sm:$0xff]   ;;  %v5095_v22 = vld [vmem:[#allocation4 + $0x4a8] ss:$16 sps:$4 sm:$0xff]  }
  0xf2   :  { %2100 = vmatmul.mubr.bf16.gmra.mxu0 %v5749_v32  ;;  %v5097_v21 = vld [vmem:[#allocation4 + $0x4ac] ss:$16 sps:$4 sm:$0xff]  }
  0xf3   :  { %2173 = vmatmul.mubr.bf16.gmra.mxu1 %v5751_v34  ;;  %2215 = vmatprep.mubr.bf16.mxu0 %v5597_v42 }
  0xf4   :  { %2269 = vmatpush1.bf16.msra.mxu1 %v5026_v38  ;;  %2288 = vmatprep.mubr.bf16.mxu1 %v5659_v53  ;;  %v5049_v53 = vld [vmem:[#allocation4 + $0x1ac] ss:$16 sps:$4 sm:$0xff]  }
  0xf5   :  { %2270 = vmatprep.subr.bf16.mxu1 %v5031_v39  ;;  %v5067_v38 = vld [vmem:[#allocation4 + $0x14c] ss:$16 sps:$4 sm:$0xff]   ;;  %v5062_v39 = vld [vmem:[#allocation4 + $0x248] ss:$16 sps:$4 sm:$0xff]  }
  0xf8   :  { %2271 = vmatpush1.bf16.msra.mxu1 %v5029_v40  ;;  %v5065_v40 = vld [vmem:[#allocation4 + $0x148] ss:$16 sps:$4 sm:$0xff]  }
  0xf9   :  { %2272 = vmatprep.subr.bf16.mxu1 %v5037_v44  ;;  %v187_v44 = vld [vmem:[#allocation2 + $0x238] sm:$0xff] }
  0xfa   :  { %4541 = vmatmul.mubr.msk.bf16.vlgmr.msra.gmra.mxu0 %vm1878_vm0, %v5757_v49 }
  0xfb   :  { %2330 = vmatpush1.bf16.msra.mxu0 %v5032_v45  ;;  %2225 = vmatprep.mubr.bf16.mxu0 %v5597_v42  ;;  %v5073_v45 = vld [vmem:[#allocation4 + $0x12c] ss:$16 sps:$4 sm:$0xff]  }
  0xfc   :  { %2273 = vmatpush2.bf16.msra.mxu1 %v5035_v52  ;;  %2331 = vmatprep.subr.bf16.mxu0 %v5040_v55  ;;  %v5068_v52 = vld [vmem:[#allocation4 + $0x228] ss:$16 sps:$4 sm:$0xff]   ;;  %v5772_v55 = vpack.c.bf16 %v187_v44, %v178_v43  ;;  %v5118_v44 = vld [vmem:[#allocation4 + $0x32c] ss:$16 sps:$4 sm:$0xff]  }
  0xfd   :  { %2274 = vmatprep.subr.bf16.mxu1 %v5043_v59  ;;  %v5071_v59 = vld [vmem:[#allocation4 + $0x128] ss:$16 sps:$4 sm:$0xff]  }
  0xfe   :  { %v5110_v43 = vld [vmem:[#allocation4 + $0x348] ss:$16 sps:$4 sm:$0xff]  }
  0xff   :  { %2332 = vmatpush1.bf16.msra.mxu0 %v5038_v60  ;;  %v5076_v60 = vld [vmem:[#allocation4 + $0x20c] ss:$16 sps:$4 sm:$0xff]  }
 0x100   :  { %2275 = vmatpush2.bf16.msra.mxu1 %v5041_v61  ;;  %2333 = vmatprep.subr.bf16.mxu0 %v5046_v62  ;;  %v5079_v61 = vld [vmem:[#allocation4 + $0x10c] ss:$16 sps:$4 sm:$0xff]   ;;  %v5074_v62 = vld [vmem:[#allocation4 + $0x208] ss:$16 sps:$4 sm:$0xff]  }
 0x101   :  { %2276 = vmatprep.subr.bf16.mxu1 %v5049_v53  ;;  %v5085_v53 = vld [vmem:[#allocation4 + $0x4ec] ss:$16 sps:$4 sm:$0xff]  }
 0x102   :  { %4542 = vmatmul.mubr.msk.bf16.gmra.mxu0 %vm1878_vm0, %v5762_v2 }
 0x103   :  { %2334 = vmatpush1.bf16.msra.mxu0 %v5044_v1  ;;  %2235 = vmatprep.mubr.bf16.mxu0 %v5597_v42  ;;  %v5080_v1 = vld [vmem:[#allocation4 + $0x3e8] ss:$16 sps:$4 sm:$0xff]  }
 0x104   :  { %2277 = vmatpush2.bf16.msra.mxu1 %v5047_v3  ;;  %2335 = vmatprep.subr.bf16.mxu0 %v5052_v5  ;;  %v5083_v3 = vld [vmem:[#allocation4 + $0x4e8] ss:$16 sps:$4 sm:$0xff]   ;;  %v5088_v5 = vld [vmem:[#allocation4 + $0x3cc] ss:$16 sps:$4 sm:$0xff]  }
 0x105   :  { %2278 = vmatprep.subr.bf16.mxu1 %v5055_v6  ;;  %v5091_v6 = vld [vmem:[#allocation4 + $0x4cc] ss:$16 sps:$4 sm:$0xff]  }
 0x107   :  { %2336 = vmatpush1.bf16.msra.mxu0 %v5050_v7  ;;  %v5086_v7 = vld [vmem:[#allocation4 + $0x3c8] ss:$16 sps:$4 sm:$0xff]  }
 0x108   :  { %2279 = vmatpush2.bf16.msra.mxu1 %v5053_v11  ;;  %2337 = vmatprep.subr.bf16.mxu0 %v5058_v17  ;;  %v5089_v11 = vld [vmem:[#allocation4 + $0x4c8] ss:$16 sps:$4 sm:$0xff]   ;;  %v5094_v17 = vld [vmem:[#allocation4 + $0x3ac] ss:$16 sps:$4 sm:$0xff]  }
 0x109   :  { %2280 = vmatprep.subr.bf16.mxu1 %v5061_v23  ;;  %v5100_v23 = vld [vmem:[#allocation4 + $0x38c] ss:$16 sps:$4 sm:$0xff]  }
 0x10a   :  { %4543 = vmatmul.mubr.msk.bf16.gmra.mxu0 %vm1878_vm0, %v5767_v27 }
 0x10b   :  { %2338 = vmatpush1.bf16.msra.mxu0 %v5056_v24  ;;  %2245 = vmatprep.mubr.bf16.mxu0 %v5597_v42  ;;  %v5103_v24 = vld [vmem:[#allocation4 + $0x48c] ss:$16 sps:$4 sm:$0xff]  }
 0x10c   :  { %2281 = vmatpush2.bf16.msra.mxu1 %v5059_v28  ;;  %2339 = vmatprep.subr.bf16.mxu0 %v5064_v29  ;;  %v5098_v28 = vld [vmem:[#allocation4 + $0x388] ss:$16 sps:$4 sm:$0xff]   ;;  %v5106_v29 = vld [vmem:[#allocation4 + $0x36c] ss:$16 sps:$4 sm:$0xff]  }
 0x10d   :  { %2282 = vmatprep.subr.bf16.mxu1 %v5067_v38  ;;  %v5109_v38 = vld [vmem:[#allocation4 + $0x46c] ss:$16 sps:$4 sm:$0xff]  }
 0x10f   :  { %2340 = vmatpush1.bf16.msra.mxu0 %v5062_v39  ;;  %v5107_v39 = vld [vmem:[#allocation4 + $0x468] ss:$16 sps:$4 sm:$0xff]  }
 0x110   :  { %2283 = vmatpush2.bf16.msra.mxu1 %v5065_v40  ;;  %2341 = vmatprep.subr.bf16.mxu0 %v5070_v41  ;;  %v5112_v40 = vld [vmem:[#allocation4 + $0x34c] ss:$16 sps:$4 sm:$0xff]  }
 0x111   :  { %2284 = vmatprep.subr.bf16.mxu1 %v5073_v45  ;;  %v5115_v41 = vld [vmem:[#allocation4 + $0x44c] ss:$16 sps:$4 sm:$0xff]  }
 0x112   :  { %4544 = vmatmul.mubr.msk.bf16.gmra.mxu0 %vm1878_vm0, %v5772_v55  ;;  %v5121_v45 = vld [vmem:[#allocation4 + $0x42c] ss:$16 sps:$4 sm:$0xff]  }
 0x113   :  { %2342 = vmatpush1.bf16.msra.mxu0 %v5068_v52  ;;  %2361 = vmatprep.mubr.bf16.mxu0 %v5661_v54  ;;  %v5092_v54 = vld [vmem:[#allocation4 + $0x3a8] ss:$16 sps:$4 sm:$0xff]  }
 0x114   :  { %2285 = vmatpush2.bf16.msra.mxu1 %v5071_v59  ;;  %2343 = vmatprep.subr.bf16.mxu0 %v5076_v60  ;;  %v5119_v52 = vld [vmem:[#allocation4 + $0x428] ss:$16 sps:$4 sm:$0xff]   ;;  %v5124_v59 = vld [vmem:[#allocation4 + $0x30c] ss:$16 sps:$4 sm:$0xff]  }
 0x115   :  { %2286 = vmatprep.subr.bf16.mxu1 %v5079_v61  ;;  %v5127_v60 = vld [vmem:[#allocation4 + $0x40c] ss:$16 sps:$4 sm:$0xff]   ;;  %v5122_v61 = vld [vmem:[#allocation4 + $0x308] ss:$16 sps:$4 sm:$0xff]  }
 0x117   :  { %2344 = vmatpush1.bf16.msra.mxu0 %v5074_v62  ;;  %v5130_v62 = vld [vmem:[#allocation4 + $0x6ec] ss:$16 sps:$4 sm:$0xff]  }
 0x118   :  { %2287 = vmatpush2.bf16.msra.mxu1 %v5077_v63  ;;  %2345 = vmatprep.subr.bf16.mxu0 %v5082_v0  ;;  %v5133_v63 = vld [vmem:[#allocation4 + $0x5ec] ss:$16 sps:$4 sm:$0xff]   ;;  %v5128_v0 = vld [vmem:[#allocation4 + $0x6e8] ss:$16 sps:$4 sm:$0xff]  }
 0x119   :  { %2402 = vmatprep.subr.bf16.mxu1 %v5085_v53  ;;  %v5136_v53 = vld [vmem:[#allocation4 + $0x6cc] ss:$16 sps:$4 sm:$0xff]  }
 0x11b   :  { %2289 = vmatmul.mubr.bf16.vlgmr.msra.gmra.mxu1 %v5665_v12  ;;  %2346 = vmatpush2.bf16.msra.mxu0 %v5080_v1  ;;  %v5101_v12 = vld [vmem:[#allocation4 + $0x488] ss:$16 sps:$4 sm:$0xff]   ;;  %v5139_v1 = vld [vmem:[#allocation4 + $0x5cc] ss:$16 sps:$4 sm:$0xff]  }
 0x11c   :  { %2403 = vmatpush1.bf16.msra.mxu1 %v5083_v3  ;;  %2347 = vmatprep.subr.bf16.mxu0 %v5088_v5  ;;  %v5134_v3 = vld [vmem:[#allocation4 + $0x6c8] ss:$16 sps:$4 sm:$0xff]  }
 0x11d   :  { %2404 = vmatprep.subr.bf16.mxu1 %v5091_v6  ;;  %2298 = vmatprep.mubr.bf16.mxu1 %v5671_v26  ;;  %v5104_v26 = vld [vmem:[#allocation4 + $0x368] ss:$16 sps:$4 sm:$0xff]   ;;  %v5145_v6 = vld [vmem:[#allocation4 + $0x5ac] ss:$16 sps:$4 sm:$0xff]  }
 0x11e   :  { %v5137_v5 = vld [vmem:[#allocation4 + $0x5c8] ss:$16 sps:$4 sm:$0xff]  }
 0x11f   :  { %2348 = vmatpush2.bf16.msra.mxu0 %v5086_v7  ;;  %v5140_v7 = vld [vmem:[#allocation4 + $0x6a8] ss:$16 sps:$4 sm:$0xff]  }
 0x120   :  { %2405 = vmatpush1.bf16.msra.mxu1 %v5089_v11  ;;  %2349 = vmatprep.subr.bf16.mxu0 %v5094_v17  ;;  %v5148_v11 = vld [vmem:[#allocation4 + $0x68c] ss:$16 sps:$4 sm:$0xff]  }
 0x121   :  { %2406 = vmatprep.subr.bf16.mxu1 %v5097_v21  ;;  %v5151_v17 = vld [vmem:[#allocation4 + $0x58c] ss:$16 sps:$4 sm:$0xff]   ;;  %v5146_v21 = vld [vmem:[#allocation4 + $0x688] ss:$16 sps:$4 sm:$0xff]  }
 0x123   :  { %2299 = vmatmul.mubr.bf16.gmra.mxu1 %v5673_v30  ;;  %2350 = vmatpush2.bf16.msra.mxu0 %v5092_v54  ;;  %v5113_v30 = vld [vmem:[#allocation4 + $0x448] ss:$16 sps:$4 sm:$0xff]  }
 0x124   :  { %2407 = vmatpush1.bf16.msra.mxu1 %v5095_v22  ;;  %2351 = vmatprep.subr.bf16.mxu0 %v5100_v23  ;;  %v5149_v54 = vld [vmem:[#allocation4 + $0x588] ss:$16 sps:$4 sm:$0xff]   ;;  %v5157_v22 = vld [vmem:[#allocation4 + $0x56c] ss:$16 sps:$4 sm:$0xff]  }
 0x125   :  { %2408 = vmatprep.subr.bf16.mxu1 %v5103_v24  ;;  %2308 = vmatprep.mubr.bf16.mxu1 %v5683_v46  ;;  %v5116_v46 = vld [vmem:[#allocation4 + $0x328] ss:$16 sps:$4 sm:$0xff]   ;;  %v5160_v24 = vld [vmem:[#allocation4 + $0x64c] ss:$16 sps:$4 sm:$0xff]  }
 0x126   :  { %v5155_v23 = vld [vmem:[#allocation4 + $0x568] ss:$16 sps:$4 sm:$0xff]  }
 0x127   :  { %2352 = vmatpush2.bf16.msra.mxu0 %v5098_v28  ;;  %v5163_v28 = vld [vmem:[#allocation4 + $0x54c] ss:$16 sps:$4 sm:$0xff]  }
 0x128   :  { %2409 = vmatpush1.bf16.msra.mxu1 %v5101_v12  ;;  %2353 = vmatprep.subr.bf16.mxu0 %v5106_v29  ;;  %v5158_v12 = vld [vmem:[#allocation4 + $0x648] ss:$16 sps:$4 sm:$0xff]  }
 0x129   :  { %2410 = vmatprep.subr.bf16.mxu1 %v5109_v38  ;;  %v5161_v29 = vld [vmem:[#allocation4 + $0x548] ss:$16 sps:$4 sm:$0xff]   ;;  %v5169_v38 = vld [vmem:[#allocation4 + $0x52c] ss:$16 sps:$4 sm:$0xff]  }
 0x12b   :  { %2309 = vmatmul.mubr.bf16.gmra.mxu1 %v5685_v50  ;;  %2354 = vmatpush2.bf16.msra.mxu0 %v5104_v26  ;;  %v5125_v50 = vld [vmem:[#allocation4 + $0x408] ss:$16 sps:$4 sm:$0xff]  }
 0x12c   :  { %2411 = vmatpush1.bf16.msra.mxu1 %v5107_v39  ;;  %2355 = vmatprep.subr.bf16.mxu0 %v5112_v40  ;;  %v5167_v26 = vld [vmem:[#allocation4 + $0x528] ss:$16 sps:$4 sm:$0xff]   ;;  %v5172_v39 = vld [vmem:[#allocation4 + $0x60c] ss:$16 sps:$4 sm:$0xff]  }
 0x12d   :  { %2412 = vmatprep.subr.bf16.mxu1 %v5115_v41  ;;  %2318 = vmatprep.mubr.bf16.mxu1 %v5695_v4  ;;  %v5131_v4 = vld [vmem:[#allocation4 + $0x5e8] ss:$16 sps:$4 sm:$0xff]   ;;  %v5175_v40 = vld [vmem:[#allocation4 + $0x50c] ss:$16 sps:$4 sm:$0xff]  }
 0x12e   :  { %v5170_v41 = vld [vmem:[#allocation4 + $0x608] ss:$16 sps:$4 sm:$0xff]  }
 0x12f   :  { %2356 = vmatpush2.bf16.msra.mxu0 %v5110_v43  ;;  %v5173_v43 = vld [vmem:[#allocation4 + $0x508] ss:$16 sps:$4 sm:$0xff]  }
 0x130   :  { %2413 = vmatpush1.bf16.msra.mxu1 %v5113_v30  ;;  %2357 = vmatprep.subr.bf16.mxu0 %v5118_v44  ;;  %v5181_v30 = vld [vmem:[#allocation4 + $0x86c] ss:$16 sps:$4 sm:$0xff]   ;;  %v5176_v44 = vld [vmem:[#allocation4 + $0x7e8] ss:$16 sps:$4 sm:$0xff]  }
 0x131   :  { %2414 = vmatprep.subr.bf16.mxu1 %v5121_v45  ;;  %v5184_v45 = vld [vmem:[#allocation4 + $0x7cc] ss:$16 sps:$4 sm:$0xff]  }
 0x133   :  { %2319 = vmatmul.mubr.bf16.gmra.mxu1 %v5697_v8  ;;  %2358 = vmatpush2.bf16.msra.mxu0 %v5116_v46  ;;  %v5142_v8 = vld [vmem:[#allocation4 + $0x6ac] ss:$16 sps:$4 sm:$0xff]  }
 0x134   :  { %2415 = vmatpush1.bf16.msra.mxu1 %v5119_v52  ;;  %2359 = vmatprep.subr.bf16.mxu0 %v5124_v59  ;;  %v5190_v46 = vld [vmem:[#allocation4 + $0x84c] ss:$16 sps:$4 sm:$0xff]   ;;  %v5182_v52 = vld [vmem:[#allocation4 + $0x7c8] ss:$16 sps:$4 sm:$0xff]  }
 0x135   :  { %2416 = vmatprep.subr.bf16.mxu1 %v5127_v60  ;;  %2434 = vmatprep.mubr.bf16.mxu1 %v5707_v31  ;;  %v5143_v31 = vld [vmem:[#allocation4 + $0x5a8] ss:$16 sps:$4 sm:$0xff]   ;;  %v5199_v60 = vld [vmem:[#allocation4 + $0x82c] ss:$16 sps:$4 sm:$0xff]  }
 0x136   :  { %v5188_v59 = vld [vmem:[#allocation4 + $0x848] ss:$16 sps:$4 sm:$0xff]  }
 0x137   :  { %2360 = vmatpush2.bf16.msra.mxu0 %v5122_v61  ;;  %v5185_v61 = vld [vmem:[#allocation4 + $0x7a8] ss:$16 sps:$4 sm:$0xff]  }
 0x138   :  { %2417 = vmatpush1.bf16.msra.mxu1 %v5125_v50  ;;  %2475 = vmatprep.subr.bf16.mxu0 %v5130_v62  ;;  %v5193_v62 = vld [vmem:[#allocation4 + $0x78c] ss:$16 sps:$4 sm:$0xff]  }
 0x139   :  { %2418 = vmatprep.subr.bf16.mxu1 %v5133_v63  ;;  %v5197_v63 = vld [vmem:[#allocation4 + $0x828] ss:$16 sps:$4 sm:$0xff]  }
 0x13a   :  { %2362 = vmatmul.mubr.bf16.vlgmr.msra.gmra.mxu0 %v5667_v13  ;;  %v5154_v13 = vld [vmem:[#allocation4 + $0x66c] ss:$16 sps:$4 sm:$0xff]  }
 0x13b   :  { %2476 = vmatpush1.bf16.msra.mxu0 %v5128_v0  ;;  %2371 = vmatprep.mubr.bf16.mxu0 %v5675_v35  ;;  %v5152_v35 = vld [vmem:[#allocation4 + $0x668] ss:$16 sps:$4 sm:$0xff]   ;;  %v5208_v0 = vld [vmem:[#allocation4 + $0x80c] ss:$16 sps:$4 sm:$0xff]  }
 0x13c   :  { %2419 = vmatpush2.bf16.msra.mxu1 %v5131_v4  ;;  %2477 = vmatprep.subr.bf16.mxu0 %v5136_v53 }
 0x13d   :  { %2420 = vmatprep.subr.bf16.mxu1 %v5139_v1  ;;  %v5206_v1 = vld [vmem:[#allocation4 + $0x808] ss:$16 sps:$4 sm:$0xff]  }
 0x13f   :  { %2478 = vmatpush1.bf16.msra.mxu0 %v5134_v3  ;;  %v5194_v3 = vld [vmem:[#allocation4 + $0x768] ss:$16 sps:$4 sm:$0xff]  }
 0x140   :  { %2421 = vmatpush2.bf16.msra.mxu1 %v5137_v5  ;;  %2479 = vmatprep.subr.bf16.mxu0 %v5142_v8 }
 0x141   :  { %2422 = vmatprep.subr.bf16.mxu1 %v5145_v6  ;;  %v5202_v6 = vld [vmem:[#allocation4 + $0x74c] ss:$16 sps:$4 sm:$0xff]  }
 0x142   :  { %2372 = vmatmul.mubr.bf16.gmra.mxu0 %v5677_v36  ;;  %v5166_v36 = vld [vmem:[#allocation4 + $0x62c] ss:$16 sps:$4 sm:$0xff]  }
 0x143   :  { %2480 = vmatpush1.bf16.msra.mxu0 %v5140_v7  ;;  %2381 = vmatprep.mubr.bf16.mxu0 %v5687_v57  ;;  %v5164_v57 = vld [vmem:[#allocation4 + $0x628] ss:$16 sps:$4 sm:$0xff]  }
 0x144   :  { %2423 = vmatpush2.bf16.msra.mxu1 %v5143_v31  ;;  %2481 = vmatprep.subr.bf16.mxu0 %v5148_v11  ;;  %v5200_v7 = vld [vmem:[#allocation4 + $0x748] ss:$16 sps:$4 sm:$0xff]  }
 0x145   :  { %2424 = vmatprep.subr.bf16.mxu1 %v5151_v17 }
 0x147   :  { %2482 = vmatpush1.bf16.msra.mxu0 %v5146_v21  ;;  %v5203_v21 = vld [vmem:[#allocation4 + $0x728] ss:$16 sps:$4 sm:$0xff]  }
 0x148   :  { %2425 = vmatpush2.bf16.msra.mxu1 %v5149_v54  ;;  %2483 = vmatprep.subr.bf16.mxu0 %v5154_v13  ;;  %v5211_v54 = vld [vmem:[#allocation4 + $0x70c] ss:$16 sps:$4 sm:$0xff]  }
 0x149   :  { %2426 = vmatprep.subr.bf16.mxu1 %v5157_v22 }
 0x14a   :  { %2382 = vmatmul.mubr.bf16.gmra.mxu0 %v5689_v58  ;;  %v5178_v58 = vld [vmem:[#allocation4 + $0x7ec] ss:$16 sps:$4 sm:$0xff]  }
 0x14b   :  { %2484 = vmatpush1.bf16.msra.mxu0 %v5152_v35  ;;  %2391 = vmatprep.mubr.bf16.mxu0 %v5699_v15  ;;  %v5179_v15 = vld [vmem:[#allocation4 + $0x868] ss:$16 sps:$4 sm:$0xff]  }
 0x14c   :  { %2427 = vmatpush2.bf16.msra.mxu1 %v5155_v23  ;;  %2485 = vmatprep.subr.bf16.mxu0 %v5160_v24  ;;  %v5209_v35 = vld [vmem:[#allocation4 + $0x708] ss:$16 sps:$4 sm:$0xff]  }
 0x14d   :  { %2428 = vmatprep.subr.bf16.mxu1 %v5163_v28 }
 0x14f   :  { %2486 = vmatpush1.bf16.msra.mxu0 %v5158_v12  ;;  %v5212_v12 = vld [vmem:[#allocation7 + $0xe0] ss:$16 sps:$4 sm:$0xff]  }
 0x150   :  { %2429 = vmatpush2.bf16.msra.mxu1 %v5161_v29  ;;  %2487 = vmatprep.subr.bf16.mxu0 %v5166_v36  ;;  %v5217_v29 = vld [vmem:[#allocation7 + $0xc4] ss:$16 sps:$4 sm:$0xff]  }
 0x151   :  { %2430 = vmatprep.subr.bf16.mxu1 %v5169_v38  ;;  %v5215_v38 = vld [vmem:[#allocation7 + $0xc0] ss:$16 sps:$4 sm:$0xff]  }
 0x152   :  { %2392 = vmatmul.mubr.bf16.gmra.mxu0 %v5701_v16  ;;  %v5187_v16 = vld [vmem:[#allocation4 + $0x7ac] ss:$16 sps:$4 sm:$0xff]  }
 0x153   :  { %2488 = vmatpush1.bf16.msra.mxu0 %v5164_v57  ;;  %2507 = vmatprep.mubr.bf16.mxu0 %v5709_v33  ;;  %v5220_v57 = vld [vmem:[#allocation7 + $0xa4] ss:$16 sps:$4 sm:$0xff]  }
 0x154   :  { %2431 = vmatpush2.bf16.msra.mxu1 %v5167_v26  ;;  %2489 = vmatprep.subr.bf16.mxu0 %v5172_v39 }
 0x155   :  { %2432 = vmatprep.subr.bf16.mxu1 %v5175_v40 }
 0x157   :  { %2490 = vmatpush1.bf16.msra.mxu0 %v5170_v41  ;;  %v5221_v41 = vld [vmem:[#allocation7 + $0x80] ss:$16 sps:$4 sm:$0xff]  }
 0x158   :  { %2433 = vmatpush2.bf16.msra.mxu1 %v5173_v43  ;;  %2491 = vmatprep.subr.bf16.mxu0 %v5178_v58  ;;  %v5226_v43 = vld [vmem:[#allocation7 + $0x64] ss:$16 sps:$4 sm:$0xff]  }
 0x159   :  { %2556 = vmatprep.subr.bf16.mxu1 %v5181_v30  ;;  %v5310_v58 = vld [vmem:[#allocation7 + $0x2e4] ss:$16 sps:$4 sm:$0xff]  }
 0x15a   :  { %v5795_v33 = vpop.f32.mrf.mxu0 }
 0x15b   :  { %2435 = vmatmul.mubr.bf16.vlgmr.msra.gmra.mxu1 %v5713_v19  ;;  %2492 = vmatpush2.bf16.msra.mxu0 %v5176_v44  ;;  %v5797_v50 = vpop.f32.mrf.mxu1  ;;  %v5191_v19 = vld [vmem:[#allocation4 + $0x788] ss:$16 sps:$4 sm:$0xff]  }
 0x15c   :  { %2557 = vmatpush1.bf16.msra.mxu1 %v5179_v15  ;;  %2493 = vmatprep.subr.bf16.mxu0 %v5184_v45  ;;  %v5799_v4 = vpop.f32.mrf.mxu0  ;;  %v5313_v15 = vld [vmem:[#allocation7 + $0x2c4] ss:$16 sps:$4 sm:$0xff]  }
 0x15d   :  { %2444 = vmatprep.mubr.bf16.mxu1 %v5717_v25  ;;  %2558 = vmatprep.subr.bf16.mxu1 %v5190_v46  ;;  %v5801_v53 = vpop.f32.mrf.mxu1  ;;  %v5196_v25 = vld [vmem:[#allocation4 + $0x76c] ss:$16 sps:$4 sm:$0xff]  }
 0x15e   :  { %v5805_v5 = vpop.f32.mrf.mxu0 }
 0x15f   :  { %2494 = vmatpush2.bf16.msra.mxu0 %v5182_v52  ;;  %v5807_v8 = vpop.f32.mrf.mxu1  ;;  %v5227_v52 = vld [vmem:[#allocation7 + $0x40] ss:$16 sps:$4 sm:$0xff]  }
 0x160   :  { %2559 = vmatpush1.bf16.msra.mxu1 %v5188_v59  ;;  %2495 = vmatprep.subr.bf16.mxu0 %v5187_v16  ;;  %v5809_v31 = vpop.f32.mrf.mxu0  ;;  %v5311_v16 = vld [vmem:[#allocation7 + $0x2c0] ss:$16 sps:$4 sm:$0xff]   ;;  %v5232_v59 = vld [vmem:[#allocation7 + $0x24] ss:$16 sps:$4 sm:$0xff]  }
 0x161   :  { %2560 = vmatprep.subr.bf16.mxu1 %v5199_v60 }
 0x162   :  { %v5815_v11 = vpop.f32.mrf.mxu0 }
 0x163   :  { %2445 = vmatmul.mubr.bf16.gmra.mxu1 %v5725_v47  ;;  %2496 = vmatpush2.bf16.msra.mxu0 %v5185_v61  ;;  %v5811_v47 = vpop.f32.mrf.mxu1  ;;  %v5235_v61 = vld [vmem:[#allocation7 + $0x4] ss:$16 sps:$4 sm:$0xff]  }
 0x164   :  { %2454 = vmatprep.mubr.bf16.mxu1 %v5729_v51  ;;  %2497 = vmatprep.subr.bf16.mxu0 %v5193_v62  ;;  %v5205_v51 = vld [vmem:[#allocation4 + $0x72c] ss:$16 sps:$4 sm:$0xff]   ;;  %v5819_v13 = vpop.f32.mrf.mxu0  ;;  %v5319_v62 = vld [vmem:[#allocation7 + $0x284] ss:$16 sps:$4 sm:$0xff]  }
 0x165   :  { %2561 = vmatpush1.bf16.msra.mxu1 %v5197_v63  ;;  %v5817_v17 = vpop.f32.mrf.mxu1 }
 0x166   :  { %2562 = vmatprep.subr.bf16.mxu1 %v5208_v0  ;;  %v5233_v0 = vld [vmem:[#allocation7] ss:$16 sps:$4 sm:$0xff]  }
 0x167   :  { %2498 = vmatpush2.bf16.msra.mxu0 %v5191_v19  ;;  %v5821_v22 = vpop.f32.mrf.mxu1 }
 0x168   :  { %2499 = vmatprep.subr.bf16.mxu0 %v5196_v25  ;;  %v5317_v25 = vld [vmem:[#allocation7 + $0x280] ss:$16 sps:$4 sm:$0xff]  }
 0x169   :  { %2563 = vmatpush1.bf16.msra.mxu1 %v5206_v1  ;;  %v5827_v23 = vpop.f32.mrf.mxu1  ;;  %v5238_v1 = vld [vmem:[#allocation7 + $0x1e4] ss:$16 sps:$4 sm:$0xff]  }
 0x16a   :  { %3532 = vmatprep.subr.bf16.mxu1 %v5310_v58  ;;  %v5326_v58 = vld [vmem:[#allocation7 + $0x220] ss:$16 sps:$4 sm:$0xff]  }
 0x16b   :  { %2455 = vmatmul.mubr.bf16.gmra.mxu1 %v5737_v9  ;;  %2500 = vmatpush2.bf16.msra.mxu0 %v5194_v3  ;;  %v5214_v9 = vld [vmem:[#allocation7 + $0xe4] ss:$16 sps:$4 sm:$0xff]   ;;  %v5831_v28 = vpop.f32.mrf.mxu1 }
 0x16c   :  { %2464 = vmatprep.mubr.bf16.mxu1 %v5741_v14  ;;  %2501 = vmatprep.subr.bf16.mxu0 %v5202_v6  ;;  %v5825_v14 = vpop.f32.mrf.mxu0  ;;  %v5322_v3 = vld [vmem:[#allocation7 + $0x264] ss:$16 sps:$4 sm:$0xff]  }
 0x16d   :  { %v5840_v36 = vpop.f32.mrf.mxu1 }
 0x16e   :  { %v5829_v24 = vpop.f32.mrf.mxu0 }
 0x16f   :  { %2502 = vmatpush2.bf16.msra.mxu0 %v5200_v7  ;;  %v5844_v39 = vpop.f32.mrf.mxu1 }
 0x170   :  { %2503 = vmatprep.subr.bf16.mxu0 %v5205_v51  ;;  %v5241_v51 = vld [vmem:[#allocation7 + $0x1c4] ss:$16 sps:$4 sm:$0xff]  }
 0x171   :  { %v5853_v40 = vpop.f32.mrf.mxu1 }
 0x173   :  { %2465 = vmatmul.mubr.bf16.gmra.mxu1 %v5749_v32  ;;  %2504 = vmatpush2.bf16.msra.mxu0 %v5203_v21  ;;  %v5838_v32 = vpop.f32.mrf.mxu0  ;;  %v5857_v44 = vpop.f32.mrf.mxu1 }
 0x174   :  { %2580 = vmatprep.mubr.bf16.mxu1 %v5597_v42  ;;  %2505 = vmatprep.subr.bf16.mxu0 %v5211_v54 }
 0x175   :  { %v5842_v26 = vpop.f32.mrf.mxu0  ;;  %v5866_v46 = vpop.f32.mrf.mxu1 }
 0x176   :  { %6332 = vst [vmem:[#allocation18_spill] sm:$0xff] %v5866_v46 }
 0x177   :  { %2506 = vmatpush2.bf16.msra.mxu0 %v5209_v35  ;;  %v5325_v35 = vld [vmem:[#allocation7 + $0x244] ss:$16 sps:$4 sm:$0xff]  }
 0x178   :  { %3459 = vmatprep.subr.bf16.mxu0 %v5214_v9 }
 0x17a   :  { %2508 = vmatmul.mubr.bf16.vlgmr.msra.gmra.mxu0 %v5715_v20  ;;  %v5218_v20 = vld [vmem:[#allocation7 + $0xa0] ss:$16 sps:$4 sm:$0xff]  }
 0x17b   :  { %4545 = vmatmul.mubr.msk.bf16.vlgmr.msra.gmra.mxu1 %vm1878_vm0, %v5757_v49  ;;  %2517 = vmatprep.mubr.bf16.mxu0 %v5719_v37  ;;  %v5223_v49 = vld [vmem:[#allocation7 + $0x84] ss:$16 sps:$4 sm:$0xff]   ;;  %v5851_v37 = vpop.f32.mrf.mxu0 }
 0x17c   :  { %2590 = vmatprep.mubr.bf16.mxu1 %v5597_v42  ;;  %3460 = vmatpush1.bf16.msra.mxu0 %v5212_v12  ;;  %v5239_v12 = vld [vmem:[#allocation7 + $0x1c0] ss:$16 sps:$4 sm:$0xff]  }
 0x17d   :  { %3461 = vmatprep.subr.bf16.mxu0 %v5217_v29  ;;  %v5855_v30 = vpop.f32.mrf.mxu0  ;;  %v5323_v29 = vld [vmem:[#allocation7 + $0x240] ss:$16 sps:$4 sm:$0xff]  }
 0x17f   :  { %v5864_v45 = vpop.f32.mrf.mxu0 }
 0x180   :  { %3462 = vmatpush1.bf16.msra.mxu0 %v5215_v38  ;;  %v5244_v38 = vld [vmem:[#allocation7 + $0x1a4] ss:$16 sps:$4 sm:$0xff]  }
 0x181   :  { %3463 = vmatprep.subr.bf16.mxu0 %v5220_v57  ;;  %v5868_v60 = vpop.f32.mrf.mxu0 }
 0x182   :  { %2518 = vmatmul.mubr.bf16.gmra.mxu0 %v5727_v48  ;;  %v5224_v48 = vld [vmem:[#allocation7 + $0x60] ss:$16 sps:$4 sm:$0xff]  }
 0x183   :  { %4546 = vmatmul.mubr.msk.bf16.gmra.mxu1 %vm1878_vm0, %v5762_v2  ;;  %2527 = vmatprep.mubr.bf16.mxu0 %v5731_v56  ;;  %v5308_v2 = vld [vmem:[#allocation7 + $0x2e0] ss:$16 sps:$4 sm:$0xff]   ;;  %v5229_v56 = vld [vmem:[#allocation7 + $0x44] ss:$16 sps:$4 sm:$0xff]   ;;  %v5875_v63 = vpop.f32.mrf.mxu0 }
 0x184   :  { %2600 = vmatprep.mubr.bf16.mxu1 %v5597_v42  ;;  %3464 = vmatpush1.bf16.msra.mxu0 %v5218_v20 }
 0x185   :  { %3465 = vmatprep.subr.bf16.mxu0 %v5223_v49  ;;  %3533 = vmatpush1.bf16.msra.mxu1 %v5308_v2  ;;  %v5879_v6 = vpop.f32.mrf.mxu0  ;;  %v5328_v49 = vld [vmem:[#allocation7 + $0x224] ss:$16 sps:$4 sm:$0xff]  }
 0x186   :  { %3534 = vmatprep.subr.bf16.mxu1 %v5313_v15  ;;  %v5331_v15 = vld [vmem:[#allocation7 + $0x204] ss:$16 sps:$4 sm:$0xff]  }
 0x188   :  { %3466 = vmatpush1.bf16.msra.mxu0 %v5221_v41 }
 0x189   :  { %3467 = vmatprep.subr.bf16.mxu0 %v5226_v43  ;;  %3535 = vmatpush1.bf16.msra.mxu1 %v5311_v16  ;;  %v5242_v43 = vld [vmem:[#allocation7 + $0x1a0] ss:$16 sps:$4 sm:$0xff]  }
 0x18a   :  { %2528 = vmatmul.mubr.bf16.gmra.mxu0 %v5739_v10  ;;  %v5316_v10 = vld [vmem:[#allocation7 + $0x2a4] ss:$16 sps:$4 sm:$0xff]  }
 0x18b   :  { %4547 = vmatmul.mubr.msk.bf16.gmra.mxu1 %vm1878_vm0, %v5767_v27  ;;  %2537 = vmatprep.mubr.bf16.mxu0 %v5743_v18  ;;  %v5870_v27 = vpop.f32.mrf.mxu1  ;;  %v5230_v18 = vld [vmem:[#allocation7 + $0x20] ss:$16 sps:$4 sm:$0xff]  }
 0x18c   :  { %2610 = vmatprep.mubr.bf16.mxu1 %v5597_v42  ;;  %3468 = vmatpush1.bf16.msra.mxu0 %v5224_v48  ;;  %6333 = vst [vmem:[#allocation19_spill] sm:$0xff] %v5870_v27  ;;  %v5314_v42 = vld [vmem:[#allocation7 + $0x2a0] ss:$16 sps:$4 sm:$0xff]   ;;  %v5247_v48 = vld [vmem:[#allocation7 + $0x184] ss:$16 sps:$4 sm:$0xff]  }
 0x18d   :  { %3469 = vmatprep.subr.bf16.mxu0 %v5229_v56  ;;  %3536 = vmatprep.subr.bf16.mxu1 %v5316_v10  ;;  %v5877_v19 = vpop.f32.mrf.mxu1  ;;  %v5329_v10 = vld [vmem:[#allocation7 + $0x200] ss:$16 sps:$4 sm:$0xff]  }
 0x18e   :  { %6334 = vst [vmem:[#allocation20_spill] sm:$0xff] %v5877_v19  ;;  %3537 = vmatpush1.bf16.msra.mxu1 %v5314_v42  ;;  %v5346_v19 = vld [vmem:[#allocation7 + $0x364] ss:$16 sps:$4 sm:$0xff]  }
 0x18f   :  { %3538 = vmatprep.subr.bf16.mxu1 %v5319_v62  ;;  %v5881_v7 = vpop.f32.mrf.mxu1  ;;  %v5334_v62 = vld [vmem:[#allocation7 + $0x3e4] ss:$16 sps:$4 sm:$0xff]  }
 0x190   :  { %3470 = vmatpush1.bf16.msra.mxu0 %v5227_v52  ;;  %6335 = vst [vmem:[#allocation21_spill] sm:$0xff] %v5881_v7  ;;  %v498_v52 = vlaneseq }
 0x191   :  { %3471 = vmatprep.subr.bf16.mxu0 %v5232_v59  ;;  %v5245_v59 = vld [vmem:[#allocation7 + $0x180] ss:$16 sps:$4 sm:$0xff]  }
 0x192   :  { %2538 = vmatmul.mubr.bf16.gmra.mxu0 %v5751_v34  ;;  %v5236_v34 = vld [vmem:[#allocation7 + $0x1e0] ss:$16 sps:$4 sm:$0xff]   ;;  %3539 = vmatpush1.bf16.msra.mxu1 %v5317_v25 }
 0x193   :  { %4548 = vmatmul.mubr.msk.bf16.gmra.mxu1 %vm1878_vm0, %v5772_v55  ;;  %v5320_v55 = vld [vmem:[#allocation7 + $0x260] ss:$16 sps:$4 sm:$0xff]   ;;  %3540 = vmatprep.subr.bf16.mxu1 %v5322_v3 }
 0x194   :  { %3472 = vmatpush1.bf16.msra.mxu0 %v5230_v18  ;;  %v5250_v18 = vld [vmem:[#allocation7 + $0x164] ss:$16 sps:$4 sm:$0xff]   ;;  %v5248_v3 = vld [vmem:[#allocation7 + $0x160] ss:$16 sps:$4 sm:$0xff]  }
 0x195   :  { %3473 = vmatprep.subr.bf16.mxu0 %v5235_v61 }
 0x196   :  { %3541 = vmatpush1.bf16.msra.mxu1 %v5320_v55  ;;  %v5253_v55 = vld [vmem:[#allocation7 + $0x144] ss:$16 sps:$4 sm:$0xff]  }
 0x197   :  { %3542 = vmatprep.subr.bf16.mxu1 %v5325_v35 }
 0x198   :  { %3474 = vmatpush1.bf16.msra.mxu0 %v5233_v0  ;;  %v5905_v0 = vshrl.u32 %v498_v52, 7 }
 0x199   :  { %3475 = vmatprep.subr.bf16.mxu0 %v5238_v1 }
 0x19a   :  { %v5883_v21 = vpop.f32.mrf.mxu0  ;;  %3543 = vmatpush1.bf16.msra.mxu1 %v5323_v29  ;;  %6336 = vst [vmem:[#allocation22_spill] sm:$0xff] %v5905_v0  ;;  %v6323_v35 = vsub.s32 1, %v5905_v0  ;;  %v6324_v29 = vsub.s32 0, %v5905_v0 }
 0x19b   :  { %v5885_v54 = vpop.f32.mrf.mxu1  ;;  %3544 = vmatprep.subr.bf16.mxu1 %v5328_v49 }
 0x19c   :  { %v5887_v9 = vpop.f32.mrf.mxu0  ;;  %3476 = vmatpush2.bf16.msra.mxu0 %v5236_v34  ;;  %v5332_v34 = vld [vmem:[#allocation7 + $0x3e0] ss:$16 sps:$4 sm:$0xff]  }
 0x19d   :  { %3477 = vmatprep.subr.bf16.mxu0 %v5241_v51  ;;  %v5889_v57 = vpop.f32.mrf.mxu1 }
 0x19e   :  { %v5891_v20 = vpop.f32.mrf.mxu0  ;;  %3545 = vmatpush1.bf16.msra.mxu1 %v5326_v58  ;;  %v5335_v58 = vld [vmem:[#allocation7 + $0x3c0] ss:$16 sps:$4 sm:$0xff]  }
 0x19f   :  { %v5895_v2 = vpop.f32.mrf.mxu1  ;;  %3546 = vmatprep.subr.bf16.mxu1 %v5331_v15  ;;  %v5256_v15 = vld [vmem:[#allocation7 + $0x124] ss:$16 sps:$4 sm:$0xff]  }
 0x1a0   :  { %v5893_v41 = vpop.f32.mrf.mxu0  ;;  %3478 = vmatpush2.bf16.msra.mxu0 %v5239_v12  ;;  %v5337_v12 = vld [vmem:[#allocation7 + $0x3c4] ss:$16 sps:$4 sm:$0xff]  }
 0x1a1   :  { %3479 = vmatprep.subr.bf16.mxu0 %v5244_v38  ;;  %v5901_v42 = vpop.f32.mrf.mxu1 }
 0x1a2   :  { %v5897_v56 = vpop.f32.mrf.mxu0  ;;  %3547 = vmatpush1.bf16.msra.mxu1 %v5329_v10  ;;  %v5340_v10 = vld [vmem:[#allocation7 + $0x3a4] ss:$16 sps:$4 sm:$0xff]  }
 0x1a3   :  { %v5907_v25 = vpop.f32.mrf.mxu1  ;;  %3548 = vmatprep.subr.bf16.mxu1 %v5334_v62 }
 0x1a4   :  { %v5899_v16 = vpop.f32.mrf.mxu0  ;;  %3480 = vmatpush2.bf16.msra.mxu0 %v5242_v43  ;;  %v5251_v43 = vld [vmem:[#allocation7 + $0x140] ss:$16 sps:$4 sm:$0xff]  }
 0x1a5   :  { %3481 = vmatprep.subr.bf16.mxu0 %v5247_v48  ;;  %v5915_v38 = vpop.f32.mrf.mxu1  ;;  %v5919_v48 = vld [vmem:[#allocation6] sm:$0xf] }
 0x1a6   :  { %v5903_v61 = vpop.f32.mrf.mxu0  ;;  %3549 = vmatpush2.bf16.msra.mxu1 %v5332_v34  ;;  %6337 = vst [vmem:[#allocation23_spill] sm:$0xff] %v5919_v48  ;;  %v5254_v34 = vld [vmem:[#allocation7 + $0x120] ss:$16 sps:$4 sm:$0xff]  }
 0x1a7   :  { %3550 = vmatprep.subr.bf16.mxu1 %v5337_v12  ;;  %v5933_v62 = vpop.f32.mrf.mxu1  ;;  %v5259_v12 = vld [vmem:[#allocation7 + $0x104] ss:$16 sps:$4 sm:$0xff]  }
 0x1a8   :  { %v5909_v1 = vpop.f32.mrf.mxu0  ;;  %3482 = vmatpush2.bf16.msra.mxu0 %v5245_v59  ;;  %v5926_v59 = vrot.slane %v5919_v48, %v6323_v35 }
 0x1a9   :  { %3483 = vmatprep.subr.bf16.mxu0 %v5250_v18  ;;  %v5931_v18 = vrot.slane %v5919_v48, %v6324_v29  ;;  %v5343_v48 = vld [vmem:[#allocation7 + $0x384] ss:$16 sps:$4 sm:$0xff]   ;;  %v5945_v46 = vpop.f32.mrf.mxu1 }
 0x1aa   :  { %v5911_v51 = vpop.f32.mrf.mxu0  ;;  %3551 = vmatpush2.bf16.msra.mxu1 %v5335_v58  ;;  %v1928_v35 = vadd.f32 %v5799_v4, %v5926_v59  ;;  %v5257_v58 = vld [vmem:[#allocation7 + $0x100] ss:$16 sps:$4 sm:$0xff]   ;;  %v5262_v4 = vld [vmem:[#allocation7 + $0xec] ss:$16 sps:$4 sm:$0xff]  }
 0x1ab   :  { %3552 = vmatprep.subr.bf16.mxu1 %v5340_v10  ;;  %v1930_v29 = vadd.f32 %v5805_v5, %v5931_v18  ;;  %v1926_v0 = vadd.f32 %v5795_v33, %v5931_v18  ;;  %v1932_v10 = vadd.f32 %v5809_v31, %v5926_v59 }
 0x1ac   :  { %v5917_v49 = vpop.f32.mrf.mxu0  ;;  %3484 = vmatpush2.bf16.msra.mxu0 %v5248_v3  ;;  %v2001_v5 = vadd.f32 %v5801_v53, %v1928_v35  ;;  %v1938_v53 = vadd.f32 %v5819_v13, %v5926_v59  ;;  %v1942_v13 = vadd.f32 %v5829_v24, %v5926_v59 }
 0x1ad   :  { %3485 = vmatprep.subr.bf16.mxu0 %v5253_v55  ;;  %v5338_v55 = vld [vmem:[#allocation7 + $0x3a0] ss:$16 sps:$4 sm:$0xff]   ;;  %v2003_v33 = vadd.f32 %v5807_v8, %v1930_v29  ;;  %v1999_v27 = vadd.f32 %v5797_v50, %v1926_v0  ;;  %v2005_v31 = vadd.f32 %v5811_v47, %v1932_v10  ;;  %v1940_v0 = vadd.f32 %v5825_v14, %v5931_v18  ;;  %v5349_v29 = vld [vmem:[#allocation7 + $0x344] ss:$16 sps:$4 sm:$0xff]  }
 0x1ae   :  { %v5921_v52 = vpop.f32.mrf.mxu0  ;;  %3553 = vmatpush2.bf16.msra.mxu1 %v5338_v55  ;;  %v5344_v55 = vld [vmem:[#allocation7 + $0x360] ss:$16 sps:$4 sm:$0xff]   ;;  %v1936_v47 = vadd.f32 %v5815_v11, %v5931_v18  ;;  %v2011_v14 = vadd.f32 %v5821_v22, %v1938_v53  ;;  %v2015_v22 = vadd.f32 %v5831_v28, %v1942_v13  ;;  %v1950_v53 = vadd.f32 %v5851_v37, %v5931_v18 }
 0x1af   :  { %3554 = vmatprep.subr.bf16.mxu1 %v5343_v48  ;;  %v2074_v48 = vadd.f32 %v5887_v9, %v2001_v5  ;;  %v2072_v50 = vadd.f32 %v5883_v21, %v1999_v27  ;;  %v2078_v35 = vadd.f32 %v5893_v41, %v2005_v31  ;;  %v2013_v11 = vadd.f32 %v5827_v23, %v1940_v0  ;;  %v5352_v5 = vld [vmem:[#allocation7 + $0x324] ss:$16 sps:$4 sm:$0xff]  }
 0x1b0   :  { %v5935_v3 = vpop.f32.mrf.mxu0  ;;  %3486 = vmatpush2.bf16.msra.mxu0 %v5251_v43  ;;  %v5355_v0 = vld [vmem:[#allocation7 + $0x304] ss:$16 sps:$4 sm:$0xff]  }
 0x1b1   :  { %3487 = vmatprep.subr.bf16.mxu0 %v5256_v15  ;;  %v5341_v15 = vld [vmem:[#allocation7 + $0x380] ss:$16 sps:$4 sm:$0xff]   ;;  %v2147_v27 = vadd.f32 %v5889_v57, %v2074_v48  ;;  %v2145_v41 = vadd.f32 %v5885_v54, %v2072_v50  ;;  %v2084_v54 = vadd.f32 %v5899_v16, %v2011_v14  ;;  %v2086_v31 = vadd.f32 %v5903_v61, %v2013_v11 }
 0x1b2   :  { %v5937_v7 = vpop.f32.mrf.mxu0  ;;  %3555 = vmatpush2.bf16.msra.mxu1 %v5341_v15  ;;  %v2151_v15 = vadd.f32 %v5901_v42, %v2078_v35  ;;  %v1948_v42 = vadd.f32 %v5842_v26, %v5926_v59  ;;  %v2088_v50 = vadd.f32 %v5909_v1, %v2015_v22  ;;  %v1946_v16 = vadd.f32 %v5838_v32, %v5931_v18  ;;  %v5260_v1 = vld [vmem:[#allocation7 + $0xe8] ss:$16 sps:$4 sm:$0xff]  }
 0x1b3   :  { %6338 = vst [vmem:[#allocation24_spill] sm:$0xff] %v5937_v7  ;;  %3556 = vmatprep.subr.bf16.mxu1 %v5346_v19  ;;  %v5347_v19 = vld [vmem:[#allocation7 + $0x340] ss:$16 sps:$4 sm:$0xff]   ;;  %v1952_v61 = vadd.f32 %v5855_v30, %v5926_v59  ;;  %v2159_v37 = vadd.f32 %v5933_v62, %v2086_v31  ;;  %v5358_v62 = vld [vmem:[#allocation7 + $0x2ec] ss:$16 sps:$4 sm:$0xff]   ;;  %v1956_v22 = vadd.f32 %v5864_v45, %v5931_v18 }
 0x1b4   :  { %v5947_v43 = vpop.f32.mrf.mxu0  ;;  %3488 = vmatpush2.bf16.msra.mxu0 %v5254_v34  ;;  %v2161_v14 = vadd.f32 %v5945_v46, %v2088_v50  ;;  %v6341_v50 = vld [vmem:[#allocation20_spill] sm:$0xff] }
 0x1b5   :  { %6339 = vst [vmem:[#allocation25_spill] sm:$0xff] %v5947_v43  ;;  %3489 = vmatprep.subr.bf16.mxu0 %v5259_v12  ;;  %v5956_v43 = vpop.f32.mrf.mxu1  ;;  %v2076_v12 = vadd.f32 %v5891_v20, %v2003_v33  ;;  %v2009_v33 = vadd.f32 %v5817_v17, %v1936_v47  ;;  %v2157_v47 = vadd.f32 %v5915_v38, %v2084_v54 }
 0x1b6   :  { %v5951_v7 = vpop.f32.mrf.mxu0  ;;  %3557 = vmatpush2.bf16.msra.mxu1 %v5344_v55  ;;  %v2025_v11 = vadd.f32 %v5857_v44, %v1952_v61 }
 0x1b7   :  { %v5971_v9 = vpop.f32.mrf.mxu1  ;;  %v2149_v21 = vadd.f32 %v5895_v2, %v2076_v12  ;;  %3558 = vmatprep.subr.bf16.mxu1 %v5349_v29  ;;  %v5350_v2 = vld [vmem:[#allocation7 + $0x320] ss:$16 sps:$4 sm:$0xff]   ;;  %v2082_v48 = vadd.f32 %v5897_v56, %v2009_v33 }
 0x1b8   :  { %v5958_v34 = vpop.f32.mrf.mxu0  ;;  %3490 = vmatpush2.bf16.msra.mxu0 %v5257_v58  ;;  %v5353_v56 = vld [vmem:[#allocation7 + $0x300] ss:$16 sps:$4 sm:$0xff]  }
 0x1b9   :  { %3605 = vmatprep.subr.bf16.mxu0 %v5262_v4  ;;  %v5982_v24 = vpop.f32.mrf.mxu1  ;;  %v2155_v32 = vadd.f32 %v5907_v25, %v2082_v48 }
 0x1ba   :  { %v2217_v8 = vpop.f32.mrf.mxu0  ;;  %3559 = vmatpush2.bf16.msra.mxu1 %v5347_v19  ;;  %v2021_v19 = vadd.f32 %v5844_v39, %v1948_v42 }
 0x1bb   :  { %v2218_v57 = vadd.f32 %v2217_v8, %v2145_v41  ;;  %3560 = vmatprep.subr.bf16.mxu1 %v5352_v5  ;;  %v2170_v35 = vpop.f32.mrf.mxu1 }
 0x1bc   :  { %v2219_v20 = vpop.f32.mrf.mxu0 }
 0x1bd   :  { %v2220_v10 = vadd.f32 %v2219_v20, %v2147_v27  ;;  %v2621_v26 = vmax.f32 %v2218_v57, 0.0  ;;  %v5265_v27 = vld [vmem:[#allocation7 + $0xcc] ss:$16 sps:$4 sm:$0xff]   ;;  %v6010_v39 = vpop.f32.mrf.mxu1 }
 0x1be   :  { %v2221_v58 = vpop.f32.mrf.mxu0  ;;  %3561 = vmatpush2.bf16.msra.mxu1 %v5350_v2  ;;  %v5268_v57 = vld [vmem:[#allocation7 + $0xac] ss:$16 sps:$4 sm:$0xff]  }
 0x1bf   :  { %v2222_v4 = vadd.f32 %v2221_v58, %v2149_v21  ;;  %v2622_v8 = vmax.f32 %v2220_v10, 0.0  ;;  %3562 = vmatprep.subr.bf16.mxu1 %v5355_v0  ;;  %v2023_v21 = vadd.f32 %v5853_v40, %v1950_v53  ;;  %v2019_v58 = vadd.f32 %v5840_v36, %v1946_v16  ;;  %v2176_v54 = vpop.f32.mrf.mxu1 }
 0x1c0   :  { %v2223_v55 = vpop.f32.mrf.mxu0  ;;  %v2094_v40 = vadd.f32 %v5917_v49, %v2021_v19  ;;  %v1958_v36 = vadd.f32 %v5868_v60, %v5926_v59  ;;  %v2098_v49 = vadd.f32 %v5935_v3, %v2025_v11  ;;  %v1962_v60 = vadd.f32 %v5879_v6, %v5926_v59  ;;  %v6340_v3 = vld [vmem:[#allocation19_spill] sm:$0xff] }
 0x1c1   :  { %v2224_v23 = vadd.f32 %v2223_v55, %v2151_v15  ;;  %v2625_v17 = vmax.f32 %v2222_v4, 0.0  ;;  %v2096_v46 = vadd.f32 %v5921_v52, %v2023_v21  ;;  %v5263_v4 = vld [vmem:[#allocation7 + $0xc8] ss:$16 sps:$4 sm:$0xff]   ;;  %v2092_v44 = vadd.f32 %v5911_v51, %v2019_v58  ;;  %v2178_v0 = vpop.f32.mrf.mxu1 }
 0x1c2   :  { %v2227_v12 = vpop.f32.mrf.mxu0  ;;  %3563 = vmatpush2.bf16.msra.mxu1 %v5353_v56  ;;  %v1960_v55 = vadd.f32 %v5875_v63, %v5931_v18  ;;  %v2167_v51 = vadd.f32 %v5971_v9, %v2094_v40  ;;  %v5266_v63 = vld [vmem:[#allocation7 + $0xa8] ss:$16 sps:$4 sm:$0xff]   ;;  %v5271_v18 = vld [vmem:[#allocation7 + $0x8c] ss:$16 sps:$4 sm:$0xff]   ;;  %v2171_v6 = vadd.f32 %v2170_v35, %v2098_v49 }
 0x1c3   :  { %v2626_v28 = vmax.f32 %v2224_v23, 0.0  ;;  %v6003_v13 = vpack.c.bf16 %v2625_v17, %v2621_v26  ;;  %v2228_v25 = vadd.f32 %v2227_v12, %v2155_v32  ;;  %3678 = vmatprep.subr.bf16.mxu1 %v5358_v62  ;;  %v2169_v42 = vadd.f32 %v5982_v24, %v2096_v46  ;;  %v6342_v24 = vld [vmem:[#allocation18_spill] sm:$0xff] }
 0x1c4   :  { %v2229_v29 = vpop.f32.mrf.mxu0  ;;  %v2031_v17 = vadd.f32 %v6340_v3, %v1958_v36  ;;  %v2165_v12 = vadd.f32 %v5956_v43, %v2092_v44  ;;  %v6343_v43 = vld [vmem:[#allocation21_spill] sm:$0xff]  ;;  %v5269_v35 = vld [vmem:[#allocation7 + $0x88] ss:$16 sps:$4 sm:$0xff]  }
 0x1c5   :  { %v5999_v20 = vpack.c.bf16 %v2626_v28, %v2622_v8  ;;  %v2230_v41 = vadd.f32 %v2229_v29, %v2157_v47  ;;  %v2629_v31 = vmax.f32 %v2228_v25, 0.0  ;;  %v2033_v8 = vadd.f32 %v6341_v50, %v1960_v55  ;;  %v6344_v29 = vld [vmem:[#allocation25_spill] sm:$0xff]  ;;  %v5275_v55 = vld [vmem:[#allocation7 + $0x48] ss:$16 sps:$4 sm:$0xff]  }
 0x1c6   :  { %v2231_v30 = vpop.f32.mrf.mxu0  ;;  %v2029_v28 = vadd.f32 %v6342_v24, %v1956_v22  ;;  %v2035_v26 = vadd.f32 %v6343_v43, %v1962_v60  ;;  %v2104_v56 = vadd.f32 %v6344_v29, %v2031_v17  ;;  %v5286_v3 = vld [vmem:[#allocation7 + $0x1ec] ss:$16 sps:$4 sm:$0xff]   ;;  %v5284_v17 = vld [vmem:[#allocation7 + $0x1e8] ss:$16 sps:$4 sm:$0xff]  }
 0x1c7   :  { %v2232_v38 = vadd.f32 %v2231_v30, %v2159_v37  ;;  %3491 = vmatprep.mubr.bf16.mxu0 %v5999_v20  ;;  %v2630_v2 = vmax.f32 %v2230_v41, 0.0  ;;  %v2106_v47 = vadd.f32 %v5951_v7, %v2033_v8  ;;  %v5272_v7 = vld [vmem:[#allocation7 + $0x68] ss:$16 sps:$4 sm:$0xff]   ;;  %v5292_v8 = vld [vmem:[#allocation7 + $0x1ac] ss:$16 sps:$4 sm:$0xff]  }
 0x1c8   :  { %v2233_v15 = vpop.f32.mrf.mxu0  ;;  %3492 = vmatmul.mubr.bf16.vlgmr.msra.gmra.mxu0 %v6003_v13  ;;  %v2108_v21 = vadd.f32 %v5958_v34, %v2035_v26  ;;  %v2177_v11 = vadd.f32 %v2176_v54, %v2104_v56  ;;  %v5293_v24 = vld [vmem:[#allocation7 + $0x188] ss:$16 sps:$4 sm:$0xff]   ;;  %v5304_v29 = vld [vmem:[#allocation7 + $0x12c] ss:$16 sps:$4 sm:$0xff]  }
 0x1c9   :  { %v2234_v10 = vadd.f32 %v2233_v15, %v2161_v14  ;;  %3606 = vmatpush1.bf16.msra.mxu0 %v5260_v1  ;;  %v2633_v5 = vmax.f32 %v2232_v38, 0.0  ;;  %v6345_v1 = vld [vmem:[#allocation24_spill] sm:$0xff]  ;;  %v2180_v38 = vpop.f32.mrf.mxu1  ;;  %v2179_v25 = vadd.f32 %v2178_v0, %v2106_v47 }
 0x1ca   :  { %v2237_v33 = vpop.f32.mrf.mxu0  ;;  %3607 = vmatprep.subr.bf16.mxu0 %v5265_v27  ;;  %v2102_v19 = vadd.f32 %v6345_v1, %v2029_v28  ;;  %v5274_v27 = vld [vmem:[#allocation7 + $0x6c] ss:$16 sps:$4 sm:$0xff]   ;;  %v2181_v36 = vadd.f32 %v2180_v38, %v2108_v21  ;;  %v5299_v26 = vld [vmem:[#allocation7 + $0x148] ss:$16 sps:$4 sm:$0xff]  }
 0x1cb   :  { %v2634_v52 = vmax.f32 %v2234_v10, 0.0  ;;  %v6031_v53 = vpack.c.bf16 %v2633_v5, %v2629_v31  ;;  %v2238_v16 = vadd.f32 %v2237_v33, %v2165_v12  ;;  %v5278_v31 = vld [vmem:[#allocation7 + $0x28] ss:$16 sps:$4 sm:$0xff]   ;;  %v5298_v28 = vld [vmem:[#allocation7 + $0x16c] ss:$16 sps:$4 sm:$0xff]  }
 0x1cc   :  { %v2239_v23 = vpop.f32.mrf.mxu0  ;;  %v2175_v40 = vadd.f32 %v6010_v39, %v2102_v19  ;;  %v5280_v39 = vld [vmem:[#allocation7 + $0x2c] ss:$16 sps:$4 sm:$0xff]  }
 0x1cd   :  { %v6027_v48 = vpack.c.bf16 %v2634_v52, %v2630_v2  ;;  %3608 = vmatpush1.bf16.msra.mxu0 %v5263_v4  ;;  %v2240_v59 = vadd.f32 %v2239_v23, %v2167_v51  ;;  %v2637_v62 = vmax.f32 %v2238_v16, 0.0  ;;  %v5277_v4 = vld [vmem:[#allocation7 + $0x4c] ss:$16 sps:$4 sm:$0xff]   ;;  %v5296_v16 = vld [vmem:[#allocation7 + $0x168] ss:$16 sps:$4 sm:$0xff]  }
 0x1ce   :  { %v2241_v45 = vpop.f32.mrf.mxu0  ;;  %3609 = vmatprep.subr.bf16.mxu0 %v5268_v57  ;;  %v5283_v51 = vld [vmem:[#allocation7 + $0xc] ss:$16 sps:$4 sm:$0xff]  }
 0x1cf   :  { %v2242_v9 = vadd.f32 %v2241_v45, %v2169_v42  ;;  %3501 = vmatprep.mubr.bf16.mxu0 %v6027_v48  ;;  %v2638_v14 = vmax.f32 %v2240_v59, 0.0  ;;  %v5281_v42 = vld [vmem:[#allocation7 + $0x8] ss:$16 sps:$4 sm:$0xff]   ;;  %v5289_v45 = vld [vmem:[#allocation7 + $0x1cc] ss:$16 sps:$4 sm:$0xff]  }
 0x1d0   :  { %v2243_v61 = vpop.f32.mrf.mxu0  ;;  %3502 = vmatmul.mubr.bf16.gmra.mxu0 %v6031_v53  ;;  %v5295_v59 = vld [vmem:[#allocation7 + $0x18c] ss:$16 sps:$4 sm:$0xff]  }
 0x1d1   :  { %v2244_v37 = vadd.f32 %v2243_v61, %v2171_v6  ;;  %3610 = vmatpush1.bf16.msra.mxu0 %v5266_v63  ;;  %v2641_v32 = vmax.f32 %v2242_v9, 0.0  ;;  %v5301_v61 = vld [vmem:[#allocation7 + $0x14c] ss:$16 sps:$4 sm:$0xff]  }
 0x1d2   :  { %v2247_v30 = vpop.f32.mrf.mxu0  ;;  %3611 = vmatprep.subr.bf16.mxu0 %v5271_v18  ;;  %v5287_v18 = vld [vmem:[#allocation7 + $0x1c8] ss:$16 sps:$4 sm:$0xff]  }
 0x1d3   :  { %v2642_v41 = vmax.f32 %v2244_v37, 0.0  ;;  %v6045_v46 = vpack.c.bf16 %v2641_v32, %v2637_v62  ;;  %v2248_v5 = vadd.f32 %v2247_v30, %v2175_v40  ;;  %v5302_v37 = vld [vmem:[#allocation7 + $0x128] ss:$16 sps:$4 sm:$0xff]  }
 0x1d4   :  { %v2249_v58 = vpop.f32.mrf.mxu0  ;;  %v5305_v32 = vld [vmem:[#allocation7 + $0x108] ss:$16 sps:$4 sm:$0xff]  }
 0x1d5   :  { %v6042_v15 = vpack.c.bf16 %v2642_v41, %v2638_v14  ;;  %3612 = vmatpush1.bf16.msra.mxu0 %v5269_v35  ;;  %v2250_v34 = vadd.f32 %v2249_v58, %v2177_v11  ;;  %v2645_v22 = vmax.f32 %v2248_v5, 0.0  ;;  %v5307_v35 = vld [vmem:[#allocation7 + $0x10c] ss:$16 sps:$4 sm:$0xff]  }
 0x1d6   :  { %v2251_v10 = vpop.f32.mrf.mxu0  ;;  %3613 = vmatprep.subr.bf16.mxu0 %v5274_v27 }
 0x1d7   :  { %v2252_v44 = vadd.f32 %v2251_v10, %v2179_v25  ;;  %3511 = vmatprep.mubr.bf16.mxu0 %v6042_v15  ;;  %v2646_v2 = vmax.f32 %v2250_v34, 0.0 }
 0x1d8   :  { %v2253_v33 = vpop.f32.mrf.mxu0  ;;  %3512 = vmatmul.mubr.bf16.gmra.mxu0 %v6045_v46 }
 0x1d9   :  { %v2254_v57 = vadd.f32 %v2253_v33, %v2181_v36  ;;  %3614 = vmatpush1.bf16.msra.mxu0 %v5272_v7  ;;  %v2649_v49 = vmax.f32 %v2252_v44, 0.0 }
 0x1da   :  { %3615 = vmatprep.subr.bf16.mxu0 %v5277_v4 }
 0x1db   :  { %v2650_v52 = vmax.f32 %v2254_v57, 0.0  ;;  %v6051_v23 = vpack.c.bf16 %v2649_v49, %v2645_v22  ;;  %v6053_v60 = vpop.f32.mrf.mxu1 }
 0x1dd   :  { %v6049_v54 = vpack.c.bf16 %v2650_v52, %v2646_v2  ;;  %3616 = vmatpush1.bf16.msra.mxu0 %v5275_v55  ;;  %v6058_v63 = vpop.f32.mrf.mxu1  ;;  %v6346_v2 = vld [vmem:[#allocation22_spill] sm:$0xff] }
 0x1de   :  { %3617 = vmatprep.subr.bf16.mxu0 %v5280_v39  ;;  %v6330_v52 = vsub.s32 3, %v6346_v2  ;;  %v6329_v22 = vsub.s32 2, %v6346_v2 }
 0x1df   :  { %3521 = vmatprep.mubr.bf16.mxu0 %v6049_v54  ;;  %v6060_v12 = vpop.f32.mrf.mxu1 }
 0x1e0   :  { %3522 = vmatmul.mubr.bf16.gmra.mxu0 %v6051_v23 }
 0x1e1   :  { %3618 = vmatpush1.bf16.msra.mxu0 %v5278_v31  ;;  %3637 = vmatprep.mubr.bf16.mxu0 %v5999_v20  ;;  %v6062_v50 = vpop.f32.mrf.mxu1  ;;  %v5290_v20 = vld [vmem:[#allocation7 + $0x1a8] ss:$16 sps:$4 sm:$0xff]  }
 0x1e2   :  { %3619 = vmatprep.subr.bf16.mxu0 %v5283_v51  ;;  %v6347_v51 = vld [vmem:[#allocation23_spill] sm:$0xff] }
 0x1e3   :  { %v6064_v6 = vpop.f32.mrf.mxu1 }
 0x1e5   :  { %3620 = vmatpush1.bf16.msra.mxu0 %v5281_v42  ;;  %v6066_v9 = vpop.f32.mrf.mxu1  ;;  %v6136_v42 = vrot.slane %v6347_v51, %v6330_v52 }
 0x1e6   :  { %3621 = vmatprep.subr.bf16.mxu0 %v5286_v3  ;;  %v6141_v3 = vrot.slane %v6347_v51, %v6329_v22 }
 0x1e7   :  { %v6068_v0 = vpop.f32.mrf.mxu1  ;;  %v2303_v52 = vadd.f32 %v6066_v9, %v6136_v42 }
 0x1e9   :  { %3622 = vmatpush2.bf16.msra.mxu0 %v5284_v17  ;;  %v6070_v43 = vpop.f32.mrf.mxu1 }
 0x1ea   :  { %3623 = vmatprep.subr.bf16.mxu0 %v5289_v45 }
 0x1eb   :  { %v6074_v47 = vpop.f32.mrf.mxu1 }
 0x1ed   :  { %3624 = vmatpush2.bf16.msra.mxu0 %v5287_v18  ;;  %v6076_v19 = vpop.f32.mrf.mxu1 }
 0x1ee   :  { %3625 = vmatprep.subr.bf16.mxu0 %v5292_v8  ;;  %v2293_v8 = vadd.f32 %v6058_v63, %v6136_v42 }
 0x1ef   :  { %v6078_v27 = vpop.f32.mrf.mxu1 }
 0x1f1   :  { %3626 = vmatpush2.bf16.msra.mxu0 %v5290_v20  ;;  %v6081_v14 = vpop.f32.mrf.mxu1  ;;  %v2291_v20 = vadd.f32 %v6053_v60, %v6141_v3 }
 0x1f2   :  { %3627 = vmatprep.subr.bf16.mxu0 %v5295_v59 }
 0x1f3   :  { %v6086_v38 = vpop.f32.mrf.mxu1 }
 0x1f5   :  { %3628 = vmatpush2.bf16.msra.mxu0 %v5293_v24  ;;  %v6091_v58 = vpop.f32.mrf.mxu1 }
 0x1f6   :  { %3629 = vmatprep.subr.bf16.mxu0 %v5298_v28  ;;  %v2295_v28 = vadd.f32 %v6060_v12, %v6141_v3  ;;  %v2301_v12 = vadd.f32 %v6064_v6, %v6141_v3  ;;  %v2307_v6 = vadd.f32 %v6070_v43, %v6136_v42 }
 0x1f7   :  { %v6096_v25 = vpop.f32.mrf.mxu1 }
 0x1f9   :  { %3630 = vmatpush2.bf16.msra.mxu0 %v5296_v16  ;;  %v6100_v7 = vpop.f32.mrf.mxu1 }
 0x1fa   :  { %3631 = vmatprep.subr.bf16.mxu0 %v5301_v61  ;;  %v6072_v56 = vpop.f32.mrf.mxu0 }
 0x1fb   :  { %v2364_v61 = vadd.f32 %v6072_v56, %v2291_v20 }
 0x1fc   :  { %v2365_v1 = vpop.f32.mrf.mxu0 }
 0x1fd   :  { %3632 = vmatpush2.bf16.msra.mxu0 %v5299_v26  ;;  %v2366_v16 = vadd.f32 %v2365_v1, %v2293_v8 }
 0x1fe   :  { %3633 = vmatprep.subr.bf16.mxu0 %v5304_v29  ;;  %v2367_v30 = vpop.f32.mrf.mxu0 }
 0x200   :  { %v2369_v21 = vpop.f32.mrf.mxu0 }
 0x201   :  { %3634 = vmatpush2.bf16.msra.mxu0 %v5302_v37  ;;  %v2297_v37 = vadd.f32 %v6062_v50, %v6136_v42  ;;  %v2305_v50 = vadd.f32 %v6068_v0, %v6141_v3 }
 0x202   :  { %3635 = vmatprep.subr.bf16.mxu0 %v5307_v35  ;;  %v6084_v41 = vpop.f32.mrf.mxu0  ;;  %v2368_v35 = vadd.f32 %v2367_v30, %v2295_v28 }
 0x203   :  { %v2370_v22 = vadd.f32 %v2369_v21, %v2297_v37 }
 0x204   :  { %v6088_v62 = vpop.f32.mrf.mxu0 }
 0x205   :  { %3636 = vmatpush2.bf16.msra.mxu0 %v5305_v32  ;;  %v2376_v21 = vadd.f32 %v6088_v62, %v2303_v52  ;;  %v2313_v62 = vadd.f32 %v6076_v19, %v6136_v42 }
 0x206   :  { %v6094_v11 = vpop.f32.mrf.mxu0 }
 0x208   :  { %3638 = vmatmul.mubr.bf16.vlgmr.msra.gmra.mxu0 %v6003_v13  ;;  %v6098_v13 = vpop.f32.mrf.mxu0 }
 0x209   :  { %3647 = vmatprep.mubr.bf16.mxu0 %v6027_v48 }
 0x20a   :  { %v6104_v40 = vpop.f32.mrf.mxu0 }
 0x20c   :  { %v6106_v4 = vpop.f32.mrf.mxu0 }
 0x20e   :  { %v6109_v34 = vpop.f32.mrf.mxu0 }
 0x210   :  { %3648 = vmatmul.mubr.bf16.gmra.mxu0 %v6031_v53  ;;  %v6113_v33 = vpop.f32.mrf.mxu0 }
 0x211   :  { %3657 = vmatprep.mubr.bf16.mxu0 %v6042_v15 }
 0x212   :  { %v6119_v55 = vpop.f32.mrf.mxu0 }
 0x218   :  { %3658 = vmatmul.mubr.bf16.gmra.mxu0 %v6045_v46 }
 0x219   :  { %3667 = vmatprep.mubr.bf16.mxu0 %v6049_v54  ;;  %v6127_v54 = vpop.f32.mrf.mxu0 }
 0x21b   :  { %v2436_v48 = vpop.f32.mrf.mxu1  ;;  %v6143_v17 = vpop.f32.mrf.mxu0 }
 0x21c   :  { %v2437_v32 = vadd.f32 %v2436_v48, %v2364_v61 }
 0x21d   :  { %v2438_v53 = vpop.f32.mrf.mxu1  ;;  %v6153_v59 = vpop.f32.mrf.mxu0 }
 0x21e   :  { %v2439_v63 = vadd.f32 %v2438_v53, %v2366_v16 }
 0x21f   :  { %v2440_v10 = vpop.f32.mrf.mxu1 }
 0x220   :  { %3668 = vmatmul.mubr.bf16.gmra.mxu0 %v6051_v23  ;;  %v2441_v2 = vadd.f32 %v2440_v10, %v2368_v35  ;;  %v2374_v10 = vadd.f32 %v6084_v41, %v2301_v12  ;;  %v2378_v35 = vadd.f32 %v6094_v11, %v2305_v50 }
 0x221   :  { %v2442_v15 = vpop.f32.mrf.mxu1 }
 0x222   :  { %v2443_v30 = vadd.f32 %v2442_v15, %v2370_v22 }
 0x223   :  { %v2446_v36 = vpop.f32.mrf.mxu1 }
 0x224   :  { %v2447_v52 = vadd.f32 %v2446_v36, %v2374_v10 }
 0x225   :  { %v2448_v44 = vpop.f32.mrf.mxu1 }
 0x226   :  { %v2449_v0 = vadd.f32 %v2448_v44, %v2376_v21 }
 0x227   :  { %v6111_v5 = vpop.f32.mrf.mxu1 }
 0x228   :  { %v2451_v41 = vadd.f32 %v6111_v5, %v2378_v35 }
 0x229   :  { %v6115_v46 = vpop.f32.mrf.mxu1 }
 0x22b   :  { %v6117_v57 = vpop.f32.mrf.mxu1 }
 0x22d   :  { %v6121_v49 = vpop.f32.mrf.mxu1 }
 0x22f   :  { %v6123_v39 = vpop.f32.mrf.mxu1 }
 0x231   :  { %v6129_v31 = vpop.f32.mrf.mxu1 }
 0x233   :  { %v6131_v23 = vpop.f32.mrf.mxu1 }
 0x235   :  { %v6145_v45 = vpop.f32.mrf.mxu1 }
 0x237   :  { %v6147_v18 = vpop.f32.mrf.mxu1 }
 0x239   :  { %v6155_v24 = vpop.f32.mrf.mxu1 }
 0x23a   :  { %6348 = vst [vmem:[#allocation19_spill] sm:$0xff] %v6155_v24  ;;  %v2509_v26 = vpop.f32.mrf.mxu0 }
 0x23b   :  { %v2582_v29 = vpop.f32.mrf.mxu1  ;;  %v2510_v56 = vadd.f32 %v2509_v26, %v2437_v32 }
 0x23c   :  { %v2511_v51 = vpop.f32.mrf.mxu0 }
 0x23d   :  { %v2584_v60 = vpop.f32.mrf.mxu1  ;;  %v2512_v24 = vadd.f32 %v2511_v51, %v2439_v63  ;;  %v2583_v61 = vadd.f32 %v2582_v29, %v2510_v56  ;;  %v2311_v51 = vadd.f32 %v6074_v47, %v6141_v3  ;;  %v2386_v47 = vadd.f32 %v6106_v4, %v2313_v62 }
 0x23e   :  { %v2513_v1 = vpop.f32.mrf.mxu0  ;;  %v2321_v62 = vadd.f32 %v6086_v38, %v6141_v3  ;;  %v5367_v38 = vld [vmem:[#allocation7 + $0x28c] ss:$16 sps:$4 sm:$0xff]  }
 0x23f   :  { %v2586_v8 = vpop.f32.mrf.mxu1  ;;  %v2514_v53 = vadd.f32 %v2513_v1, %v2441_v2  ;;  %v2585_v28 = vadd.f32 %v2584_v60, %v2512_v24  ;;  %v2380_v2 = vadd.f32 %v6098_v13, %v2307_v6  ;;  %v2623_v11 = vmax.f32 %v2583_v61, 0.0  ;;  %v5356_v1 = vld [vmem:[#allocation7 + $0x2e8] ss:$16 sps:$4 sm:$0xff]  }
 0x240   :  { %v2515_v48 = vpop.f32.mrf.mxu0  ;;  %v2315_v13 = vadd.f32 %v6078_v27, %v6141_v3  ;;  %v2384_v27 = vadd.f32 %v6104_v40, %v2311_v51  ;;  %v2459_v10 = vadd.f32 %v6121_v49, %v2386_v47  ;;  %v5359_v6 = vld [vmem:[#allocation7 + $0x2c8] ss:$16 sps:$4 sm:$0xff]   ;;  %v2323_v40 = vadd.f32 %v6091_v58, %v6136_v42 }
 0x241   :  { %v2588_v20 = vpop.f32.mrf.mxu1  ;;  %v2587_v16 = vadd.f32 %v2586_v8, %v2514_v53  ;;  %v2516_v9 = vadd.f32 %v2515_v48, %v2443_v30  ;;  %v2624_v32 = vmax.f32 %v2585_v28, 0.0  ;;  %v2453_v19 = vadd.f32 %v6115_v46, %v2380_v2  ;;  %v5361_v30 = vld [vmem:[#allocation7 + $0x2cc] ss:$16 sps:$4 sm:$0xff]  }
 0x242   :  { %v2519_v26 = vpop.f32.mrf.mxu0  ;;  %v2317_v46 = vadd.f32 %v6081_v14, %v6136_v42  ;;  %v2325_v58 = vadd.f32 %v6096_v25, %v6141_v3  ;;  %v2396_v51 = vadd.f32 %v6127_v54, %v2323_v40  ;;  %v2394_v25 = vadd.f32 %v6119_v55, %v2321_v62  ;;  %v5374_v62 = vld [vmem:[#allocation7 + $0x228] ss:$16 sps:$4 sm:$0xff]  }
 0x243   :  { %v2592_v37 = vpop.f32.mrf.mxu1  ;;  %v2589_v15 = vadd.f32 %v2588_v20, %v2516_v9  ;;  %v2627_v22 = vmax.f32 %v2587_v16, 0.0  ;;  %v2520_v44 = vadd.f32 %v2519_v26, %v2447_v52  ;;  %v2388_v9 = vadd.f32 %v6109_v34, %v2315_v13 }
 0x244   :  { %v2521_v24 = vpop.f32.mrf.mxu0  ;;  %v2390_v61 = vadd.f32 %v6113_v33, %v2317_v46  ;;  %v2457_v26 = vadd.f32 %v6117_v57, %v2384_v27 }
 0x245   :  { %v2594_v63 = vpop.f32.mrf.mxu1  ;;  %v2628_v43 = vmax.f32 %v2589_v15, 0.0  ;;  %v2522_v29 = vadd.f32 %v2521_v24, %v2449_v0  ;;  %v6184_v5 = vpack.c.bf16 %v2627_v22, %v2623_v11  ;;  %v2593_v21 = vadd.f32 %v2592_v37, %v2520_v44  ;;  %v5364_v0 = vld [vmem:[#allocation7 + $0x2ac] ss:$16 sps:$4 sm:$0xff]  }
 0x246   :  { %v2523_v60 = vpop.f32.mrf.mxu0  ;;  %v2461_v15 = vadd.f32 %v6123_v39, %v2388_v9  ;;  %v2463_v57 = vadd.f32 %v6129_v31, %v2390_v61  ;;  %v5362_v39 = vld [vmem:[#allocation7 + $0x2a8] ss:$16 sps:$4 sm:$0xff]   ;;  %v2327_v31 = vadd.f32 %v6100_v7, %v6136_v42  ;;  %v5370_v42 = vld [vmem:[#allocation7 + $0x26c] ss:$16 sps:$4 sm:$0xff]  }
 0x247   :  { %v2596_v12 = vpop.f32.mrf.mxu1  ;;  %v6182_v36 = vpack.c.bf16 %v2628_v43, %v2624_v32  ;;  %v2524_v56 = vadd.f32 %v2523_v60, %v2451_v41  ;;  %v2595_v53 = vadd.f32 %v2594_v63, %v2522_v29  ;;  %v2631_v52 = vmax.f32 %v2593_v21, 0.0  ;;  %v6349_v21 = vld [vmem:[#allocation19_spill] sm:$0xff] }
 0x248   :  { %v2525_v8 = vpop.f32.mrf.mxu0 }
 0x249   :  { %v2598_v50 = vpop.f32.mrf.mxu1  ;;  %v2526_v48 = vadd.f32 %v2525_v8, %v2453_v19  ;;  %v2597_v20 = vadd.f32 %v2596_v12, %v2524_v56  ;;  %3564 = vmatprep.mubr.bf16.mxu1 %v6182_v36  ;;  %v2632_v34 = vmax.f32 %v2595_v53, 0.0  ;;  %v2398_v19 = vadd.f32 %v6143_v17, %v2325_v58  ;;  %v5380_v58 = vld [vmem:[#allocation7 + $0x3e8] ss:$16 sps:$4 sm:$0xff]  }
 0x24a   :  { %v2529_v28 = vpop.f32.mrf.mxu0  ;;  %3565 = vmatmul.mubr.bf16.vlgmr.msra.gmra.mxu1 %v6184_v5  ;;  %v2469_v56 = vadd.f32 %v6145_v45, %v2396_v51  ;;  %v2400_v8 = vadd.f32 %v6153_v59, %v2327_v31  ;;  %v5408_v51 = vld [vmem:[#allocation10 + $0x68] sm:$0xff]   ;;  %v5411_v31 = vld [vmem:[#allocation10 + $0x20] sm:$0xff]  }
 0x24b   :  { %v2602_v16 = vpop.f32.mrf.mxu1  ;;  %v2599_v4 = vadd.f32 %v2598_v50, %v2526_v48  ;;  %3679 = vmatpush1.bf16.msra.mxu1 %v5356_v1  ;;  %v2635_v14 = vmax.f32 %v2597_v20, 0.0  ;;  %v2530_v33 = vadd.f32 %v2529_v28, %v2457_v26  ;;  %v5365_v1 = vld [vmem:[#allocation7 + $0x288] ss:$16 sps:$4 sm:$0xff]   ;;  %v2467_v50 = vadd.f32 %v6131_v23, %v2394_v25  ;;  %v5391_v25 = vld [vmem:[#allocation7 + $0x38c] ss:$16 sps:$4 sm:$0xff]  }
 0x24c   :  { %v2531_v37 = vpop.f32.mrf.mxu0  ;;  %3680 = vmatprep.subr.bf16.mxu1 %v5361_v30  ;;  %v2471_v47 = vadd.f32 %v6147_v18, %v2398_v19  ;;  %v2473_v28 = vadd.f32 %v6349_v21, %v2400_v8  ;;  %v5368_v23 = vld [vmem:[#allocation7 + $0x268] ss:$16 sps:$4 sm:$0xff]   ;;  %v5373_v18 = vld [vmem:[#allocation7 + $0x24c] ss:$16 sps:$4 sm:$0xff]  }
 0x24d   :  { %v2604_v35 = vpop.f32.mrf.mxu1  ;;  %v2636_v2 = vmax.f32 %v2599_v4, 0.0  ;;  %v2532_v49 = vadd.f32 %v2531_v37, %v2459_v10  ;;  %v6206_v32 = vpack.c.bf16 %v2635_v14, %v2631_v52  ;;  %v2603_v3 = vadd.f32 %v2602_v16, %v2530_v33  ;;  %v5371_v37 = vld [vmem:[#allocation7 + $0x248] ss:$16 sps:$4 sm:$0xff]   ;;  %v5379_v33 = vld [vmem:[#allocation7 + $0x20c] ss:$16 sps:$4 sm:$0xff]  }
 0x24e   :  { %v2533_v22 = vpop.f32.mrf.mxu0  ;;  %v5413_v19 = vld [vmem:[#allocation10 + $0x18] sm:$0xff]   ;;  %v5427_v21 = vld [vmem:[#allocation10 + $0xa0] sm:$0xff]  }
 0x24f   :  { %v2606_v24 = vpop.f32.mrf.mxu1  ;;  %v6204_v63 = vpack.c.bf16 %v2636_v2, %v2632_v34  ;;  %v2534_v41 = vadd.f32 %v2533_v22, %v2461_v15  ;;  %3681 = vmatpush1.bf16.msra.mxu1 %v5359_v6  ;;  %v2605_v11 = vadd.f32 %v2604_v35, %v2532_v49  ;;  %v2639_v17 = vmax.f32 %v2603_v3, 0.0  ;;  %v5377_v22 = vld [vmem:[#allocation7 + $0x208] ss:$16 sps:$4 sm:$0xff]   ;;  %v5400_v8 = vld [vmem:[#allocation7 + $0x32c] ss:$16 sps:$4 sm:$0xff]  }
 0x250   :  { %v2535_v43 = vpop.f32.mrf.mxu0  ;;  %3682 = vmatprep.subr.bf16.mxu1 %v5364_v0  ;;  %v5376_v0 = vld [vmem:[#allocation7 + $0x22c] ss:$16 sps:$4 sm:$0xff]   ;;  %v5389_v3 = vld [vmem:[#allocation7 + $0x388] ss:$16 sps:$4 sm:$0xff]  }
 0x251   :  { %v2608_v29 = vpop.f32.mrf.mxu1  ;;  %v2536_v44 = vadd.f32 %v2535_v43, %v2463_v57  ;;  %v2607_v60 = vadd.f32 %v2606_v24, %v2534_v41  ;;  %3574 = vmatprep.mubr.bf16.mxu1 %v6204_v63  ;;  %v2640_v53 = vmax.f32 %v2605_v11, 0.0  ;;  %v5382_v24 = vld [vmem:[#allocation7 + $0x3ec] ss:$16 sps:$4 sm:$0xff]  }
 0x252   :  { %v2539_v12 = vpop.f32.mrf.mxu0  ;;  %3575 = vmatmul.mubr.bf16.gmra.mxu1 %v6206_v32  ;;  %v5404_v57 = vld [vmem:[#allocation10 + $0x78] sm:$0xff]  }
 0x253   :  { %v2612_v13 = vpop.f32.mrf.mxu1  ;;  %v2609_v54 = vadd.f32 %v2608_v29, %v2536_v44  ;;  %3683 = vmatpush1.bf16.msra.mxu1 %v5362_v39  ;;  %v2643_v55 = vmax.f32 %v2607_v60, 0.0  ;;  %v2540_v27 = vadd.f32 %v2539_v12, %v2467_v50  ;;  %v5405_v41 = vld [vmem:[#allocation10 + $0x38] sm:$0xff]   ;;  %v5406_v39 = vld [vmem:[#allocation10 + $0x70] sm:$0xff]   ;;  %4710 = vmatprep.subr.bf16.mxu0 %v5404_v57  ;;  %v5410_v60 = vld [vmem:[#allocation10 + $0x60] sm:$0xff]  }
 0x254   :  { %v2541_v30 = vpop.f32.mrf.mxu0  ;;  %3684 = vmatprep.subr.bf16.mxu1 %v5367_v38  ;;  %v5385_v43 = vld [vmem:[#allocation7 + $0x3cc] ss:$16 sps:$4 sm:$0xff]   ;;  %4711 = vmatpush3.bf16.msra.mxu0 %v5405_v41  ;;  %v5407_v29 = vld [vmem:[#allocation10 + $0x30] sm:$0xff]  }
 0x255   :  { %v2614_v7 = vpop.f32.mrf.mxu1  ;;  %v2644_v48 = vmax.f32 %v2609_v54, 0.0  ;;  %v2542_v20 = vadd.f32 %v2541_v30, %v2469_v56  ;;  %v6222_v9 = vpack.c.bf16 %v2643_v55, %v2639_v17  ;;  %v2613_v26 = vadd.f32 %v2612_v13, %v2540_v27  ;;  %v5383_v38 = vld [vmem:[#allocation7 + $0x3c8] ss:$16 sps:$4 sm:$0xff]   ;;  %4712 = vmatprep.subr.bf16.mxu0 %v5406_v39  ;;  %v5388_v11 = vld [vmem:[#allocation7 + $0x3ac] ss:$16 sps:$4 sm:$0xff]  }
 0x256   :  { %v2543_v45 = vpop.f32.mrf.mxu0  ;;  %v5386_v44 = vld [vmem:[#allocation7 + $0x3a8] ss:$16 sps:$4 sm:$0xff]   ;;  %v5412_v12 = vld [vmem:[#allocation10 + $0x58] sm:$0xff]  }
 0x257   :  { %v2616_v46 = vpop.f32.mrf.mxu1  ;;  %v6220_v16 = vpack.c.bf16 %v2644_v48, %v2640_v53  ;;  %v2544_v59 = vadd.f32 %v2543_v45, %v2471_v47  ;;  %3685 = vmatpush1.bf16.msra.mxu1 %v5365_v1  ;;  %v2615_v6 = vadd.f32 %v2614_v7, %v2542_v20  ;;  %v2647_v2 = vmax.f32 %v2613_v26, 0.0  ;;  %v5394_v13 = vld [vmem:[#allocation7 + $0x36c] ss:$16 sps:$4 sm:$0xff]   ;;  %v5392_v56 = vld [vmem:[#allocation7 + $0x368] ss:$16 sps:$4 sm:$0xff]  }
 0x258   :  { %v2545_v10 = vpop.f32.mrf.mxu0  ;;  %3686 = vmatprep.subr.bf16.mxu1 %v5370_v42  ;;  %4713 = vmatpush3.bf16.msra.mxu0 %v5407_v29  ;;  %v5397_v54 = vld [vmem:[#allocation7 + $0x34c] ss:$16 sps:$4 sm:$0xff]   ;;  %v5395_v1 = vld [vmem:[#allocation7 + $0x348] ss:$16 sps:$4 sm:$0xff]  }
 0x259   :  { %v2618_v4 = vpop.f32.mrf.mxu1  ;;  %v2546_v61 = vadd.f32 %v2545_v10, %v2473_v28  ;;  %v2617_v40 = vadd.f32 %v2616_v46, %v2544_v59  ;;  %3584 = vmatprep.mubr.bf16.mxu1 %v6220_v16  ;;  %v2648_v15 = vmax.f32 %v2615_v6, 0.0  ;;  %4714 = vmatprep.subr.bf16.mxu0 %v5408_v51  ;;  %v5398_v50 = vld [vmem:[#allocation7 + $0x328] ss:$16 sps:$4 sm:$0xff]   ;;  %v5403_v55 = vld [vmem:[#allocation7 + $0x30c] ss:$16 sps:$4 sm:$0xff]  }
 0x25a   :  { %3585 = vmatmul.mubr.bf16.gmra.mxu1 %v6222_v9  ;;  %v5401_v30 = vld [vmem:[#allocation7 + $0x308] ss:$16 sps:$4 sm:$0xff]   ;;  %v5416_v47 = vld [vmem:[#allocation10 + $0x48] sm:$0xff]   ;;  %v5428_v28 = vld [vmem:[#allocation10 + $0xd8] sm:$0xff]  }
 0x25b   :  { %v2619_v14 = vadd.f32 %v2618_v4, %v2546_v61  ;;  %3687 = vmatpush1.bf16.msra.mxu1 %v5368_v23  ;;  %v2651_v35 = vmax.f32 %v2617_v40, 0.0  ;;  %v5414_v7 = vld [vmem:[#allocation10 + $0x50] sm:$0xff]   ;;  %v5417_v53 = vld [vmem:[#allocation10 + $0x8] sm:$0xff]   ;;  %v5418_v48 = vld [vmem:[#allocation10 + $0x40] sm:$0xff]  }
 0x25c   :  { %3688 = vmatprep.subr.bf16.mxu1 %v5373_v18  ;;  %v5415_v42 = vld [vmem:[#allocation10 + $0x10] sm:$0xff]   ;;  %v5419_v20 = vld [vmem:[#allocation10] sm:$0xff]   ;;  %v5425_v45 = vld [vmem:[#allocation10 + $0xa8] sm:$0xff]  }
 0x25d   :  { %v2652_v34 = vmax.f32 %v2619_v14, 0.0  ;;  %v6228_v52 = vpack.c.bf16 %v2651_v35, %v2647_v2  ;;  %v5422_v17 = vld [vmem:[#allocation10 + $0xf0] sm:$0xff]   ;;  %v5426_v46 = vld [vmem:[#allocation10 + $0xe0] sm:$0xff]   ;;  %v5433_v10 = vld [vmem:[#allocation10 + $0x88] sm:$0xff]  }
 0x25e   :  { %v5423_v27 = vld [vmem:[#allocation10 + $0xb0] sm:$0xff]   ;;  %v5434_v4 = vld [vmem:[#allocation10 + $0xc0] sm:$0xff]  }
 0x25f   :  { %v6226_v49 = vpack.c.bf16 %v2652_v34, %v2648_v15  ;;  %3689 = vmatpush1.bf16.msra.mxu1 %v5371_v37  ;;  %v5430_v59 = vld [vmem:[#allocation10 + $0xd0] sm:$0xff]   ;;  %v5435_v18 = vld [vmem:[#allocation10 + $0x80] sm:$0xff]   ;;  %v6240_v15 = vld [vmem:[#allocation9] sm:$0xf] }
 0x260   :  { %3690 = vmatprep.subr.bf16.mxu1 %v5376_v0  ;;  %v5431_v23 = vld [vmem:[#allocation10 + $0x90] sm:$0xff]   ;;  %v6350_v2 = vld [vmem:[#allocation22_spill] sm:$0xff] }
 0x261   :  { %3594 = vmatprep.mubr.bf16.mxu1 %v6226_v49 }
 0x262   :  { %3595 = vmatmul.mubr.bf16.gmra.mxu1 %v6228_v52 }
 0x263   :  { %3691 = vmatpush1.bf16.msra.mxu1 %v5374_v62  ;;  %3710 = vmatprep.mubr.bf16.mxu1 %v6182_v36  ;;  %v5409_v36 = vld [vmem:[#allocation10 + $0x28] sm:$0xff]  }
 0x264   :  { %3692 = vmatprep.subr.bf16.mxu1 %v5379_v33  ;;  %4715 = vmatpush3.bf16.msra.mxu0 %v5409_v36 }
 0x265   :  { %4716 = vmatprep.subr.bf16.mxu0 %v5410_v60 }
 0x267   :  { %3693 = vmatpush1.bf16.msra.mxu1 %v5377_v22 }
 0x268   :  { %3694 = vmatprep.subr.bf16.mxu1 %v5382_v24  ;;  %4717 = vmatpush3.bf16.msra.mxu0 %v5411_v31 }
 0x269   :  { %4718 = vmatprep.subr.bf16.mxu0 %v5412_v12 }
 0x26b   :  { %3695 = vmatpush2.bf16.msra.mxu1 %v5380_v58 }
 0x26c   :  { %3696 = vmatprep.subr.bf16.mxu1 %v5385_v43  ;;  %4719 = vmatpush3.bf16.msra.mxu0 %v5413_v19 }
 0x26d   :  { %4720 = vmatprep.subr.bf16.mxu0 %v5414_v7 }
 0x26f   :  { %3697 = vmatpush2.bf16.msra.mxu1 %v5383_v38 }
 0x270   :  { %3698 = vmatprep.subr.bf16.mxu1 %v5388_v11  ;;  %4721 = vmatpush3.bf16.msra.mxu0 %v5415_v42 }
 0x271   :  { %4722 = vmatprep.subr.bf16.mxu0 %v5416_v47 }
 0x273   :  { %3699 = vmatpush2.bf16.msra.mxu1 %v5386_v44 }
 0x274   :  { %3700 = vmatprep.subr.bf16.mxu1 %v5391_v25  ;;  %4723 = vmatpush3.bf16.msra.mxu0 %v5417_v53 }
 0x275   :  { %4724 = vmatprep.subr.bf16.mxu0 %v5418_v48 }
 0x277   :  { %3701 = vmatpush2.bf16.msra.mxu1 %v5389_v3 }
 0x278   :  { %3702 = vmatprep.subr.bf16.mxu1 %v5394_v13  ;;  %4725 = vmatpush3.bf16.msra.mxu0 %v5419_v20 }
 0x27b   :  { %3703 = vmatpush2.bf16.msra.mxu1 %v5392_v56 }
 0x27c   :  { %3704 = vmatprep.subr.bf16.mxu1 %v5397_v54 }
 0x27f   :  { %3705 = vmatpush2.bf16.msra.mxu1 %v5395_v1 }
 0x280   :  { %3706 = vmatprep.subr.bf16.mxu1 %v5400_v8 }
 0x283   :  { %3707 = vmatpush2.bf16.msra.mxu1 %v5398_v50 }
 0x284   :  { %3708 = vmatprep.subr.bf16.mxu1 %v5403_v55 }
 0x287   :  { %3709 = vmatpush2.bf16.msra.mxu1 %v5401_v30 }
 0x288   :  { %v3493_v6 = vpop.f32.mrf.mxu0 }
 0x28a   :  { %3711 = vmatmul.mubr.bf16.vlgmr.msra.gmra.mxu1 %v6184_v5  ;;  %v5420_v5 = vld [vmem:[#allocation10 + $0xf8] sm:$0xff]   ;;  %v3495_v61 = vpop.f32.mrf.mxu0 }
 0x28b   :  { %3720 = vmatprep.mubr.bf16.mxu1 %v6204_v63  ;;  %v5421_v63 = vld [vmem:[#allocation10 + $0xb8] sm:$0xff]   ;;  %4750 = vmatprep.subr.bf16.mxu1 %v5420_v5 }
 0x28c   :  { %4751 = vmatpush3.bf16.msra.mxu1 %v5421_v63  ;;  %v3497_v40 = vpop.f32.mrf.mxu0 }
 0x28d   :  { %4752 = vmatprep.subr.bf16.mxu1 %v5422_v17 }
 0x28e   :  { %v3499_v26 = vpop.f32.mrf.mxu0 }
 0x290   :  { %4753 = vmatpush3.bf16.msra.mxu1 %v5423_v27  ;;  %v3503_v14 = vpop.f32.mrf.mxu0 }
 0x292   :  { %3721 = vmatmul.mubr.bf16.gmra.mxu1 %v6206_v32  ;;  %v5424_v32 = vld [vmem:[#allocation10 + $0xe8] sm:$0xff]   ;;  %v3505_v37 = vpop.f32.mrf.mxu0 }
 0x293   :  { %3730 = vmatprep.mubr.bf16.mxu1 %v6220_v16  ;;  %4754 = vmatprep.subr.bf16.mxu1 %v5424_v32  ;;  %v5429_v16 = vld [vmem:[#allocation10 + $0x98] sm:$0xff]  }
 0x294   :  { %4755 = vmatpush3.bf16.msra.mxu1 %v5425_v45  ;;  %v3507_v35 = vpop.f32.mrf.mxu0 }
 0x295   :  { %4756 = vmatprep.subr.bf16.mxu1 %v5426_v46 }
 0x296   :  { %v3509_v0 = vpop.f32.mrf.mxu0 }
 0x298   :  { %4757 = vmatpush3.bf16.msra.mxu1 %v5427_v21  ;;  %v3513_v34 = vpop.f32.mrf.mxu0 }
 0x299   :  { %4758 = vmatprep.subr.bf16.mxu1 %v5428_v28 }
 0x29a   :  { %3731 = vmatmul.mubr.bf16.gmra.mxu1 %v6222_v9  ;;  %v5432_v9 = vld [vmem:[#allocation10 + $0xc8] sm:$0xff]   ;;  %v3515_v24 = vpop.f32.mrf.mxu0 }
 0x29b   :  { %3740 = vmatprep.mubr.bf16.mxu1 %v6226_v49  ;;  %v6351_v49 = vsub.s32 1, %v6350_v2 }
 0x29c   :  { %4759 = vmatpush3.bf16.msra.mxu1 %v5429_v16  ;;  %v3517_v11 = vpop.f32.mrf.mxu0 }
 0x29d   :  { %4760 = vmatprep.subr.bf16.mxu1 %v5430_v59  ;;  %v6245_v62 = vrot.slane %v6240_v15, %v6351_v49 }
 0x29e   :  { %v3519_v13 = vpop.f32.mrf.mxu0 }
 0x29f   :  { %v3496_v57 = vadd.f32 %v3495_v61, %v6245_v62  ;;  %v3500_v29 = vadd.f32 %v3499_v26, %v6245_v62  ;;  %v3506_v54 = vadd.f32 %v3505_v37, %v6245_v62  ;;  %v3510_v7 = vadd.f32 %v3509_v0, %v6245_v62 }
 0x2a0   :  { %4761 = vmatpush3.bf16.msra.mxu1 %v5431_v23  ;;  %v3523_v53 = vpop.f32.mrf.mxu0  ;;  %v3516_v28 = vadd.f32 %v3515_v24, %v6245_v62 }
 0x2a1   :  { %4762 = vmatprep.subr.bf16.mxu1 %v5432_v9 }
 0x2a2   :  { %3741 = vmatmul.mubr.bf16.gmra.mxu1 %v6228_v52  ;;  %v6352_v52 = vsub.s32 0, %v6350_v2  ;;  %v3525_v45 = vpop.f32.mrf.mxu0 }
 0x2a4   :  { %4763 = vmatpush3.bf16.msra.mxu1 %v5433_v10  ;;  %v6250_v33 = vrot.slane %v6240_v15, %v6352_v52  ;;  %v3527_v61 = vpop.f32.mrf.mxu0 }
 0x2a5   :  { %4764 = vmatprep.subr.bf16.mxu1 %v5434_v4  ;;  %v3520_v4 = vadd.f32 %v3519_v13, %v6245_v62 }
 0x2a6   :  { %v3498_v41 = vadd.f32 %v3497_v40, %v6250_v33  ;;  %v3494_v39 = vadd.f32 %v3493_v6, %v6250_v33  ;;  %v3508_v1 = vadd.f32 %v3507_v35, %v6250_v33  ;;  %v3504_v50 = vadd.f32 %v3503_v14, %v6250_v33  ;;  %v3529_v52 = vpop.f32.mrf.mxu0 }
 0x2a7   :  { %v3518_v16 = vadd.f32 %v3517_v11, %v6250_v33  ;;  %v3514_v23 = vadd.f32 %v3513_v34, %v6250_v33  ;;  %v3526_v34 = vadd.f32 %v3525_v45, %v6245_v62 }
 0x2a8   :  { %4765 = vmatpush3.bf16.msra.mxu1 %v5435_v18 }
 0x2c8   :  { %v3639_v11 = vpop.f32.mrf.mxu0 }
 0x30a   :  { %v3566_v22 = vpop.f32.mrf.mxu1 }
 0x30b   :  { %v3567_v36 = vadd.f32 %v3566_v22, %v3494_v39 }
 0x30c   :  { %v3568_v58 = vpop.f32.mrf.mxu1 }
 0x30d   :  { %v3569_v38 = vadd.f32 %v3568_v58, %v3496_v57  ;;  %v3751_v19 = vmax.f32 %v3567_v36, 0.0  ;;  %v3528_v58 = vadd.f32 %v3527_v61, %v6250_v33 }
 0x30e   :  { %v3570_v43 = vpop.f32.mrf.mxu1 }
 0x30f   :  { %v3571_v51 = vadd.f32 %v3570_v43, %v3498_v41  ;;  %v3752_v3 = vmax.f32 %v3569_v38, 0.0  ;;  %v3524_v41 = vadd.f32 %v3523_v53, %v6250_v33 }
 0x310   :  { %v3572_v44 = vpop.f32.mrf.mxu1 }
 0x311   :  { %v3573_v60 = vadd.f32 %v3572_v44, %v3500_v29  ;;  %v3755_v25 = vmax.f32 %v3571_v51, 0.0  ;;  %v3530_v29 = vadd.f32 %v3529_v52, %v6245_v62 }
 0x312   :  { %v3576_v31 = vpop.f32.mrf.mxu1 }
 0x313   :  { %v3756_v12 = vmax.f32 %v3573_v60, 0.0  ;;  %v3783_v55 = vpack.c.bf16 %v3755_v25, %v3751_v19  ;;  %v3577_v48 = vadd.f32 %v3576_v31, %v3504_v50 }
 0x314   :  { %v3578_v56 = vpop.f32.mrf.mxu1 }
 0x315   :  { %v3784_v8 = vpack.c.bf16 %v3756_v12, %v3752_v3  ;;  %v3579_v42 = vadd.f32 %v3578_v56, %v3506_v54  ;;  %v3759_v46 = vmax.f32 %v3577_v48, 0.0  ;;  %v3641_v12 = vpop.f32.mrf.mxu0 }
 0x316   :  { %v3580_v30 = vpop.f32.mrf.mxu1 }
 0x317   :  { %v3581_v47 = vadd.f32 %v3580_v30, %v3508_v1  ;;  %4094 = vmatprep.mubr.bf16.mxu0 %v3784_v8  ;;  %v3760_v27 = vmax.f32 %v3579_v42, 0.0  ;;  %v3643_v33 = vpop.f32.mrf.mxu0  ;;  %v6353_v30 = vsub.s32 3, %v6350_v2  ;;  %v6354_v42 = vsub.s32 2, %v6350_v2 }
 0x318   :  { %v3582_v20 = vpop.f32.mrf.mxu1  ;;  %4095 = vmatmul.mubr.bf16.vlgmr.msra.gmra.mxu0 %v3783_v55 }
 0x319   :  { %v3583_v5 = vadd.f32 %v3582_v20, %v3510_v7  ;;  %v3763_v63 = vmax.f32 %v3581_v47, 0.0  ;;  %v3645_v54 = vpop.f32.mrf.mxu0  ;;  %v6271_v7 = vrot.slane %v6240_v15, %v6353_v30  ;;  %v6276_v47 = vrot.slane %v6240_v15, %v6354_v42 }
 0x31a   :  { %v3586_v17 = vpop.f32.mrf.mxu1 }
 0x31b   :  { %v3764_v32 = vmax.f32 %v3583_v5, 0.0  ;;  %v3787_v9 = vpack.c.bf16 %v3763_v63, %v3759_v46  ;;  %v3587_v40 = vadd.f32 %v3586_v17, %v3514_v23  ;;  %v3649_v62 = vpop.f32.mrf.mxu0  ;;  %v3642_v5 = vadd.f32 %v3641_v12, %v6271_v7 }
 0x31c   :  { %v3588_v21 = vpop.f32.mrf.mxu1  ;;  %v3644_v63 = vadd.f32 %v3643_v33, %v6276_v47  ;;  %v3640_v17 = vadd.f32 %v3639_v11, %v6276_v47 }
 0x31d   :  { %v3788_v59 = vpack.c.bf16 %v3764_v32, %v3760_v27  ;;  %v3589_v18 = vadd.f32 %v3588_v21, %v3516_v28  ;;  %v3767_v22 = vmax.f32 %v3587_v40, 0.0  ;;  %v3651_v1 = vpop.f32.mrf.mxu0  ;;  %v3646_v32 = vadd.f32 %v3645_v54, %v6271_v7 }
 0x31e   :  { %v3590_v10 = vpop.f32.mrf.mxu1 }
 0x31f   :  { %v3591_v6 = vadd.f32 %v3590_v10, %v3518_v16  ;;  %4102 = vmatprep.mubr.bf16.mxu0 %v3788_v59  ;;  %v3768_v0 = vmax.f32 %v3589_v18, 0.0  ;;  %v3653_v8 = vpop.f32.mrf.mxu0 }
 0x320   :  { %v3592_v26 = vpop.f32.mrf.mxu1  ;;  %4103 = vmatmul.mubr.bf16.gmra.mxu0 %v3787_v9  ;;  %v3654_v61 = vadd.f32 %v3653_v8, %v6276_v47 }
 0x321   :  { %v3593_v14 = vadd.f32 %v3592_v26, %v3520_v4  ;;  %v3771_v37 = vmax.f32 %v3591_v6, 0.0  ;;  %v3655_v50 = vpop.f32.mrf.mxu0  ;;  %v3652_v6 = vadd.f32 %v3651_v1, %v6271_v7  ;;  %v3650_v26 = vadd.f32 %v3649_v62, %v6276_v47 }
 0x322   :  { %v3596_v35 = vpop.f32.mrf.mxu1 }
 0x323   :  { %v3772_v49 = vmax.f32 %v3593_v14, 0.0  ;;  %v3791_v39 = vpack.c.bf16 %v3771_v37, %v3767_v22  ;;  %v3597_v36 = vadd.f32 %v3596_v35, %v3524_v41  ;;  %v3659_v55 = vpop.f32.mrf.mxu0  ;;  %v3656_v35 = vadd.f32 %v3655_v50, %v6271_v7 }
 0x324   :  { %v3598_v24 = vpop.f32.mrf.mxu1 }
 0x325   :  { %v3792_v57 = vpack.c.bf16 %v3772_v49, %v3768_v0  ;;  %v3599_v38 = vadd.f32 %v3598_v24, %v3526_v34  ;;  %v3775_v13 = vmax.f32 %v3597_v36, 0.0  ;;  %v3661_v48 = vpop.f32.mrf.mxu0 }
 0x326   :  { %v3600_v43 = vpop.f32.mrf.mxu1 }
 0x327   :  { %v3601_v51 = vadd.f32 %v3600_v43, %v3528_v58  ;;  %4110 = vmatprep.mubr.bf16.mxu0 %v3792_v57  ;;  %v3776_v31 = vmax.f32 %v3599_v38, 0.0  ;;  %v3663_v21 = vpop.f32.mrf.mxu0 }
 0x328   :  { %v3602_v44 = vpop.f32.mrf.mxu1  ;;  %4111 = vmatmul.mubr.bf16.gmra.mxu0 %v3791_v39  ;;  %v3664_v11 = vadd.f32 %v3663_v21, %v6276_v47 }
 0x329   :  { %v3603_v60 = vadd.f32 %v3602_v44, %v3530_v29  ;;  %v3779_v25 = vmax.f32 %v3601_v51, 0.0  ;;  %v3665_v10 = vpop.f32.mrf.mxu0  ;;  %v3662_v51 = vadd.f32 %v3661_v48, %v6271_v7  ;;  %v3660_v44 = vadd.f32 %v3659_v55, %v6276_v47 }
 0x32b   :  { %v3780_v3 = vmax.f32 %v3603_v60, 0.0  ;;  %v3795_v56 = vpack.c.bf16 %v3779_v25, %v3775_v13  ;;  %v3669_v52 = vpop.f32.mrf.mxu0 }
 0x32d   :  { %v3796_v19 = vpack.c.bf16 %v3780_v3, %v3776_v31  ;;  %v3671_v43 = vpop.f32.mrf.mxu0  ;;  %v3666_v31 = vadd.f32 %v3665_v10, %v6271_v7 }
 0x32e   :  { %v3672_v55 = vadd.f32 %v3671_v43, %v6271_v7 }
 0x32f   :  { %4118 = vmatprep.mubr.bf16.mxu0 %v3796_v19  ;;  %v3673_v13 = vpop.f32.mrf.mxu0 }
 0x330   :  { %4119 = vmatmul.mubr.bf16.gmra.mxu0 %v3795_v56 }
 0x331   :  { %v3675_v50 = vpop.f32.mrf.mxu0 }
 0x34a   :  { %v3712_v53 = vpop.f32.mrf.mxu1 }
 0x34b   :  { %v3713_v28 = vadd.f32 %v3712_v53, %v3640_v17  ;;  %v3674_v53 = vadd.f32 %v3673_v13, %v6276_v47  ;;  %v3676_v17 = vadd.f32 %v3675_v50, %v6271_v7 }
 0x34c   :  { %v3714_v20 = vpop.f32.mrf.mxu1 }
 0x34d   :  { %v3715_v45 = vadd.f32 %v3714_v20, %v3642_v5  ;;  %v3753_v4 = vmax.f32 %v3713_v28, 0.0  ;;  %v3670_v20 = vadd.f32 %v3669_v52, %v6276_v47 }
 0x34e   :  { %v3716_v27 = vpop.f32.mrf.mxu1 }
 0x34f   :  { %v3717_v46 = vadd.f32 %v3716_v27, %v3644_v63  ;;  %v3754_v23 = vmax.f32 %v3715_v45, 0.0 }
 0x350   :  { %v3718_v2 = vpop.f32.mrf.mxu1 }
 0x351   :  { %v3719_v16 = vadd.f32 %v3718_v2, %v3646_v32  ;;  %v3757_v15 = vmax.f32 %v3717_v46, 0.0 }
 0x352   :  { %v3722_v59 = vpop.f32.mrf.mxu1 }
 0x353   :  { %v3758_v9 = vmax.f32 %v3719_v16, 0.0  ;;  %v3785_v14 = vpack.c.bf16 %v3757_v15, %v3753_v4  ;;  %v3723_v22 = vadd.f32 %v3722_v59, %v3650_v26 }
 0x354   :  { %v3724_v18 = vpop.f32.mrf.mxu1 }
 0x355   :  { %v3786_v40 = vpack.c.bf16 %v3758_v9, %v3754_v23  ;;  %v3725_v0 = vadd.f32 %v3724_v18, %v3652_v6  ;;  %v3761_v29 = vmax.f32 %v3723_v22, 0.0 }
 0x356   :  { %v3726_v37 = vpop.f32.mrf.mxu1 }
 0x357   :  { %v3727_v49 = vadd.f32 %v3726_v37, %v3654_v61  ;;  %4159 = vmatprep.mubr.bf16.mxu1 %v3786_v40  ;;  %v3762_v41 = vmax.f32 %v3725_v0, 0.0 }
 0x358   :  { %v3728_v24 = vpop.f32.mrf.mxu1  ;;  %4160 = vmatmul.mubr.bf16.vlgmr.msra.gmra.mxu1 %v3785_v14 }
 0x359   :  { %v3729_v34 = vadd.f32 %v3728_v24, %v3656_v35  ;;  %v3765_v58 = vmax.f32 %v3727_v49, 0.0  ;;  %v4677_v24 = vld [vmem:[#allocation12] ss:$0 sm:$0xff] }
 0x35a   :  { %v3732_v57 = vpop.f32.mrf.mxu1 }
 0x35b   :  { %v3766_v39 = vmax.f32 %v3729_v34, 0.0  ;;  %v3789_v60 = vpack.c.bf16 %v3765_v58, %v3761_v29  ;;  %v3733_v19 = vadd.f32 %v3732_v57, %v3660_v44 }
 0x35c   :  { %v3734_v38 = vpop.f32.mrf.mxu1 }
 0x35d   :  { %v3790_v36 = vpack.c.bf16 %v3766_v39, %v3762_v41  ;;  %v3735_v3 = vadd.f32 %v3734_v38, %v3662_v51  ;;  %v3769_v30 = vmax.f32 %v3733_v19, 0.0 }
 0x35e   :  { %v3736_v25 = vpop.f32.mrf.mxu1 }
 0x35f   :  { %v3737_v12 = vadd.f32 %v3736_v25, %v3664_v11  ;;  %4167 = vmatprep.mubr.bf16.mxu1 %v3790_v36  ;;  %v3770_v1 = vmax.f32 %v3735_v3, 0.0 }
 0x360   :  { %v3738_v56 = vpop.f32.mrf.mxu1  ;;  %4168 = vmatmul.mubr.bf16.gmra.mxu1 %v3789_v60 }
 0x361   :  { %v3739_v33 = vadd.f32 %v3738_v56, %v3666_v31  ;;  %v3773_v54 = vmax.f32 %v3737_v12, 0.0 }
 0x362   :  { %v3742_v62 = vpop.f32.mrf.mxu1 }
 0x363   :  { %v3774_v8 = vmax.f32 %v3739_v33, 0.0  ;;  %v3793_v5 = vpack.c.bf16 %v3773_v54, %v3769_v30  ;;  %v3743_v45 = vadd.f32 %v3742_v62, %v3670_v20 }
 0x364   :  { %v3744_v42 = vpop.f32.mrf.mxu1 }
 0x365   :  { %v3794_v48 = vpack.c.bf16 %v3774_v8, %v3770_v1  ;;  %v3745_v27 = vadd.f32 %v3744_v42, %v3672_v55  ;;  %v3777_v15 = vmax.f32 %v3743_v45, 0.0 }
 0x366   :  { %v3746_v63 = vpop.f32.mrf.mxu1 }
 0x367   :  { %v3747_v32 = vadd.f32 %v3746_v63, %v3674_v53  ;;  %4175 = vmatprep.mubr.bf16.mxu1 %v3794_v48  ;;  %v3778_v2 = vmax.f32 %v3745_v27, 0.0 }
 0x368   :  { %v3748_v46 = vpop.f32.mrf.mxu1  ;;  %4176 = vmatmul.mubr.bf16.gmra.mxu1 %v3793_v5 }
 0x369   :  { %v3749_v21 = vadd.f32 %v3748_v46, %v3676_v17  ;;  %v3781_v28 = vmax.f32 %v3747_v32, 0.0 }
 0x36b   :  { %v3782_v16 = vmax.f32 %v3749_v21, 0.0  ;;  %v3797_v23 = vpack.c.bf16 %v3781_v28, %v3777_v15 }
 0x36d   :  { %v3798_v59 = vpack.c.bf16 %v3782_v16, %v3778_v2 }
 0x36f   :  { %4183 = vmatprep.mubr.bf16.mxu1 %v3798_v59 }
 0x370   :  { %4184 = vmatmul.mubr.bf16.gmra.mxu1 %v3797_v23 }
 0x3d8   :  { %v4726_v47 = vpop.f32.mrf.mxu0 }
 0x3da   :  { %v4727_v9 = vpop.f32.mrf.mxu0 }
 0x3db   :  { %v4728_v22 = vadd.f32 %v4727_v9, %v4726_v47 }
 0x3dc   :  { %v4729_v10 = vpop.f32.mrf.mxu0 }
 0x3dd   :  { %v4097_v57 = vadd.f32 %v4728_v22, %v4677_v24 }
 0x3de   :  { %v4730_v4 = vpop.f32.mrf.mxu0 }
 0x3df   :  { %v4731_v41 = vadd.f32 %v4730_v4, %v4729_v10 }
 0x3e0   :  { %v4732_v7 = vpop.f32.mrf.mxu0 }
 0x3e1   :  { %v4100_v51 = vadd.f32 %v4731_v41, %v4677_v24 }
 0x3e2   :  { %v4733_v18 = vpop.f32.mrf.mxu0 }
 0x3e3   :  { %v4734_v11 = vadd.f32 %v4733_v18, %v4732_v7 }
 0x3e4   :  { %v4735_v6 = vpop.f32.mrf.mxu0 }
 0x3e5   :  { %v4105_v31 = vadd.f32 %v4734_v11, %v4677_v24 }
 0x3e6   :  { %v4736_v61 = vpop.f32.mrf.mxu0 }
 0x3e7   :  { %v4737_v3 = vadd.f32 %v4736_v61, %v4735_v6 }
 0x3e8   :  { %v4738_v40 = vpop.f32.mrf.mxu0 }
 0x3e9   :  { %v4108_v33 = vadd.f32 %v4737_v3, %v4677_v24 }
 0x3ea   :  { %v4739_v26 = vpop.f32.mrf.mxu0 }
 0x3eb   :  { %v4740_v54 = vadd.f32 %v4739_v26, %v4738_v40 }
 0x3ec   :  { %v4741_v14 = vpop.f32.mrf.mxu0 }
 0x3ed   :  { %v4113_v30 = vadd.f32 %v4740_v54, %v4677_v24 }
 0x3ee   :  { %v4742_v37 = vpop.f32.mrf.mxu0 }
 0x3ef   :  { %v4743_v42 = vadd.f32 %v4742_v37, %v4741_v14 }
 0x3f0   :  { %v4744_v35 = vpop.f32.mrf.mxu0 }
 0x3f1   :  { %v4116_v5 = vadd.f32 %v4743_v42, %v4677_v24 }
 0x3f2   :  { %v4745_v0 = vpop.f32.mrf.mxu0 }
 0x3f3   :  { %v4746_v63 = vadd.f32 %v4745_v0, %v4744_v35 }
 0x3f4   :  { %v4747_v49 = vpop.f32.mrf.mxu0 }
 0x3f5   :  { %v4121_v46 = vadd.f32 %v4746_v63, %v4677_v24 }
 0x3f6   :  { %v4748_v52 = vpop.f32.mrf.mxu0 }
 0x418   :  { %v4766_v34 = vpop.f32.mrf.mxu1 }
 0x41a   :  { %v4767_v58 = vpop.f32.mrf.mxu1 }
 0x41b   :  { %v4768_v39 = vadd.f32 %v4767_v58, %v4766_v34 }
 0x41c   :  { %v4769_v43 = vpop.f32.mrf.mxu1 }
 0x41d   :  { %v4162_v29 = vadd.f32 %v4768_v39, %v4097_v57 }
 0x41e   :  { %v4770_v38 = vpop.f32.mrf.mxu1 }
 0x41f   :  { %4243 = vst [vmem:[%s6322_s7] sm:$0xff] %v4162_v29  ;;  %v4771_v36 = vadd.f32 %v4770_v38, %v4769_v43 }
 0x420   :  { %v4772_v44 = vpop.f32.mrf.mxu1 }
 0x421   :  { %v4165_v60 = vadd.f32 %v4771_v36, %v4100_v51 }
 0x422   :  { %v4773_v25 = vpop.f32.mrf.mxu1 }
 0x423   :  { %4245 = vst [vmem:[%s6322_s7 + $0x8] sm:$0xff] %v4165_v60  ;;  %v4774_v12 = vadd.f32 %v4773_v25, %v4772_v44 }
 0x424   :  { %v4775_v13 = vpop.f32.mrf.mxu1 }
 0x425   :  { %v4170_v19 = vadd.f32 %v4774_v12, %v4105_v31 }
 0x426   :  { %v4776_v56 = vpop.f32.mrf.mxu1 }
 0x427   :  { %4247 = vst [vmem:[%s6322_s7 + $0x10] sm:$0xff] %v4170_v19  ;;  %v4777_v62 = vadd.f32 %v4776_v56, %v4775_v13 }
 0x428   :  { %v4778_v1 = vpop.f32.mrf.mxu1 }
 0x429   :  { %v4173_v8 = vadd.f32 %v4777_v62, %v4108_v33 }
 0x42a   :  { %v4779_v50 = vpop.f32.mrf.mxu1 }
 0x42b   :  { %4249 = vst [vmem:[%s6322_s7 + $0x18] sm:$0xff] %v4173_v8  ;;  %v4780_v55 = vadd.f32 %v4779_v50, %v4778_v1 }
 0x42c   :  { %v4781_v53 = vpop.f32.mrf.mxu1 }
 0x42d   :  { %v4178_v48 = vadd.f32 %v4780_v55, %v4113_v30 }
 0x42e   :  { %v4782_v20 = vpop.f32.mrf.mxu1 }
 0x42f   :  { %4251 = vst [vmem:[%s6322_s7 + $0x20] sm:$0xff] %v4178_v48  ;;  %v4783_v17 = vadd.f32 %v4782_v20, %v4781_v53 }
 0x430   :  { %v4784_v27 = vpop.f32.mrf.mxu1 }
 0x431   :  { %v4181_v32 = vadd.f32 %v4783_v17, %v4116_v5 }
 0x432   :  { %v4785_v45 = vpop.f32.mrf.mxu1 }
 0x433   :  { %4253 = vst [vmem:[%s6322_s7 + $0x28] sm:$0xff] %v4181_v32  ;;  %v4786_v21 = vadd.f32 %v4785_v45, %v4784_v27 }
 0x434   :  { %v4787_v28 = vpop.f32.mrf.mxu1 }
 0x435   :  { %v4186_v2 = vadd.f32 %v4786_v21, %v4121_v46 }
 0x436   :  { %v4788_v16 = vpop.f32.mrf.mxu1 }
 0x437   :  { %4255 = vst [vmem:[%s6322_s7 + $0x30] sm:$0xff] %v4186_v2 }
 0x438   :  { %4261 = vsyncpa [#allocation3], 1 }
 0x439   :  { %4262 = vsyncpa [#allocation5], 1 }
 0x43a   :  { %4263 = vsyncpa [#allocation8], 1 }
 0x43b   :  { %4264 = vsyncpa [#allocation11], 1 }

</bundles_post_ra>
